<compile_context>
chip_gen: v5e
topology: v5e:2x2
jax: 0.10.0
libtpu: 0.0.40
codegen_flags: <defaults>
</compile_context>

<pallas_src>
import functools

import jax
import jax.numpy as jnp
from jax import lax
from jax.experimental import pallas as pl
from jax.experimental.pallas import tpu as pltpu


# ----------------------------------------------------------------------------
# Fused decoder kernel (runs once per batch element; grid = (B,)).
# ----------------------------------------------------------------------------
def _decoder_kernel(x_ref, w1_ref, b1_ref, w2_ref, b2_ref,
                    wb1_ref, bc1_ref, wb2_ref, bc2_ref,
                    wb3_ref, bc3_ref, wb4_ref, bc4_ref,
                    o_ref, *, hs):
    f32 = jnp.float32
    cdt = w1_ref.dtype                       # MXU operand dtype (bf16)

    # ---- Linear(linear_output -> linear_input) + ReLU -----------------------
    x = x_ref[0].astype(cdt)                                  # (1, latent)
    h = jnp.dot(x, w1_ref[...], preferred_element_type=f32)
    h = jnp.maximum(h + b1_ref[...], 0.0)                     # (1, li) f32

    # ---- Linear(linear_input -> 32*hs*hs) + ReLU ----------------------------
    # (columns pre-permuted to (h, w, c) order by the wrapper)
    h = jnp.dot(h.astype(cdt), w2_ref[...], preferred_element_type=f32)
    h = jnp.maximum(h + b2_ref[...], 0.0)                     # (1, hs*hs*32)

    # ---- UnFlatten: (1, hs*hs*32) row -> (hs, hs*32) activation matrix ------
    wc = wb1_ref.shape[1]                                     # hs * 32
    row = lax.broadcasted_iota(jnp.int32, (hs, 1), 0)
    a = jnp.zeros((hs, wc), f32)
    for r in range(hs):
        a = a + jnp.where(row == r, h[:, r * wc:(r + 1) * wc], 0.0)

    # ---- row-shift selection matrices (shared by all conv layers) -----------
    ri = lax.broadcasted_iota(jnp.int32, (hs, hs), 0)
    ci = lax.broadcasted_iota(jnp.int32, (hs, hs), 1)
    rdn = jnp.where(ci == ri - 1, 1.0, 0.0).astype(cdt)   # (rdn@a)[y] = a[y-1]
    rup = jnp.where(ci == ri + 1, 1.0, 0.0).astype(cdt)   # (rup@a)[y] = a[y+1]

    def conv_same(hin, wb, bias):
        """3x3 transposed conv, stride 1, pad 1 -> banded matmuls."""
        v = hin.astype(cdt)
        dn = jnp.dot(rdn, v, preferred_element_type=f32).astype(cdt)
        up = jnp.dot(rup, v, preferred_element_type=f32).astype(cdt)
        acc = jnp.dot(dn, wb[0], preferred_element_type=f32)
        acc = acc + jnp.dot(v, wb[1], preferred_element_type=f32)
        acc = acc + jnp.dot(up, wb[2], preferred_element_type=f32)
        return jnp.maximum(acc + bias[...], 0.0)

    a = conv_same(a, wb1_ref, bc1_ref)       # (hs, hs*32)
    a = conv_same(a, wb2_ref, bc2_ref)       # (hs, hs*32)
    a = conv_same(a, wb3_ref, bc3_ref)       # (hs, hs*16)

    # ---- ConvTranspose2d(16->C, k=3, s=2, p=1, op=1) + Sigmoid --------------
    # Even output rows (y=2r) use only the centre h-tap of input row r; odd
    # rows (y=2r+1) use rows r and r+1.  The stride-2 column upsample and the
    # output_padding are folded into the band matrices wb4[dh].
    v = a.astype(cdt)
    up = jnp.dot(rup, v, preferred_element_type=f32).astype(cdt)
    even = jnp.dot(v, wb4_ref[1], preferred_element_type=f32) + bc4_ref[...]
    odd = (jnp.dot(v, wb4_ref[0], preferred_element_type=f32)
           + jnp.dot(up, wb4_ref[2], preferred_element_type=f32)
           + bc4_ref[...])

    def sigmoid(z):
        # exp on EUP + approximate reciprocal on EUP; result stays in [0, 1].
        e = jnp.exp(-jnp.abs(z))
        t = e * pl.reciprocal(1.0 + e, approx=True)
        return jnp.where(z >= 0.0, 1.0 - t, t)

    half = wb4_ref.shape[2]                  # 2*hs*image_channels
    o_ref[0, :, 0:half] = sigmoid(even)      # even output rows
    o_ref[0, :, half:2 * half] = sigmoid(odd)  # odd output rows


# ----------------------------------------------------------------------------
# Wrapper-side weight preparation (done once, plain JAX).
# ----------------------------------------------------------------------------
def _flipped_taps(w):
    """ConvTranspose2d weight (Ci,Co,3,3) -> correlation taps wf[dh,dw] (Ci,Co)."""
    return jnp.transpose(jnp.flip(w, axis=(2, 3)), (2, 3, 0, 1))  # (3,3,Ci,Co)


def _band_same(w, width):
    """Band matrices (3, width*Ci, width*Co) for a stride-1 pad-1 3x3 layer."""
    wf = _flipped_taps(w)
    ci, co = wf.shape[2], wf.shape[3]
    m = jnp.zeros((3, width * ci, width * co), dtype=wf.dtype)
    for wo in range(width):
        for dw in range(3):
            wi = wo + dw - 1
            if 0 <= wi < width:
                m = m.at[:, wi * ci:(wi + 1) * ci,
                         wo * co:(wo + 1) * co].set(wf[:, dw])
    return m


def _band_stride2(w, width_in):
    """Band matrices (3, width_in*Ci, 2*width_in*Co) for stride-2, pad-1, op-1."""
    wf = _flipped_taps(w)
    ci, co = wf.shape[2], wf.shape[3]
    width_out = 2 * width_in
    m = jnp.zeros((3, width_in * ci, width_out * co), dtype=wf.dtype)
    for j in range(width_in):
        for dw in range(3):
            x = 1 + 2 * j - dw               # output column hit by (j, dw)
            if 0 <= x < width_out:
                m = m.at[:, j * ci:(j + 1) * ci,
                         x * co:(x + 1) * co].set(wf[:, dw])
    return m


def prepare_fused_params(p, image_size, compute_dtype=jnp.bfloat16):
    hs = image_size // 2
    li = p["w2"].shape[0]
    # Permute Linear-2 columns from PyTorch (c, h, w) order to (h, w, c) so the
    # UnFlatten lands directly in the conv (H, W*C) layout.
    w2 = p["w2"].reshape(li, 32, hs, hs).transpose(0, 2, 3, 1).reshape(li, -1)
    b2 = p["b2"].reshape(32, hs, hs).transpose(1, 2, 0).reshape(1, -1)
    return {
        "w1": p["w1"].astype(compute_dtype),
        "b1": p["b1"].reshape(1, -1),
        "w2": w2.astype(compute_dtype),
        "b2": b2,
        "wb1": _band_same(p["ct1_w"], hs).astype(compute_dtype),
        "bc1": jnp.tile(p["ct1_b"], hs).reshape(1, -1),
        "wb2": _band_same(p["ct2_w"], hs).astype(compute_dtype),
        "bc2": jnp.tile(p["ct2_b"], hs).reshape(1, -1),
        "wb3": _band_same(p["ct3_w"], hs).astype(compute_dtype),
        "bc3": jnp.tile(p["ct3_b"], hs).reshape(1, -1),
        "wb4": _band_stride2(p["ct4_w"], hs).astype(compute_dtype),
        "bc4": jnp.tile(p["ct4_b"], 2 * hs).reshape(1, -1),
    }


# ----------------------------------------------------------------------------
# Fused forward pass.
# ----------------------------------------------------------------------------
def decoder_forward(fp, x, image_size, image_channels):
    B = x.shape[0]
    hs = image_size // 2
    half = 2 * hs * image_channels           # lanes per output-row parity
    x3 = x[:, None, :]                       # (B, 1, latent)

    out = pl.pallas_call(
        functools.partial(_decoder_kernel, hs=hs),
        out_shape=jax.ShapeDtypeStruct((B, hs, 2 * half), jnp.float32),
        grid=(B,),
        in_specs=[
            pl.BlockSpec((1, 1, x.shape[1]), lambda b: (b, 0, 0)),
            pl.BlockSpec(fp["w1"].shape, lambda b: (0, 0)),
            pl.BlockSpec(fp["b1"].shape, lambda b: (0, 0)),
            pl.BlockSpec(fp["w2"].shape, lambda b: (0, 0)),
            pl.BlockSpec(fp["b2"].shape, lambda b: (0, 0)),
            pl.BlockSpec(fp["wb1"].shape, lambda b: (0, 0, 0)),
            pl.BlockSpec(fp["bc1"].shape, lambda b: (0, 0)),
            pl.BlockSpec(fp["wb2"].shape, lambda b: (0, 0, 0)),
            pl.BlockSpec(fp["bc2"].shape, lambda b: (0, 0)),
            pl.BlockSpec(fp["wb3"].shape, lambda b: (0, 0, 0)),
            pl.BlockSpec(fp["bc3"].shape, lambda b: (0, 0)),
            pl.BlockSpec(fp["wb4"].shape, lambda b: (0, 0, 0)),
            pl.BlockSpec(fp["bc4"].shape, lambda b: (0, 0)),
        ],
        out_specs=pl.BlockSpec((1, hs, 2 * half), lambda b: (b, 0, 0)),
        compiler_params=pltpu.CompilerParams(
            dimension_semantics=("parallel",)),
    )(x3, fp["w1"], fp["b1"], fp["w2"], fp["b2"],
      fp["wb1"], fp["bc1"], fp["wb2"], fp["bc2"],
      fp["wb3"], fp["bc3"], fp["wb4"], fp["bc4"])

    # (B, hs, 2, 2*hs, C) -> NCHW; output row y = 2*r + parity.
    out = out.reshape(B, hs, 2, 2 * hs, image_channels)
    out = out.transpose(0, 4, 1, 2, 3).reshape(
        B, image_channels, image_size, image_size)
    return out


# ----------------------------------------------------------------------------
# Parameter init (same convention as the PyTorch module).
# ----------------------------------------------------------------------------
def init_params(key, image_size, linear_input, linear_output, image_channels):
    ks = jax.random.split(key, 12)
    s = 0.05
    h2 = 32 * (image_size ** 2 // 4)
    p = {
        "w1": jax.random.normal(ks[0], (linear_output, linear_input)) * s,
        "b1": jax.random.normal(ks[1], (linear_input,)) * s,
        "w2": jax.random.normal(ks[2], (linear_input, h2)) * s,
        "b2": jax.random.normal(ks[3], (h2,)) * s,
        "ct1_w": jax.random.normal(ks[4], (32, 32, 3, 3)) * s,
        "ct1_b": jax.random.normal(ks[5], (32,)) * s,
        "ct2_w": jax.random.normal(ks[6], (32, 32, 3, 3)) * s,
        "ct2_b": jax.random.normal(ks[7], (32,)) * s,
        "ct3_w": jax.random.normal(ks[8], (32, 16, 3, 3)) * s,
        "ct3_b": jax.random.normal(ks[9], (16,)) * s,
        "ct4_w": jax.random.normal(ks[10], (16, image_channels, 3, 3)) * s,
        "ct4_b": jax.random.normal(ks[11], (image_channels,)) * s,
    }
    return jax.tree.map(lambda a: a.astype(jnp.float32), p)


# ----------------------------------------------------------------------------
# Plain-JAX f32 reference (for correctness checking only).
# ----------------------------------------------------------------------------
def _ref_conv_transpose(x_nhwc, w, b, stride, padding, output_padding):
    k = w.shape[2]
    wk = jnp.transpose(jnp.flip(w, axis=(2, 3)), (2, 3, 0, 1))  # (kh,kw,Ci,Co)
    lo = k - 1 - padding
    hi = k - 1 - padding + output_padding
    y = jax.lax.conv_general_dilated(
        x_nhwc, wk, window_strides=(1, 1), padding=((lo, hi), (lo, hi)),
        lhs_dilation=(stride, stride),
        dimension_numbers=("NHWC", "HWIO", "NHWC"))
    return y + b


def decoder_forward_ref(p, x, image_size):
    B = x.shape[0]
    hs = image_size // 2
    h = jnp.maximum(x @ p["w1"] + p["b1"], 0.0)
    h = jnp.maximum(h @ p["w2"] + p["b2"], 0.0)
    h = h.reshape(B, 32, hs, hs).transpose(0, 2, 3, 1)          # NCHW -> NHWC
    h = jnp.maximum(_ref_conv_transpose(h, p["ct1_w"], p["ct1_b"], 1, 1, 0), 0.0)
    h = jnp.maximum(_ref_conv_transpose(h, p["ct2_w"], p["ct2_b"], 1, 1, 0), 0.0)
    h = jnp.maximum(_ref_conv_transpose(h, p["ct3_w"], p["ct3_b"], 1, 1, 0), 0.0)
    h = jax.nn.sigmoid(_ref_conv_transpose(h, p["ct4_w"], p["ct4_b"], 2, 1, 1))
    return h.transpose(0, 3, 1, 2)


if __name__ == "__main__":
    image_size = 16
    linear_input = 32
    linear_output = 8
    image_channels = 4
    batch = 2

    key = jax.random.PRNGKey(0)
    k_params, k_x = jax.random.split(key)
    params = init_params(k_params, image_size, linear_input, linear_output,
                         image_channels)
    x = jax.random.normal(k_x, (batch, linear_output), dtype=jnp.float32)

    fused = prepare_fused_params(params, image_size)
    out = decoder_forward(fused, x, image_size, image_channels)
    out = jax.block_until_ready(out)

    assert out.shape == (batch, image_channels, image_size, image_size), out.shape
    assert bool(jnp.all(jnp.isfinite(out)))
    assert bool(jnp.all((out >= 0.0) & (out <= 1.0)))   # sigmoid range

    ref = decoder_forward_ref(params, x, image_size)
    err = float(jnp.max(jnp.abs(out - ref)))
    assert err < 2e-2, f"max abs err vs f32 reference: {err}"

    print("KERNEL_OK")
</pallas_src>

<mosaic_0001>
module attributes {stable_mosaic.version = 11 : i64} {
  func.func @_decoder_kernel(%arg0: i32, %arg1: memref<1x1x8xf32, #tpu.memory_space<vmem>>, %arg2: memref<8x32xbf16, #tpu.memory_space<vmem>>, %arg3: memref<1x32xf32, #tpu.memory_space<vmem>>, %arg4: memref<32x2048xbf16, #tpu.memory_space<vmem>>, %arg5: memref<1x2048xf32, #tpu.memory_space<vmem>>, %arg6: memref<3x256x256xbf16, #tpu.memory_space<vmem>>, %arg7: memref<1x256xf32, #tpu.memory_space<vmem>>, %arg8: memref<3x256x256xbf16, #tpu.memory_space<vmem>>, %arg9: memref<1x256xf32, #tpu.memory_space<vmem>>, %arg10: memref<3x256x128xbf16, #tpu.memory_space<vmem>>, %arg11: memref<1x128xf32, #tpu.memory_space<vmem>>, %arg12: memref<3x128x64xbf16, #tpu.memory_space<vmem>>, %arg13: memref<1x64xf32, #tpu.memory_space<vmem>>, %arg14: memref<1x8x128xf32, #tpu.memory_space<vmem>>) attributes {dimension_semantics = [#tpu.dimension_semantics<parallel>], iteration_bounds = array<i64: 2>, scalar_prefetch = 0 : i64, scratch_operands = 0 : i64, tpu.core_type = #tpu.core_type<tc>, window_params = [{transform_indices = @transform_0, window_bounds = array<i64: 1, 1, 8>}, {pipeline_mode = #tpu.pipeline_mode<synchronous>, transform_indices = @transform_1, window_bounds = array<i64: 8, 32>}, {pipeline_mode = #tpu.pipeline_mode<synchronous>, transform_indices = @transform_2, window_bounds = array<i64: 1, 32>}, {pipeline_mode = #tpu.pipeline_mode<synchronous>, transform_indices = @transform_3, window_bounds = array<i64: 32, 2048>}, {pipeline_mode = #tpu.pipeline_mode<synchronous>, transform_indices = @transform_4, window_bounds = array<i64: 1, 2048>}, {pipeline_mode = #tpu.pipeline_mode<synchronous>, transform_indices = @transform_5, window_bounds = array<i64: 3, 256, 256>}, {pipeline_mode = #tpu.pipeline_mode<synchronous>, transform_indices = @transform_6, window_bounds = array<i64: 1, 256>}, {pipeline_mode = #tpu.pipeline_mode<synchronous>, transform_indices = @transform_7, window_bounds = array<i64: 3, 256, 256>}, {pipeline_mode = #tpu.pipeline_mode<synchronous>, transform_indices = @transform_8, window_bounds = array<i64: 1, 256>}, {pipeline_mode = #tpu.pipeline_mode<synchronous>, transform_indices = @transform_9, window_bounds = array<i64: 3, 256, 128>}, {pipeline_mode = #tpu.pipeline_mode<synchronous>, transform_indices = @transform_10, window_bounds = array<i64: 1, 128>}, {pipeline_mode = #tpu.pipeline_mode<synchronous>, transform_indices = @transform_11, window_bounds = array<i64: 3, 128, 64>}, {pipeline_mode = #tpu.pipeline_mode<synchronous>, transform_indices = @transform_12, window_bounds = array<i64: 1, 64>}, {transform_indices = @transform_13, window_bounds = array<i64: 1, 8, 128>}]} {
    %c0 = arith.constant 0 : index
    %c0_0 = arith.constant 0 : index
    %c0_1 = arith.constant 0 : index
    %0 = vector.load %arg1[%c0, %c0_0, %c0_1] : memref<1x1x8xf32, #tpu.memory_space<vmem>>, vector<1x1x8xf32>
    %1 = vector.shape_cast %0 : vector<1x1x8xf32> to vector<1x8xf32>
    %2 = arith.truncf %1 : vector<1x8xf32> to vector<1x8xbf16>
    %c0_2 = arith.constant 0 : index
    %c0_3 = arith.constant 0 : index
    %3 = vector.load %arg2[%c0_2, %c0_3] : memref<8x32xbf16, #tpu.memory_space<vmem>>, vector<8x32xbf16>
    %cst = arith.constant dense<0.000000e+00> : vector<1x32xf32>
    %4 = tpu.matmul %2, %3, %cst {dimension_numbers = #tpu.dot_dimension_numbers<[1], [0], [0], [1], [0, 0, 1, 1], [], []>} : vector<1x8xbf16>, vector<8x32xbf16>, vector<1x32xf32> -> vector<1x32xf32>
    %c0_4 = arith.constant 0 : index
    %c0_5 = arith.constant 0 : index
    %5 = vector.load %arg3[%c0_4, %c0_5] : memref<1x32xf32, #tpu.memory_space<vmem>>, vector<1x32xf32>
    %6 = arith.addf %4, %5 : vector<1x32xf32>
    %cst_6 = arith.constant 0.000000e+00 : f32
    %7 = vector.broadcast %cst_6 : f32 to vector<1x32xf32>
    %8 = arith.maximumf %6, %7 : vector<1x32xf32>
    %9 = arith.truncf %8 : vector<1x32xf32> to vector<1x32xbf16>
    %c0_7 = arith.constant 0 : index
    %c0_8 = arith.constant 0 : index
    %10 = vector.load %arg4[%c0_7, %c0_8] : memref<32x2048xbf16, #tpu.memory_space<vmem>>, vector<32x2048xbf16>
    %cst_9 = arith.constant dense<0.000000e+00> : vector<1x2048xf32>
    %11 = tpu.matmul %9, %10, %cst_9 {dimension_numbers = #tpu.dot_dimension_numbers<[1], [0], [0], [1], [0, 0, 1, 1], [], []>} : vector<1x32xbf16>, vector<32x2048xbf16>, vector<1x2048xf32> -> vector<1x2048xf32>
    %c0_10 = arith.constant 0 : index
    %c0_11 = arith.constant 0 : index
    %12 = vector.load %arg5[%c0_10, %c0_11] : memref<1x2048xf32, #tpu.memory_space<vmem>>, vector<1x2048xf32>
    %13 = arith.addf %11, %12 : vector<1x2048xf32>
    %cst_12 = arith.constant 0.000000e+00 : f32
    %14 = vector.broadcast %cst_12 : f32 to vector<1x2048xf32>
    %15 = arith.maximumf %13, %14 : vector<1x2048xf32>
    %16 = tpu.iota {dimensions = array<i32: 0>} : vector<8x1xi32>
    %cst_13 = arith.constant 0.000000e+00 : f32
    %17 = vector.broadcast %cst_13 : f32 to vector<8x256xf32>
    %c0_i32 = arith.constant 0 : i32
    %18 = vector.broadcast %c0_i32 : i32 to vector<8x1xi32>
    %19 = arith.cmpi eq, %16, %18 : vector<8x1xi32>
    %20 = vector.extract_strided_slice %15 {offsets = [0, 0], sizes = [1, 256], strides = [1, 1]} : vector<1x2048xf32> to vector<1x256xf32>
    %cst_14 = arith.constant 0.000000e+00 : f32
    %21 = vector.shape_cast %19 : vector<8x1xi1> to vector<8x1xi1>
    %22 = vector.broadcast %21 : vector<8x1xi1> to vector<8x256xi1>
    %23 = vector.shape_cast %20 : vector<1x256xf32> to vector<1x256xf32>
    %24 = vector.broadcast %23 : vector<1x256xf32> to vector<8x256xf32>
    %25 = vector.broadcast %cst_14 : f32 to vector<8x256xf32>
    %26 = arith.select %22, %24, %25 : vector<8x256xi1>, vector<8x256xf32>
    %27 = arith.addf %17, %26 : vector<8x256xf32>
    %c1_i32 = arith.constant 1 : i32
    %28 = vector.broadcast %c1_i32 : i32 to vector<8x1xi32>
    %29 = arith.cmpi eq, %16, %28 : vector<8x1xi32>
    %30 = vector.extract_strided_slice %15 {offsets = [0, 256], sizes = [1, 256], strides = [1, 1]} : vector<1x2048xf32> to vector<1x256xf32>
    %cst_15 = arith.constant 0.000000e+00 : f32
    %31 = vector.shape_cast %29 : vector<8x1xi1> to vector<8x1xi1>
    %32 = vector.broadcast %31 : vector<8x1xi1> to vector<8x256xi1>
    %33 = vector.shape_cast %30 : vector<1x256xf32> to vector<1x256xf32>
    %34 = vector.broadcast %33 : vector<1x256xf32> to vector<8x256xf32>
    %35 = vector.broadcast %cst_15 : f32 to vector<8x256xf32>
    %36 = arith.select %32, %34, %35 : vector<8x256xi1>, vector<8x256xf32>
    %37 = arith.addf %27, %36 : vector<8x256xf32>
    %c2_i32 = arith.constant 2 : i32
    %38 = vector.broadcast %c2_i32 : i32 to vector<8x1xi32>
    %39 = arith.cmpi eq, %16, %38 : vector<8x1xi32>
    %40 = vector.extract_strided_slice %15 {offsets = [0, 512], sizes = [1, 256], strides = [1, 1]} : vector<1x2048xf32> to vector<1x256xf32>
    %cst_16 = arith.constant 0.000000e+00 : f32
    %41 = vector.shape_cast %39 : vector<8x1xi1> to vector<8x1xi1>
    %42 = vector.broadcast %41 : vector<8x1xi1> to vector<8x256xi1>
    %43 = vector.shape_cast %40 : vector<1x256xf32> to vector<1x256xf32>
    %44 = vector.broadcast %43 : vector<1x256xf32> to vector<8x256xf32>
    %45 = vector.broadcast %cst_16 : f32 to vector<8x256xf32>
    %46 = arith.select %42, %44, %45 : vector<8x256xi1>, vector<8x256xf32>
    %47 = arith.addf %37, %46 : vector<8x256xf32>
    %c3_i32 = arith.constant 3 : i32
    %48 = vector.broadcast %c3_i32 : i32 to vector<8x1xi32>
    %49 = arith.cmpi eq, %16, %48 : vector<8x1xi32>
    %50 = vector.extract_strided_slice %15 {offsets = [0, 768], sizes = [1, 256], strides = [1, 1]} : vector<1x2048xf32> to vector<1x256xf32>
    %cst_17 = arith.constant 0.000000e+00 : f32
    %51 = vector.shape_cast %49 : vector<8x1xi1> to vector<8x1xi1>
    %52 = vector.broadcast %51 : vector<8x1xi1> to vector<8x256xi1>
    %53 = vector.shape_cast %50 : vector<1x256xf32> to vector<1x256xf32>
    %54 = vector.broadcast %53 : vector<1x256xf32> to vector<8x256xf32>
    %55 = vector.broadcast %cst_17 : f32 to vector<8x256xf32>
    %56 = arith.select %52, %54, %55 : vector<8x256xi1>, vector<8x256xf32>
    %57 = arith.addf %47, %56 : vector<8x256xf32>
    %c4_i32 = arith.constant 4 : i32
    %58 = vector.broadcast %c4_i32 : i32 to vector<8x1xi32>
    %59 = arith.cmpi eq, %16, %58 : vector<8x1xi32>
    %60 = vector.extract_strided_slice %15 {offsets = [0, 1024], sizes = [1, 256], strides = [1, 1]} : vector<1x2048xf32> to vector<1x256xf32>
    %cst_18 = arith.constant 0.000000e+00 : f32
    %61 = vector.shape_cast %59 : vector<8x1xi1> to vector<8x1xi1>
    %62 = vector.broadcast %61 : vector<8x1xi1> to vector<8x256xi1>
    %63 = vector.shape_cast %60 : vector<1x256xf32> to vector<1x256xf32>
    %64 = vector.broadcast %63 : vector<1x256xf32> to vector<8x256xf32>
    %65 = vector.broadcast %cst_18 : f32 to vector<8x256xf32>
    %66 = arith.select %62, %64, %65 : vector<8x256xi1>, vector<8x256xf32>
    %67 = arith.addf %57, %66 : vector<8x256xf32>
    %c5_i32 = arith.constant 5 : i32
    %68 = vector.broadcast %c5_i32 : i32 to vector<8x1xi32>
    %69 = arith.cmpi eq, %16, %68 : vector<8x1xi32>
    %70 = vector.extract_strided_slice %15 {offsets = [0, 1280], sizes = [1, 256], strides = [1, 1]} : vector<1x2048xf32> to vector<1x256xf32>
    %cst_19 = arith.constant 0.000000e+00 : f32
    %71 = vector.shape_cast %69 : vector<8x1xi1> to vector<8x1xi1>
    %72 = vector.broadcast %71 : vector<8x1xi1> to vector<8x256xi1>
    %73 = vector.shape_cast %70 : vector<1x256xf32> to vector<1x256xf32>
    %74 = vector.broadcast %73 : vector<1x256xf32> to vector<8x256xf32>
    %75 = vector.broadcast %cst_19 : f32 to vector<8x256xf32>
    %76 = arith.select %72, %74, %75 : vector<8x256xi1>, vector<8x256xf32>
    %77 = arith.addf %67, %76 : vector<8x256xf32>
    %c6_i32 = arith.constant 6 : i32
    %78 = vector.broadcast %c6_i32 : i32 to vector<8x1xi32>
    %79 = arith.cmpi eq, %16, %78 : vector<8x1xi32>
    %80 = vector.extract_strided_slice %15 {offsets = [0, 1536], sizes = [1, 256], strides = [1, 1]} : vector<1x2048xf32> to vector<1x256xf32>
    %cst_20 = arith.constant 0.000000e+00 : f32
    %81 = vector.shape_cast %79 : vector<8x1xi1> to vector<8x1xi1>
    %82 = vector.broadcast %81 : vector<8x1xi1> to vector<8x256xi1>
    %83 = vector.shape_cast %80 : vector<1x256xf32> to vector<1x256xf32>
    %84 = vector.broadcast %83 : vector<1x256xf32> to vector<8x256xf32>
    %85 = vector.broadcast %cst_20 : f32 to vector<8x256xf32>
    %86 = arith.select %82, %84, %85 : vector<8x256xi1>, vector<8x256xf32>
    %87 = arith.addf %77, %86 : vector<8x256xf32>
    %c7_i32 = arith.constant 7 : i32
    %88 = vector.broadcast %c7_i32 : i32 to vector<8x1xi32>
    %89 = arith.cmpi eq, %16, %88 : vector<8x1xi32>
    %90 = vector.extract_strided_slice %15 {offsets = [0, 1792], sizes = [1, 256], strides = [1, 1]} : vector<1x2048xf32> to vector<1x256xf32>
    %cst_21 = arith.constant 0.000000e+00 : f32
    %91 = vector.shape_cast %89 : vector<8x1xi1> to vector<8x1xi1>
    %92 = vector.broadcast %91 : vector<8x1xi1> to vector<8x256xi1>
    %93 = vector.shape_cast %90 : vector<1x256xf32> to vector<1x256xf32>
    %94 = vector.broadcast %93 : vector<1x256xf32> to vector<8x256xf32>
    %95 = vector.broadcast %cst_21 : f32 to vector<8x256xf32>
    %96 = arith.select %92, %94, %95 : vector<8x256xi1>, vector<8x256xf32>
    %97 = arith.addf %87, %96 : vector<8x256xf32>
    %98 = tpu.iota {dimensions = array<i32: 0>} : vector<8x8xi32>
    %99 = tpu.iota {dimensions = array<i32: 1>} : vector<8x8xi32>
    %c1_i32_22 = arith.constant 1 : i32
    %100 = vector.broadcast %c1_i32_22 : i32 to vector<8x8xi32>
    %101 = arith.subi %98, %100 : vector<8x8xi32>
    %102 = arith.cmpi eq, %99, %101 : vector<8x8xi32>
    %cst_23 = arith.constant 1.000000e+00 : f32
    %cst_24 = arith.constant 0.000000e+00 : f32
    %103 = vector.broadcast %cst_23 : f32 to vector<8x8xf32>
    %104 = vector.broadcast %cst_24 : f32 to vector<8x8xf32>
    %105 = arith.select %102, %103, %104 : vector<8x8xi1>, vector<8x8xf32>
    %106 = arith.truncf %105 : vector<8x8xf32> to vector<8x8xbf16>
    %c1_i32_25 = arith.constant 1 : i32
    %107 = vector.broadcast %c1_i32_25 : i32 to vector<8x8xi32>
    %108 = arith.addi %98, %107 : vector<8x8xi32>
    %109 = arith.cmpi eq, %99, %108 : vector<8x8xi32>
    %cst_26 = arith.constant 1.000000e+00 : f32
    %cst_27 = arith.constant 0.000000e+00 : f32
    %110 = vector.broadcast %cst_26 : f32 to vector<8x8xf32>
    %111 = vector.broadcast %cst_27 : f32 to vector<8x8xf32>
    %112 = arith.select %109, %110, %111 : vector<8x8xi1>, vector<8x8xf32>
    %113 = arith.truncf %112 : vector<8x8xf32> to vector<8x8xbf16>
    %114 = arith.truncf %97 : vector<8x256xf32> to vector<8x256xbf16>
    %cst_28 = arith.constant dense<0.000000e+00> : vector<8x256xf32>
    %115 = tpu.matmul %106, %114, %cst_28 {dimension_numbers = #tpu.dot_dimension_numbers<[1], [0], [0], [1], [0, 0, 1, 1], [], []>} : vector<8x8xbf16>, vector<8x256xbf16>, vector<8x256xf32> -> vector<8x256xf32>
    %116 = arith.truncf %115 : vector<8x256xf32> to vector<8x256xbf16>
    %cst_29 = arith.constant dense<0.000000e+00> : vector<8x256xf32>
    %117 = tpu.matmul %113, %114, %cst_29 {dimension_numbers = #tpu.dot_dimension_numbers<[1], [0], [0], [1], [0, 0, 1, 1], [], []>} : vector<8x8xbf16>, vector<8x256xbf16>, vector<8x256xf32> -> vector<8x256xf32>
    %118 = arith.truncf %117 : vector<8x256xf32> to vector<8x256xbf16>
    %c0_30 = arith.constant 0 : index
    %c0_31 = arith.constant 0 : index
    %c0_32 = arith.constant 0 : index
    %119 = vector.load %arg6[%c0_30, %c0_31, %c0_32] : memref<3x256x256xbf16, #tpu.memory_space<vmem>>, vector<1x256x256xbf16>
    %120 = vector.shape_cast %119 : vector<1x256x256xbf16> to vector<256x256xbf16>
    %cst_33 = arith.constant dense<0.000000e+00> : vector<8x256xf32>
    %121 = tpu.matmul %116, %120, %cst_33 {dimension_numbers = #tpu.dot_dimension_numbers<[1], [0], [0], [1], [0, 0, 1, 1], [], []>} : vector<8x256xbf16>, vector<256x256xbf16>, vector<8x256xf32> -> vector<8x256xf32>
    %c1 = arith.constant 1 : index
    %c0_34 = arith.constant 0 : index
    %c0_35 = arith.constant 0 : index
    %122 = vector.load %arg6[%c1, %c0_34, %c0_35] : memref<3x256x256xbf16, #tpu.memory_space<vmem>>, vector<1x256x256xbf16>
    %123 = vector.shape_cast %122 : vector<1x256x256xbf16> to vector<256x256xbf16>
    %cst_36 = arith.constant dense<0.000000e+00> : vector<8x256xf32>
    %124 = tpu.matmul %114, %123, %cst_36 {dimension_numbers = #tpu.dot_dimension_numbers<[1], [0], [0], [1], [0, 0, 1, 1], [], []>} : vector<8x256xbf16>, vector<256x256xbf16>, vector<8x256xf32> -> vector<8x256xf32>
    %125 = arith.addf %121, %124 : vector<8x256xf32>
    %c2 = arith.constant 2 : index
    %c0_37 = arith.constant 0 : index
    %c0_38 = arith.constant 0 : index
    %126 = vector.load %arg6[%c2, %c0_37, %c0_38] : memref<3x256x256xbf16, #tpu.memory_space<vmem>>, vector<1x256x256xbf16>
    %127 = vector.shape_cast %126 : vector<1x256x256xbf16> to vector<256x256xbf16>
    %cst_39 = arith.constant dense<0.000000e+00> : vector<8x256xf32>
    %128 = tpu.matmul %118, %127, %cst_39 {dimension_numbers = #tpu.dot_dimension_numbers<[1], [0], [0], [1], [0, 0, 1, 1], [], []>} : vector<8x256xbf16>, vector<256x256xbf16>, vector<8x256xf32> -> vector<8x256xf32>
    %129 = arith.addf %125, %128 : vector<8x256xf32>
    %c0_40 = arith.constant 0 : index
    %c0_41 = arith.constant 0 : index
    %130 = vector.load %arg7[%c0_40, %c0_41] : memref<1x256xf32, #tpu.memory_space<vmem>>, vector<1x256xf32>
    %131 = vector.broadcast %130 : vector<1x256xf32> to vector<8x256xf32>
    %132 = arith.addf %129, %131 : vector<8x256xf32>
    %cst_42 = arith.constant 0.000000e+00 : f32
    %133 = vector.broadcast %cst_42 : f32 to vector<8x256xf32>
    %134 = arith.maximumf %132, %133 : vector<8x256xf32>
    %135 = arith.truncf %134 : vector<8x256xf32> to vector<8x256xbf16>
    %cst_43 = arith.constant dense<0.000000e+00> : vector<8x256xf32>
    %136 = tpu.matmul %106, %135, %cst_43 {dimension_numbers = #tpu.dot_dimension_numbers<[1], [0], [0], [1], [0, 0, 1, 1], [], []>} : vector<8x8xbf16>, vector<8x256xbf16>, vector<8x256xf32> -> vector<8x256xf32>
    %137 = arith.truncf %136 : vector<8x256xf32> to vector<8x256xbf16>
    %cst_44 = arith.constant dense<0.000000e+00> : vector<8x256xf32>
    %138 = tpu.matmul %113, %135, %cst_44 {dimension_numbers = #tpu.dot_dimension_numbers<[1], [0], [0], [1], [0, 0, 1, 1], [], []>} : vector<8x8xbf16>, vector<8x256xbf16>, vector<8x256xf32> -> vector<8x256xf32>
    %139 = arith.truncf %138 : vector<8x256xf32> to vector<8x256xbf16>
    %c0_45 = arith.constant 0 : index
    %c0_46 = arith.constant 0 : index
    %c0_47 = arith.constant 0 : index
    %140 = vector.load %arg8[%c0_45, %c0_46, %c0_47] : memref<3x256x256xbf16, #tpu.memory_space<vmem>>, vector<1x256x256xbf16>
    %141 = vector.shape_cast %140 : vector<1x256x256xbf16> to vector<256x256xbf16>
    %cst_48 = arith.constant dense<0.000000e+00> : vector<8x256xf32>
    %142 = tpu.matmul %137, %141, %cst_48 {dimension_numbers = #tpu.dot_dimension_numbers<[1], [0], [0], [1], [0, 0, 1, 1], [], []>} : vector<8x256xbf16>, vector<256x256xbf16>, vector<8x256xf32> -> vector<8x256xf32>
    %c1_49 = arith.constant 1 : index
    %c0_50 = arith.constant 0 : index
    %c0_51 = arith.constant 0 : index
    %143 = vector.load %arg8[%c1_49, %c0_50, %c0_51] : memref<3x256x256xbf16, #tpu.memory_space<vmem>>, vector<1x256x256xbf16>
    %144 = vector.shape_cast %143 : vector<1x256x256xbf16> to vector<256x256xbf16>
    %cst_52 = arith.constant dense<0.000000e+00> : vector<8x256xf32>
    %145 = tpu.matmul %135, %144, %cst_52 {dimension_numbers = #tpu.dot_dimension_numbers<[1], [0], [0], [1], [0, 0, 1, 1], [], []>} : vector<8x256xbf16>, vector<256x256xbf16>, vector<8x256xf32> -> vector<8x256xf32>
    %146 = arith.addf %142, %145 : vector<8x256xf32>
    %c2_53 = arith.constant 2 : index
    %c0_54 = arith.constant 0 : index
    %c0_55 = arith.constant 0 : index
    %147 = vector.load %arg8[%c2_53, %c0_54, %c0_55] : memref<3x256x256xbf16, #tpu.memory_space<vmem>>, vector<1x256x256xbf16>
    %148 = vector.shape_cast %147 : vector<1x256x256xbf16> to vector<256x256xbf16>
    %cst_56 = arith.constant dense<0.000000e+00> : vector<8x256xf32>
    %149 = tpu.matmul %139, %148, %cst_56 {dimension_numbers = #tpu.dot_dimension_numbers<[1], [0], [0], [1], [0, 0, 1, 1], [], []>} : vector<8x256xbf16>, vector<256x256xbf16>, vector<8x256xf32> -> vector<8x256xf32>
    %150 = arith.addf %146, %149 : vector<8x256xf32>
    %c0_57 = arith.constant 0 : index
    %c0_58 = arith.constant 0 : index
    %151 = vector.load %arg9[%c0_57, %c0_58] : memref<1x256xf32, #tpu.memory_space<vmem>>, vector<1x256xf32>
    %152 = vector.broadcast %151 : vector<1x256xf32> to vector<8x256xf32>
    %153 = arith.addf %150, %152 : vector<8x256xf32>
    %cst_59 = arith.constant 0.000000e+00 : f32
    %154 = vector.broadcast %cst_59 : f32 to vector<8x256xf32>
    %155 = arith.maximumf %153, %154 : vector<8x256xf32>
    %156 = arith.truncf %155 : vector<8x256xf32> to vector<8x256xbf16>
    %cst_60 = arith.constant dense<0.000000e+00> : vector<8x256xf32>
    %157 = tpu.matmul %106, %156, %cst_60 {dimension_numbers = #tpu.dot_dimension_numbers<[1], [0], [0], [1], [0, 0, 1, 1], [], []>} : vector<8x8xbf16>, vector<8x256xbf16>, vector<8x256xf32> -> vector<8x256xf32>
    %158 = arith.truncf %157 : vector<8x256xf32> to vector<8x256xbf16>
    %cst_61 = arith.constant dense<0.000000e+00> : vector<8x256xf32>
    %159 = tpu.matmul %113, %156, %cst_61 {dimension_numbers = #tpu.dot_dimension_numbers<[1], [0], [0], [1], [0, 0, 1, 1], [], []>} : vector<8x8xbf16>, vector<8x256xbf16>, vector<8x256xf32> -> vector<8x256xf32>
    %160 = arith.truncf %159 : vector<8x256xf32> to vector<8x256xbf16>
    %c0_62 = arith.constant 0 : index
    %c0_63 = arith.constant 0 : index
    %c0_64 = arith.constant 0 : index
    %161 = vector.load %arg10[%c0_62, %c0_63, %c0_64] : memref<3x256x128xbf16, #tpu.memory_space<vmem>>, vector<1x256x128xbf16>
    %162 = vector.shape_cast %161 : vector<1x256x128xbf16> to vector<256x128xbf16>
    %cst_65 = arith.constant dense<0.000000e+00> : vector<8x128xf32>
    %163 = tpu.matmul %158, %162, %cst_65 {dimension_numbers = #tpu.dot_dimension_numbers<[1], [0], [0], [1], [0, 0, 1, 1], [], []>} : vector<8x256xbf16>, vector<256x128xbf16>, vector<8x128xf32> -> vector<8x128xf32>
    %c1_66 = arith.constant 1 : index
    %c0_67 = arith.constant 0 : index
    %c0_68 = arith.constant 0 : index
    %164 = vector.load %arg10[%c1_66, %c0_67, %c0_68] : memref<3x256x128xbf16, #tpu.memory_space<vmem>>, vector<1x256x128xbf16>
    %165 = vector.shape_cast %164 : vector<1x256x128xbf16> to vector<256x128xbf16>
    %cst_69 = arith.constant dense<0.000000e+00> : vector<8x128xf32>
    %166 = tpu.matmul %156, %165, %cst_69 {dimension_numbers = #tpu.dot_dimension_numbers<[1], [0], [0], [1], [0, 0, 1, 1], [], []>} : vector<8x256xbf16>, vector<256x128xbf16>, vector<8x128xf32> -> vector<8x128xf32>
    %167 = arith.addf %163, %166 : vector<8x128xf32>
    %c2_70 = arith.constant 2 : index
    %c0_71 = arith.constant 0 : index
    %c0_72 = arith.constant 0 : index
    %168 = vector.load %arg10[%c2_70, %c0_71, %c0_72] : memref<3x256x128xbf16, #tpu.memory_space<vmem>>, vector<1x256x128xbf16>
    %169 = vector.shape_cast %168 : vector<1x256x128xbf16> to vector<256x128xbf16>
    %cst_73 = arith.constant dense<0.000000e+00> : vector<8x128xf32>
    %170 = tpu.matmul %160, %169, %cst_73 {dimension_numbers = #tpu.dot_dimension_numbers<[1], [0], [0], [1], [0, 0, 1, 1], [], []>} : vector<8x256xbf16>, vector<256x128xbf16>, vector<8x128xf32> -> vector<8x128xf32>
    %171 = arith.addf %167, %170 : vector<8x128xf32>
    %c0_74 = arith.constant 0 : index
    %c0_75 = arith.constant 0 : index
    %172 = vector.load %arg11[%c0_74, %c0_75] : memref<1x128xf32, #tpu.memory_space<vmem>>, vector<1x128xf32>
    %173 = vector.broadcast %172 : vector<1x128xf32> to vector<8x128xf32>
    %174 = arith.addf %171, %173 : vector<8x128xf32>
    %cst_76 = arith.constant 0.000000e+00 : f32
    %175 = vector.broadcast %cst_76 : f32 to vector<8x128xf32>
    %176 = arith.maximumf %174, %175 : vector<8x128xf32>
    %177 = arith.truncf %176 : vector<8x128xf32> to vector<8x128xbf16>
    %cst_77 = arith.constant dense<0.000000e+00> : vector<8x128xf32>
    %178 = tpu.matmul %113, %177, %cst_77 {dimension_numbers = #tpu.dot_dimension_numbers<[1], [0], [0], [1], [0, 0, 1, 1], [], []>} : vector<8x8xbf16>, vector<8x128xbf16>, vector<8x128xf32> -> vector<8x128xf32>
    %179 = arith.truncf %178 : vector<8x128xf32> to vector<8x128xbf16>
    %c1_78 = arith.constant 1 : index
    %c0_79 = arith.constant 0 : index
    %c0_80 = arith.constant 0 : index
    %180 = vector.load %arg12[%c1_78, %c0_79, %c0_80] : memref<3x128x64xbf16, #tpu.memory_space<vmem>>, vector<1x128x64xbf16>
    %181 = vector.shape_cast %180 : vector<1x128x64xbf16> to vector<128x64xbf16>
    %cst_81 = arith.constant dense<0.000000e+00> : vector<8x64xf32>
    %182 = tpu.matmul %177, %181, %cst_81 {dimension_numbers = #tpu.dot_dimension_numbers<[1], [0], [0], [1], [0, 0, 1, 1], [], []>} : vector<8x128xbf16>, vector<128x64xbf16>, vector<8x64xf32> -> vector<8x64xf32>
    %c0_82 = arith.constant 0 : index
    %c0_83 = arith.constant 0 : index
    %183 = vector.load %arg13[%c0_82, %c0_83] : memref<1x64xf32, #tpu.memory_space<vmem>>, vector<1x64xf32>
    %184 = vector.broadcast %183 : vector<1x64xf32> to vector<8x64xf32>
    %185 = arith.addf %182, %184 : vector<8x64xf32>
    %c0_84 = arith.constant 0 : index
    %c0_85 = arith.constant 0 : index
    %c0_86 = arith.constant 0 : index
    %186 = vector.load %arg12[%c0_84, %c0_85, %c0_86] : memref<3x128x64xbf16, #tpu.memory_space<vmem>>, vector<1x128x64xbf16>
    %187 = vector.shape_cast %186 : vector<1x128x64xbf16> to vector<128x64xbf16>
    %cst_87 = arith.constant dense<0.000000e+00> : vector<8x64xf32>
    %188 = tpu.matmul %177, %187, %cst_87 {dimension_numbers = #tpu.dot_dimension_numbers<[1], [0], [0], [1], [0, 0, 1, 1], [], []>} : vector<8x128xbf16>, vector<128x64xbf16>, vector<8x64xf32> -> vector<8x64xf32>
    %c2_88 = arith.constant 2 : index
    %c0_89 = arith.constant 0 : index
    %c0_90 = arith.constant 0 : index
    %189 = vector.load %arg12[%c2_88, %c0_89, %c0_90] : memref<3x128x64xbf16, #tpu.memory_space<vmem>>, vector<1x128x64xbf16>
    %190 = vector.shape_cast %189 : vector<1x128x64xbf16> to vector<128x64xbf16>
    %cst_91 = arith.constant dense<0.000000e+00> : vector<8x64xf32>
    %191 = tpu.matmul %179, %190, %cst_91 {dimension_numbers = #tpu.dot_dimension_numbers<[1], [0], [0], [1], [0, 0, 1, 1], [], []>} : vector<8x128xbf16>, vector<128x64xbf16>, vector<8x64xf32> -> vector<8x64xf32>
    %192 = arith.addf %188, %191 : vector<8x64xf32>
    %c0_92 = arith.constant 0 : index
    %c0_93 = arith.constant 0 : index
    %193 = vector.load %arg13[%c0_92, %c0_93] : memref<1x64xf32, #tpu.memory_space<vmem>>, vector<1x64xf32>
    %194 = vector.broadcast %193 : vector<1x64xf32> to vector<8x64xf32>
    %195 = arith.addf %192, %194 : vector<8x64xf32>
    %196 = math.absf %185 : vector<8x64xf32>
    %cst_94 = arith.constant 0.000000e+00 : f32
    %197 = vector.broadcast %cst_94 : f32 to vector<8x64xf32>
    %198 = arith.subf %197, %196 : vector<8x64xf32>
    %199 = math.exp %198 : vector<8x64xf32>
    %cst_95 = arith.constant 1.000000e+00 : f32
    %200 = vector.broadcast %cst_95 : f32 to vector<8x64xf32>
    %201 = arith.addf %200, %199 : vector<8x64xf32>
    %202 = tpu.reciprocal %201 {approx = true} : vector<8x64xf32> -> vector<8x64xf32>
    %203 = arith.mulf %199, %202 : vector<8x64xf32>
    %cst_96 = arith.constant 0.000000e+00 : f32
    %204 = vector.broadcast %cst_96 : f32 to vector<8x64xf32>
    %205 = arith.cmpf oge, %185, %204 : vector<8x64xf32>
    %cst_97 = arith.constant 1.000000e+00 : f32
    %206 = vector.broadcast %cst_97 : f32 to vector<8x64xf32>
    %207 = arith.subf %206, %203 : vector<8x64xf32>
    %208 = arith.select %205, %207, %203 : vector<8x64xi1>, vector<8x64xf32>
    %c0_98 = arith.constant 0 : index
    %c0_99 = arith.constant 0 : index
    %c0_100 = arith.constant 0 : index
    %209 = vector.load %arg14[%c0_98, %c0_99, %c0_100] : memref<1x8x128xf32, #tpu.memory_space<vmem>>, vector<1x8x64xf32>
    %210 = vector.shape_cast %209 : vector<1x8x64xf32> to vector<8x64xf32>
    %211 = vector.shape_cast %208 : vector<8x64xf32> to vector<1x8x64xf32>
    tpu.vector_store %arg14[%c0_98, %c0_99, %c0_100], %211 {strides = array<i32>} : memref<1x8x128xf32, #tpu.memory_space<vmem>>, vector<1x8x64xf32>,
    %212 = math.absf %195 : vector<8x64xf32>
    %cst_101 = arith.constant 0.000000e+00 : f32
    %213 = vector.broadcast %cst_101 : f32 to vector<8x64xf32>
    %214 = arith.subf %213, %212 : vector<8x64xf32>
    %215 = math.exp %214 : vector<8x64xf32>
    %cst_102 = arith.constant 1.000000e+00 : f32
    %216 = vector.broadcast %cst_102 : f32 to vector<8x64xf32>
    %217 = arith.addf %216, %215 : vector<8x64xf32>
    %218 = tpu.reciprocal %217 {approx = true} : vector<8x64xf32> -> vector<8x64xf32>
    %219 = arith.mulf %215, %218 : vector<8x64xf32>
    %cst_103 = arith.constant 0.000000e+00 : f32
    %220 = vector.broadcast %cst_103 : f32 to vector<8x64xf32>
    %221 = arith.cmpf oge, %195, %220 : vector<8x64xf32>
    %cst_104 = arith.constant 1.000000e+00 : f32
    %222 = vector.broadcast %cst_104 : f32 to vector<8x64xf32>
    %223 = arith.subf %222, %219 : vector<8x64xf32>
    %224 = arith.select %221, %223, %219 : vector<8x64xi1>, vector<8x64xf32>
    %c0_105 = arith.constant 0 : index
    %c0_106 = arith.constant 0 : index
    %c64 = arith.constant 64 : index
    %225 = vector.load %arg14[%c0_105, %c0_106, %c64] : memref<1x8x128xf32, #tpu.memory_space<vmem>>, vector<1x8x64xf32>
    %226 = vector.shape_cast %225 : vector<1x8x64xf32> to vector<8x64xf32>
    %227 = vector.shape_cast %224 : vector<8x64xf32> to vector<1x8x64xf32>
    tpu.vector_store %arg14[%c0_105, %c0_106, %c64], %227 {strides = array<i32>} : memref<1x8x128xf32, #tpu.memory_space<vmem>>, vector<1x8x64xf32>,
    return
  }
  func.func @transform_0(%arg0: i32) -> (i32, i32, i32) {
    %c0_i32 = arith.constant 0 : i32
    %c0_i32_0 = arith.constant 0 : i32
    %c0_i32_1 = arith.constant 0 : i32
    return %arg0, %c0_i32, %c0_i32_0 : i32, i32, i32
  }
  func.func @transform_1(%arg0: i32) -> (i32, i32) {
    %c0_i32 = arith.constant 0 : i32
    %c0_i32_0 = arith.constant 0 : i32
    %c0_i32_1 = arith.constant 0 : i32
    return %c0_i32, %c0_i32_0 : i32, i32
  }
  func.func @transform_2(%arg0: i32) -> (i32, i32) {
    %c0_i32 = arith.constant 0 : i32
    %c0_i32_0 = arith.constant 0 : i32
    %c0_i32_1 = arith.constant 0 : i32
    return %c0_i32, %c0_i32_0 : i32, i32
  }
  func.func @transform_3(%arg0: i32) -> (i32, i32) {
    %c0_i32 = arith.constant 0 : i32
    %c0_i32_0 = arith.constant 0 : i32
    %c0_i32_1 = arith.constant 0 : i32
    return %c0_i32, %c0_i32_0 : i32, i32
  }
  func.func @transform_4(%arg0: i32) -> (i32, i32) {
    %c0_i32 = arith.constant 0 : i32
    %c0_i32_0 = arith.constant 0 : i32
    %c0_i32_1 = arith.constant 0 : i32
    return %c0_i32, %c0_i32_0 : i32, i32
  }
  func.func @transform_5(%arg0: i32) -> (i32, i32, i32) {
    %c0_i32 = arith.constant 0 : i32
    %c0_i32_0 = arith.constant 0 : i32
    %c0_i32_1 = arith.constant 0 : i32
    %c0_i32_2 = arith.constant 0 : i32
    return %c0_i32, %c0_i32_0, %c0_i32_1 : i32, i32, i32
  }
  func.func @transform_6(%arg0: i32) -> (i32, i32) {
    %c0_i32 = arith.constant 0 : i32
    %c0_i32_0 = arith.constant 0 : i32
    %c0_i32_1 = arith.constant 0 : i32
    return %c0_i32, %c0_i32_0 : i32, i32
  }
  func.func @transform_7(%arg0: i32) -> (i32, i32, i32) {
    %c0_i32 = arith.constant 0 : i32
    %c0_i32_0 = arith.constant 0 : i32
    %c0_i32_1 = arith.constant 0 : i32
    %c0_i32_2 = arith.constant 0 : i32
    return %c0_i32, %c0_i32_0, %c0_i32_1 : i32, i32, i32
  }
  func.func @transform_8(%arg0: i32) -> (i32, i32) {
    %c0_i32 = arith.constant 0 : i32
    %c0_i32_0 = arith.constant 0 : i32
    %c0_i32_1 = arith.constant 0 : i32
    return %c0_i32, %c0_i32_0 : i32, i32
  }
  func.func @transform_9(%arg0: i32) -> (i32, i32, i32) {
    %c0_i32 = arith.constant 0 : i32
    %c0_i32_0 = arith.constant 0 : i32
    %c0_i32_1 = arith.constant 0 : i32
    %c0_i32_2 = arith.constant 0 : i32
    return %c0_i32, %c0_i32_0, %c0_i32_1 : i32, i32, i32
  }
  func.func @transform_10(%arg0: i32) -> (i32, i32) {
    %c0_i32 = arith.constant 0 : i32
    %c0_i32_0 = arith.constant 0 : i32
    %c0_i32_1 = arith.constant 0 : i32
    return %c0_i32, %c0_i32_0 : i32, i32
  }
  func.func @transform_11(%arg0: i32) -> (i32, i32, i32) {
    %c0_i32 = arith.constant 0 : i32
    %c0_i32_0 = arith.constant 0 : i32
    %c0_i32_1 = arith.constant 0 : i32
    %c0_i32_2 = arith.constant 0 : i32
    return %c0_i32, %c0_i32_0, %c0_i32_1 : i32, i32, i32
  }
  func.func @transform_12(%arg0: i32) -> (i32, i32) {
    %c0_i32 = arith.constant 0 : i32
    %c0_i32_0 = arith.constant 0 : i32
    %c0_i32_1 = arith.constant 0 : i32
    return %c0_i32, %c0_i32_0 : i32, i32
  }
  func.func @transform_13(%arg0: i32) -> (i32, i32, i32) {
    %c0_i32 = arith.constant 0 : i32
    %c0_i32_0 = arith.constant 0 : i32
    %c0_i32_1 = arith.constant 0 : i32
    return %arg0, %c0_i32, %c0_i32_0 : i32, i32, i32
  }
}

</mosaic_0001>

<bundles_post_ra>
// kernel: tpu_custom_call.1
= control target key start
LH: loop header
LB: loop body
LE: loop exit
PB: predicated region body
PF: predicated region fallthrough
CT: control target
= control target key end

     0   :  { %s6078_s0 = inlined_call_operand.vmem [shape: f32[2,1,8], index: 0, kind: input, shape index: {}]   ;;  %s6079_s1 = inlined_call_operand.vmem [shape: bf16[8,32], index: 1, kind: input, shape index: {}]   ;;  %s6080_s2 = inlined_call_operand.vmem [shape: f32[1,32], index: 2, kind: input, shape index: {}]   ;;  %s6081_s3 = inlined_call_operand.vmem [shape: bf16[32,2048], index: 3, kind: input, shape index: {}]   ;;  %s6082_s4 = inlined_call_operand.vmem [shape: f32[1,2048], index: 4, kind: input, shape index: {}]   ;;  %s6083_s5 = inlined_call_operand.hbm [shape: bf16[3,256,256], index: 5, kind: input, shape index: {}]   ;;  %s6084_s6 = inlined_call_operand.vmem [shape: f32[1,256], index: 6, kind: input, shape index: {}]   ;;  %s6085_s7 = inlined_call_operand.hbm [shape: bf16[3,256,256], index: 7, kind: input, shape index: {}]   ;;  %s6086_s8 = inlined_call_operand.vmem [shape: f32[1,256], index: 8, kind: input, shape index: {}]   ;;  %s6087_s9 = inlined_call_operand.hbm [shape: bf16[3,256,128], index: 9, kind: input, shape index: {}]   ;;  %s6088_s10 = inlined_call_operand.vmem [shape: f32[1,128], index: 10, kind: input, shape index: {}]   ;;  %s6089_s11 = inlined_call_operand.vmem [shape: bf16[3,128,64], index: 11, kind: input, shape index: {}]   ;;  %s6090_s12 = inlined_call_operand.vmem [shape: f32[1,64], index: 12, kind: input, shape index: {}]   ;;  %s6091_s13 = inlined_call_operand.hbm [shape: f32[2,8,128], index: 13, kind: output, shape index: {}]  }
   0x1   :  { %6098 = sst [smem:[#allocation18_spill]] %s6083_s5 }
   0x2   :  { %6099 = sst [smem:[#allocation19_spill]] %s6085_s7 }
   0x3   :  { %18 = vsyncpa [#allocation3], 0 }
   0x4   :  { %19 = vsyncpa [#allocation6], 0 }
   0x5   :  { %20 = vsyncpa [#allocation4], 0 }
   0x6   :  { %22 = vsyncpa [#allocation4 + $0x1], 0  ;;  %s5484_s25 = smov 0   ;;  %s5486_s26 = smov 0  }
   0x7   :  { %s5488_s27 = smov 0   ;;  %s5490_s28 = smov 0  }
   0x8 LB: > { %6100 = sst [smem:[#allocation12_spill]] %s5391_s25  ;;  %s5505_s29 = sadd.s32 4294967295, %s5403_s28   ;;  %s5403_s28 = sphi %s5490_s28, %s6115_s28   ;;  %s5399_s27 = sphi %s5488_s27, %s6117_s27   ;;  %s5395_s26 = sphi %s5486_s26, %s6119_s26   ;;  %s5391_s25 = sphi %s5484_s25, %s6118_s25  }
   0x9   : > { %6101 = sst [smem:[#allocation13_spill]] %s5399_s27  ;;  %s3599_s30 = sadd.s32 4294967294, %s5403_s28  }
   0xa   : > { %6102 = sst [smem:[#allocation14_spill]] %s5403_s28  ;;  %s5509_s14 = sadd.s32 1, %s5403_s28  }
   0xb   : > { %6103 = sst [smem:[#allocation15_spill]] %s5509_s14  ;;  %s313_s15 = sadd.s32 1, %s5399_s27 }
   0xc   : > { %s310_s16 = ssub.s32 %s5403_s28, %s5509_s14  ;;  %p323_p0 = scmp.ne.s32.totalorder %s5399_s27, %s5395_s26 }
   0xd   : > { %p311_p1 = scmp.eq.s32.totalorder %s310_s16, 0  ;;  %p324_p2 = scmp.eq.s32.totalorder %s5505_s29, 1 }
   0xe   : > { %p329_p3 = scmp.ne.s32.totalorder %s5395_s26, %s5391_s25  ;;  %p330_p4 = scmp.eq.s32.totalorder %s3599_s30, 1 }
   0xf   : > { %s5520_s17 = scalar_select %p311_p1, %s5399_s27, %s313_s15  }
  0x10   : > { %p5522_p5 = por %p324_p2, %p323_p0  ;;  %p5526_p6 = por %p330_p4, %p329_p3 }
  0x11   : > { %6104 = sst [smem:[#allocation16_spill]] %s5520_s17  ;;  %p3600_p7 = scmp.ge.s32.totalorder %s5403_s28, 1 }
  0x12   : > { %s6106_s19 = scalar_select %p5526_p6, 1, 0 }
  0x13   : > { %p337_p8 = scmp.lt.s32.totalorder %s5403_s28, 3  ;;  %p5185_p9 = scmp.eq.s32.totalorder %s5505_s29, 0 }
  0x14   : > { %6107 = sst [smem:[#allocation17_spill]] %s6106_s19  ;;  %s5405_s17 = smov [#allocation5]  }
  0x15   : > { %p5533_p10 = pnand %p3600_p7, %p337_p8  ;;  %s6109_s7 = sld [smem:[#allocation19_spill]] }
  0x16   : > { %s6110_s5 = sld [smem:[#allocation18_spill]]  ;;  %s379_s27 = sshll.u32 %s5405_s17, 4  ;;  %s380_s27 = int_to_ptr.vmem [resolvable:$true] %s379_s27 }
  0x17   : > { %p5171_p11 = pneg %p5533_p10  ;;  %s5406_s21 = smov 128  }
  0x18   : > { %s5407_s22 = smov 8   ;;  %s5409_s19 = smov [#allocation7]  }
  0x19   : > { %p5547_p12 = pnand %p5185_p9, %p5171_p11  ;;  %s396_s25 = sshll.u32 %s5409_s19, 4  ;;  %s397_s25 = int_to_ptr.vmem [resolvable:$true] %s396_s25 }
  0x1a   : > { %s5410_s17 = smov 64   ;;  %s5411_s28 = smov 4  }
  0x1b   : > { %s377_s23 = sshll.u32 %s6109_s7, 4  ;;  %s5408_s7 = smov [#allocation2]   ;;  %s378_s23 = int_to_ptr.hbm [resolvable:$true] %s377_s23 }
  0x1c   : > { %s360_s15 = sshll.u32 %s6110_s5, 4  ;;  %s362_s14 = sshll.u32 %s5408_s7, 4  ;;  %s361_s15 = int_to_ptr.hbm [resolvable:$true] %s360_s15  ;;  %s363_s14 = int_to_ptr.vmem [resolvable:$true] %s362_s14 }
  0x1d   : > { %5177 = dma.hbm_to_vmem [thread:$0]  (!%p5547_p12), %s378_s23, 12288, %s380_s27, [#allocation6], %s5406_s21, %s5406_s21, %s5407_s22  }
  0x1e   : > { %s394_s5 = sshll.u32 %s6087_s9, 4  ;;  %427 = sbr.rel (%p5533_p10) target bundleno = 1668 (0x684), region = 72  ;;  %s395_s5 = int_to_ptr.hbm [resolvable:$true] %s394_s5 }
  0x1f   : > { %5174 = dma.hbm_to_vmem [thread:$0]  (!%p5547_p12), %s361_s15, 12288, %s363_s14, [#allocation3], %s5406_s21, %s5406_s21, %s5407_s22  }
  0x20   : > { %5180 = dma.hbm_to_vmem [thread:$0]  (!%p5547_p12), %s395_s5, 6144, %s397_s25, [#allocation6], %s5410_s17, %s5410_s17, %s5411_s28  }
  0x23   : > { %5378 = dma.done.wait (%p5185_p9), [#allocation3], 12288  }
  0x24   : > { %5380 = vsyncadd (%p5185_p9), [#allocation3], 4294955008 }
  0x25   : > { %5382 = dma.done.wait (%p5185_p9), [#allocation6], 18432  }
  0x26   : > { %5384 = vsyncadd (%p5185_p9), [#allocation6], 4294948864  ;;  %p480_p13 = scmp.lt.s32.totalorder %s5505_s29, 1  ;;  %vm492_vm0 = vcmask 1043456   ;;  %v486_v0 = vld [vmem:[%s6079_s1] sm:$0xf] }
  0x27   : > { %v494_v2 = vsel %vm492_vm0, %v486_v0, 0  ;;  %vm488_vm1 = vcmask 64512   ;;  %v3677_v4 = vld [vmem:[%s6081_s3 + $0x80] sm:$0xf]  ;;  %v3685_v6 = vld [vmem:[%s6081_s3 + $0x88] sm:$0xf] }
  0x28   : > { %s481_s7 = scalar_select %p480_p13, %s5505_s29, 1  ;;  %503 = vmatpush.bf16.msra.mxu0 %v494_v2  ;;  %v4885_v5 = vld [vmem:[%s6081_s3 + $0xbc] sm:$0xf0]  ;;  %v4886_v8 = vld [vmem:[%s6081_s3 + $0xc4] sm:$0xf0]  ;;  %vm739_vm2 = vcmask 261120  }
  0x29   : > { %v3678_v7 = vor.u32 %v4885_v5, %v3677_v4  ;;  %v4878_v9 = vld [vmem:[%s6081_s3 + $0x8c] sm:$0xf]  ;;  %v3686_v11 = vor.u32 %v4886_v8, %v3685_v6  ;;  %v3693_v13 = vld [vmem:[%s6081_s3 + $0x90] sm:$0xf]  ;;  %v3613_v16 = vld [vmem:[%s6081_s3] sm:$0xf] }
  0x2a   : > { %s482_s27 = scalar_lea.vmem %s6078_s0, %s481_s7  ;;  %v3687_v10 = vld [vmem:[%s6081_s3 + $0xc8] sm:$0xf0]  ;;  %v4887_v14 = vld [vmem:[%s6081_s3 + $0xcc] sm:$0xf0]  ;;  %v4869_v17 = vld [vmem:[%s6081_s3 + $0x3c] sm:$0xf0] }
  0x2b   : > { %v484_v1 = vld [vmem:[%s482_s27] sm:$0x1]  ;;  %v3690_v12 = vor.u32 %v4878_v9, %v3687_v10  ;;  %749 = vmatpush.bf16.msra.mxu2 %v3678_v7  ;;  %v3694_v15 = vor.u32 %v4887_v14, %v3693_v13  ;;  %775 = vmatpush.bf16.msra.mxu3 %v3686_v11  ;;  %v3621_v18 = vld [vmem:[%s6081_s3 + $0x8] sm:$0xf]  ;;  %v3614_v19 = vor.u32 %v4869_v17, %v3613_v16  ;;  %v4862_v21 = vld [vmem:[%s6081_s3 + $0xc] sm:$0xf] }
  0x2c   : > { %v485_v3 = vpack.c.bf16 %v484_v1, %v484_v1  ;;  %v4870_v20 = vld [vmem:[%s6081_s3 + $0x44] sm:$0xf0]  ;;  %v3623_v22 = vld [vmem:[%s6081_s3 + $0x48] sm:$0xf0]  ;;  %v3629_v25 = vld [vmem:[%s6081_s3 + $0x10] sm:$0xf] }
  0x2d   : > { %788 = vmatpush.bf16.msrb.mxu0 %v3690_v12  ;;  %801 = vmatpush.bf16.msra.mxu1 %v3694_v15  ;;  %v3622_v23 = vor.u32 %v4870_v20, %v3621_v18  ;;  %v3626_v24 = vor.u32 %v4862_v21, %v3623_v22  ;;  %v4871_v26 = vld [vmem:[%s6081_s3 + $0x4c] sm:$0xf0]  ;;  %v4877_v28 = vld [vmem:[%s6081_s3 + $0x84] sm:$0xf]  ;;  %v3701_v30 = vld [vmem:[%s6081_s3 + $0x98] sm:$0xf] }
  0x2e   : > { %3610 = vmatmul.msk.bf16.vlgmr.msra.gmra.mxu0 %vm488_vm1, %v485_v3  ;;  %v3630_v27 = vor.u32 %v4871_v26, %v3629_v25  ;;  %v3679_v29 = vld [vmem:[%s6081_s3 + $0xc0] sm:$0xf0]  ;;  %v4888_v32 = vld [vmem:[%s6081_s3 + $0xd4] sm:$0xf0]  ;;  %v4880_v33 = vld [vmem:[%s6081_s3 + $0x9c] sm:$0xf] }
  0x2f   : > { %750 = vmatpush.bf16.msra.mxu2 %v3614_v19  ;;  %776 = vmatpush.bf16.msra.mxu3 %v3622_v23  ;;  %v3682_v31 = vor.u32 %v4877_v28, %v3679_v29  ;;  %v3703_v34 = vld [vmem:[%s6081_s3 + $0xd8] sm:$0xf0]  ;;  %v3702_v35 = vor.u32 %v4888_v32, %v3701_v30  ;;  %v3709_v37 = vld [vmem:[%s6081_s3 + $0xa0] sm:$0xf]  ;;  %v4861_v39 = vld [vmem:[%s6081_s3 + $0x4] sm:$0xf] }
  0x30   : > { %v3706_v36 = vor.u32 %v4880_v33, %v3703_v34  ;;  %v4889_v38 = vld [vmem:[%s6081_s3 + $0xdc] sm:$0xf0]  ;;  %v3615_v41 = vld [vmem:[%s6081_s3 + $0x40] sm:$0xf0]  ;;  %v3637_v42 = vld [vmem:[%s6081_s3 + $0x18] sm:$0xf] }
  0x31   : > { %789 = vmatpush.bf16.msrb.mxu0 %v3626_v24  ;;  %802 = vmatpush.bf16.msra.mxu1 %v3630_v27  ;;  %v3710_v40 = vor.u32 %v4889_v38, %v3709_v37  ;;  %v4872_v43 = vld [vmem:[%s6081_s3 + $0x54] sm:$0xf0]  ;;  %v3618_v44 = vor.u32 %v4861_v39, %v3615_v41  ;;  %v4864_v46 = vld [vmem:[%s6081_s3 + $0x1c] sm:$0xf]  ;;  %v3645_v48 = vld [vmem:[%s6081_s3 + $0x20] sm:$0xf] }
  0x32   : > { %v3638_v45 = vor.u32 %v4872_v43, %v3637_v42  ;;  %v3639_v47 = vld [vmem:[%s6081_s3 + $0x58] sm:$0xf0]  ;;  %v4873_v50 = vld [vmem:[%s6081_s3 + $0x5c] sm:$0xf0]  ;;  %v4879_v55 = vld [vmem:[%s6081_s3 + $0x94] sm:$0xf] }
  0x33   : > { %762 = vmatpush.bf16.msrb.mxu2 %v3682_v31  ;;  %827 = vmatpush.bf16.msrb.mxu3 %v3702_v35  ;;  %v3642_v49 = vor.u32 %v4864_v46, %v3639_v47  ;;  %v3646_v51 = vor.u32 %v4873_v50, %v3645_v48  ;;  %v487_v52 = vld [vmem:[%s6080_s2] sm:$0x1]  ;;  %v3695_v56 = vld [vmem:[%s6081_s3 + $0xd0] sm:$0xf0]  ;;  %v3717_v57 = vld [vmem:[%s6081_s3 + $0xa8] sm:$0xf] }
  0x34   : > { %v4890_v58 = vld [vmem:[%s6081_s3 + $0xe4] sm:$0xf0]  ;;  %v4882_v59 = vld [vmem:[%s6081_s3 + $0xac] sm:$0xf]  ;;  %v3725_v62 = vld [vmem:[%s6081_s3 + $0xb0] sm:$0xf]  ;;  %v3698_v1 = vor.u32 %v4879_v55, %v3695_v56 }
  0x35   : > { %840 = vmatpush.bf16.msra.mxu0 %v3706_v36  ;;  %853 = vmatpush.bf16.msrb.mxu1 %v3710_v40  ;;  %v3719_v60 = vld [vmem:[%s6081_s3 + $0xe8] sm:$0xf0]  ;;  %v4891_v63 = vld [vmem:[%s6081_s3 + $0xec] sm:$0xf0]  ;;  %v3718_v2 = vor.u32 %v4890_v58, %v3717_v57  ;;  %v4863_v3 = vld [vmem:[%s6081_s3 + $0x14] sm:$0xf] }
  0x36   : > { %v3631_v4 = vld [vmem:[%s6081_s3 + $0x50] sm:$0xf0]  ;;  %v3722_v5 = vor.u32 %v4882_v59, %v3719_v60  ;;  %v3726_v6 = vor.u32 %v4891_v63, %v3725_v62  ;;  %v3653_v7 = vld [vmem:[%s6081_s3 + $0x28] sm:$0xf]  ;;  %v4866_v9 = vld [vmem:[%s6081_s3 + $0x2c] sm:$0xf] }
  0x37   : > { %763 = vmatpush.bf16.msrb.mxu2 %v3618_v44  ;;  %828 = vmatpush.bf16.msrb.mxu3 %v3638_v45  ;;  %v4874_v8 = vld [vmem:[%s6081_s3 + $0x64] sm:$0xf0]  ;;  %v3655_v10 = vld [vmem:[%s6081_s3 + $0x68] sm:$0xf0]  ;;  %v3661_v11 = vld [vmem:[%s6081_s3 + $0x30] sm:$0xf]  ;;  %v3634_v14 = vor.u32 %v4863_v3, %v3631_v4 }
  0x38   : > { %v4875_v12 = vld [vmem:[%s6081_s3 + $0x6c] sm:$0xf0]  ;;  %v3654_v15 = vor.u32 %v4874_v8, %v3653_v7  ;;  %v3658_v16 = vor.u32 %v4866_v9, %v3655_v10  ;;  %v4881_v18 = vld [vmem:[%s6081_s3 + $0xa4] sm:$0xf]  ;;  %v3733_v20 = vld [vmem:[%s6081_s3 + $0xb8] sm:$0xf] }
  0x39   : > { %841 = vmatpush.bf16.msra.mxu0 %v3642_v49  ;;  %854 = vmatpush.bf16.msrb.mxu1 %v3646_v51  ;;  %v3662_v17 = vor.u32 %v4875_v12, %v3661_v11  ;;  %v3711_v19 = vld [vmem:[%s6081_s3 + $0xe0] sm:$0xf0]  ;;  %v4892_v21 = vld [vmem:[%s6081_s3 + $0xf4] sm:$0xf0]  ;;  %v4884_v22 = vld [vmem:[%s6081_s3 + $0xbc] sm:$0xf] }
  0x3a   : > { %v3735_v23 = vld [vmem:[%s6081_s3 + $0xf8] sm:$0xf0]  ;;  %v3714_v24 = vor.u32 %v4881_v18, %v3711_v19  ;;  %v3734_v25 = vor.u32 %v4892_v21, %v3733_v20  ;;  %v4865_v26 = vld [vmem:[%s6081_s3 + $0x24] sm:$0xf]  ;;  %v3669_v29 = vld [vmem:[%s6081_s3 + $0x38] sm:$0xf] }
  0x3b   : > { %v3738_v27 = vor.u32 %v4884_v22, %v3735_v23  ;;  %v3647_v28 = vld [vmem:[%s6081_s3 + $0x60] sm:$0xf0]  ;;  %v4876_v30 = vld [vmem:[%s6081_s3 + $0x74] sm:$0xf0]  ;;  %v4868_v31 = vld [vmem:[%s6081_s3 + $0x3c] sm:$0xf] }
  0x3c   : > { %v3671_v32 = vld [vmem:[%s6081_s3 + $0x78] sm:$0xf0]  ;;  %v3650_v33 = vor.u32 %v4865_v26, %v3647_v28  ;;  %v3670_v34 = vor.u32 %v4876_v30, %v3669_v29  ;;  %v4883_v36 = vld [vmem:[%s6081_s3 + $0xb4] sm:$0xf]  ;;  %s477_s28 = sand.u32 1, %s5395_s26   ;;  %vm3478_vm13 = vcmask 523264  }
  0x3d   : > { %v3674_v35 = vor.u32 %v4868_v31, %v3671_v32  ;;  %v3727_v37 = vld [vmem:[%s6081_s3 + $0xf0] sm:$0xf0]  ;;  %s3609_s14 = sshll.u32 %s477_s28, 3  ;;  %s5413_s20 = smov 64  }
  0x3e   : > { %v3730_v38 = vor.u32 %v4883_v36, %v3727_v37  ;;  %v4867_v39 = vld [vmem:[%s6081_s3 + $0x34] sm:$0xf]  ;;  %s479_s19 = scalar_lea.vmem [#allocation8], %s3609_s14  ;;  %s4858_s23 = sshll.u32 %s5505_s29, 3 }
  0x3f   : > { %v3663_v40 = vld [vmem:[%s6081_s3 + $0x70] sm:$0xf0]  ;;  %s3507_s21 = scalar_lea.hbm %s6091_s13, %s4858_s23  ;;  %s3509_s22 = sshll.u32 %s479_s19, 4  ;;  %s3510_s22 = int_to_ptr.vmem [resolvable:$true] %s3509_s22 }
  0x40   : > { %v3666_v41 = vor.u32 %v4867_v39, %v3663_v40  ;;  %s3511_s24 = sshll.u32 %s3507_s21, 4  ;;  %s3497_s30 = scalar_lea.sflag [#allocation4], %s477_s28  ;;  %s3512_s24 = int_to_ptr.hbm [resolvable:$true] %s3511_s24 }
  0x41   : > { %s5347_s17 = sshra.s32 %s3512_s24, 4  ;;  %s5353_s25 = scalar_lea.hbm %s6091_s13, 16  ;;  %s5348_s17 = int_to_ptr.hbm [resolvable:$true] %s5347_s17 }
  0x42   : > { %s5349_s7 = scalar_lea.hbm %s5348_s17, 8  ;;  %p5354_p3 = scmp.lt.s32.totalorder %s5348_s17, %s6091_s13 }
  0x43   : > { %p5350_p0 = scmp.ne.s32.totalorder %s5348_s17, %s5349_s7  ;;  %p5355_p4 = scmp.lt.s32.totalorder %s5353_s25, %s5349_s7 }
  0x45   : > { %p5351_p1 = pnand %p5350_p0, %p5522_p5  ;;  %p5356_p7 = por %p5355_p4, %p5354_p3 }
  0x47   : > { %p5352_p2 = pneg %p5351_p1 }
  0x49   : > { %p5357_p8 = pnand %p5356_p7, %p5352_p2 }
  0xab   : > { %v505_v53 = vpop.f32.mrf.mxu0 }
  0xac   : > { %v506_v54 = vadd.f32 %v505_v53, %v487_v52 }
  0xae   : > { %v509_v61 = vmax.f32 %v506_v54, 0.0  ;;  %v5816_v54 = vld [vmem:[%s6082_s4] sm:$0xff] }
  0xaf   : > { %v707_v55 = vperm.slane %v5816_v54, 0  ;;  %v709_v56 = vperm.slane %v5816_v54, 2  ;;  %v711_v63 = vperm.slane %v5816_v54, 4  ;;  %v710_v31 = vperm.slane %v5816_v54, 3 }
  0xb0   : > { %v5703_v0 = vpack.c.bf16 %v509_v61, %v509_v61  ;;  %v712_v32 = vperm.slane %v5816_v54, 5 }
  0xb2   : > { %3739 = vmatmul.msk.bf16.vlgmr.msra.gmra.mxu2 %vm739_vm2, %v5703_v0  ;;  %3741 = vmatmul.msk.bf16.vlgmr.msra.gmra.mxu3 %vm739_vm2, %v5703_v0 }
  0xb3   : > { %3742 = vmatmul.msk.bf16.vlgmr.msrb.gmra.mxu0 %vm739_vm2, %v5703_v0  ;;  %3743 = vmatmul.msk.bf16.vlgmr.msra.gmra.mxu1 %vm739_vm2, %v5703_v0  ;;  %v507_v13 = vpop.f32.mrf.mxu0 }
  0xb4   : > { %814 = vmatpush.bf16.msra.mxu2 %v3698_v1  ;;  %879 = vmatpush.bf16.msra.mxu3 %v3718_v2  ;;  %v967_v1 = vlaneseq }
  0xb5   : > { %892 = vmatpush.bf16.msrb.mxu0 %v3722_v5  ;;  %905 = vmatpush.bf16.msra.mxu1 %v3726_v6  ;;  %v5827_v6 = vld [vmem:[%s6082_s4 + $0x8] sm:$0xff] }
  0xb6   : > { %v5830_v9 = vshrl.u32 %v967_v1, 7  ;;  %v715_v12 = vperm.slane %v5827_v6, 0  ;;  %v717_v13 = vperm.slane %v5827_v6, 2 }
  0xb8   : > { %815 = vmatpush.bf16.msra.mxu2 %v3634_v14  ;;  %880 = vmatpush.bf16.msra.mxu3 %v3654_v15  ;;  %vm969_vm3 = vcmp.eq.s32.totalorder %v5830_v9, 0  ;;  %vm978_vm4 = vcmp.eq.s32.totalorder %v5830_v9, 1  ;;  %vm987_vm5 = vcmp.eq.s32.totalorder %v5830_v9, 2  ;;  %vm996_vm6 = vcmp.eq.s32.totalorder %v5830_v9, 3 }
  0xb9   : > { %893 = vmatpush.bf16.msrb.mxu0 %v3658_v16  ;;  %906 = vmatpush.bf16.msra.mxu1 %v3662_v17  ;;  %vm1005_vm7 = vcmp.eq.s32.totalorder %v5830_v9, 4  ;;  %vm1014_vm8 = vcmp.eq.s32.totalorder %v5830_v9, 5  ;;  %vm1023_vm9 = vcmp.eq.s32.totalorder %v5830_v9, 6  ;;  %vm1032_vm10 = vcmp.eq.s32.totalorder %v5830_v9, 7 }
  0xc2   : > { %3740 = vmatmul.msk.bf16.vlgmr.msrb.gmra.mxu2 %vm739_vm2, %v5703_v0  ;;  %3745 = vmatmul.msk.bf16.vlgmr.msrb.gmra.mxu3 %vm739_vm2, %v5703_v0 }
  0xc3   : > { %3746 = vmatmul.msk.bf16.vlgmr.msra.gmra.mxu0 %vm739_vm2, %v5703_v0  ;;  %3747 = vmatmul.msk.bf16.vlgmr.msrb.gmra.mxu1 %vm739_vm2, %v5703_v0 }
  0xc4   : > { %866 = vmatpush.bf16.msrb.mxu2 %v3714_v24  ;;  %931 = vmatpush.bf16.msrb.mxu3 %v3734_v25  ;;  %v708_v25 = vperm.slane %v5816_v54, 1 }
  0xc5   : > { %944 = vmatpush.bf16.msra.mxu0 %v3738_v27  ;;  %v719_v27 = vperm.slane %v5827_v6, 4 }
  0xc8   : > { %867 = vmatpush.bf16.msrb.mxu2 %v3650_v33  ;;  %932 = vmatpush.bf16.msrb.mxu3 %v3670_v34 }
  0xc9   : > { %945 = vmatpush.bf16.msra.mxu0 %v3674_v35 }
  0xd2   : > { %3744 = vmatmul.msk.bf16.vlgmr.msra.gmra.mxu2 %vm739_vm2, %v5703_v0  ;;  %3749 = vmatmul.msk.bf16.vlgmr.msra.gmra.mxu3 %vm739_vm2, %v5703_v0 }
  0xd3   : > { %3750 = vmatmul.msk.bf16.vlgmr.msrb.gmra.mxu0 %vm739_vm2, %v5703_v0  ;;  %3751 = vmatmul.msk.bf16.vlgmr.msra.gmra.mxu1 %vm739_vm2, %v5703_v0 }
  0xd4   : > { %918 = vmatpush.bf16.msra.mxu2 %v3730_v38 }
  0xd8   : > { %919 = vmatpush.bf16.msra.mxu2 %v3666_v41 }
  0xe2   : > { %3748 = vmatmul.msk.bf16.vlgmr.msrb.gmra.mxu2 %vm739_vm2, %v5703_v0  ;;  %3753 = vmatmul.msk.bf16.vlgmr.msrb.gmra.mxu3 %vm739_vm2, %v5703_v0 }
  0xe3   : > { %3754 = vmatmul.msk.bf16.vlgmr.msra.gmra.mxu0 %vm739_vm2, %v5703_v0 }
  0xf2   : > { %3752 = vmatmul.msk.bf16.vlgmr.msra.gmra.mxu2 %vm739_vm2, %v5703_v0  ;;  %v713_v0 = vperm.slane %v5816_v54, 6 }
 0x130   : > { %v5809_v42 = vpop.f32.mrf.mxu0  ;;  %v804_v43 = vpop.f32.mrf.mxu1 }
 0x131   : > { %v805_v7 = vadd.f32 %v804_v43, %v711_v63 }
 0x133   : > { %v955_v16 = vmax.f32 %v805_v7, 0.0 }
 0x135   : > { %v752_v44 = vpop.f32.mrf.mxu2  ;;  %v778_v45 = vpop.f32.mrf.mxu3  ;;  %v990_v24 = vperm.slane %v955_v16, 0  ;;  %v3818_v16 = vld [vmem:[#allocation2 + $0x170] sm:$0xf] }
 0x136   : > { %v753_v59 = vadd.f32 %v752_v44, %v707_v55  ;;  %v779_v60 = vadd.f32 %v778_v45, %v709_v56  ;;  %v792_v44 = vadd.f32 %v5809_v42, %v710_v31  ;;  %v714_v45 = vperm.slane %v5816_v54, 7 }
 0x137   : > { %v992_v35 = vsel %vm987_vm5, %v990_v24, 0.0  ;;  %v716_v42 = vperm.slane %v5827_v6, 1 }
 0x138   : > { %v793_v46 = vpop.f32.mrf.mxu0  ;;  %v806_v47 = vpop.f32.mrf.mxu1  ;;  %v951_v2 = vmax.f32 %v753_v59, 0.0  ;;  %v953_v3 = vmax.f32 %v779_v60, 0.0  ;;  %v954_v55 = vmax.f32 %v792_v44, 0.0 }
 0x13a   : > { %v972_v10 = vperm.slane %v951_v2, 0  ;;  %v981_v11 = vperm.slane %v953_v3, 0  ;;  %v3755_v2 = vadd.s32 4294967295, %v5830_v9  ;;  %v1047_v3 = vadd.s32 1, %v5830_v9  ;;  %v3876_v9 = vld [vmem:[#allocation2 + $0x1e8] sm:$0xf0] }
 0x13c   : > { %v974_v18 = vsel %vm969_vm3, %v972_v10, 0.0  ;;  %v983_v19 = vsel %vm978_vm4, %v981_v11, 0.0  ;;  %v718_v11 = vperm.slane %v5827_v6, 3 }
 0x13d   : > { %v754_v48 = vpop.f32.mrf.mxu2  ;;  %v780_v49 = vpop.f32.mrf.mxu3  ;;  %v985_v28 = vadd.f32 %v983_v19, %v974_v18 }
 0x13f   : > { %v994_v39 = vadd.f32 %v992_v35, %v985_v28 }
 0x140   : > { %v5811_v50 = vpop.f32.mrf.mxu0  ;;  %v856_v51 = vpop.f32.mrf.mxu1 }
 0x141   : > { %v857_v20 = vadd.f32 %v856_v51, %v715_v12  ;;  %v721_v51 = vperm.slane %v5827_v6, 6  ;;  %v844_v54 = vadd.f32 %v5811_v50, %v714_v45  ;;  %v982_v50 = vperm.slane %v954_v55, 0 }
 0x143   : > { %v959_v29 = vmax.f32 %v857_v20, 0.0  ;;  %v958_v10 = vmax.f32 %v844_v54, 0.0  ;;  %v4939_v20 = vld [vmem:[#allocation2 + $0x174] sm:$0xf] }
 0x145   : > { %v765_v52 = vpop.f32.mrf.mxu2  ;;  %v830_v53 = vpop.f32.mrf.mxu3  ;;  %v1008_v40 = vperm.slane %v959_v29, 0  ;;  %v5412_v29 = vmov 0.0  }
 0x146   : > { %v831_v8 = vadd.f32 %v830_v53, %v713_v0  ;;  %v766_v36 = vadd.f32 %v765_v52, %v708_v25  ;;  %v1042_v0 = vand.u32 127, %v967_v1 }
 0x147   : > { %v1010_v52 = vsel %vm1005_vm7, %v1008_v40, 0.0  ;;  %v4937_v40 = vld [vmem:[#allocation2 + $0x164] sm:$0xf] }
 0x148   : > { %v845_v57 = vpop.f32.mrf.mxu0  ;;  %v858_v58 = vpop.f32.mrf.mxu1  ;;  %v957_v17 = vmax.f32 %v831_v8, 0.0  ;;  %v952_v47 = vmax.f32 %v766_v36, 0.0  ;;  %vm1044_vm11 = vcmp.eq.s32.totalorder %v1042_v0, %v3755_v2  ;;  %vm1048_vm12 = vcmp.eq.s32.totalorder %v1042_v0, %v1047_v3  ;;  %v3810_v36 = vld [vmem:[#allocation2 + $0x160] sm:$0xf]  ;;  %v4934_v2 = vld [vmem:[#allocation2 + $0x144] sm:$0xf0] }
 0x149   : > { %v1049_v31 = vsel %vm1048_vm12, 1.0, %v5412_v29  ;;  %v3794_v0 = vld [vmem:[#allocation2 + $0x140] sm:$0xf] }
 0x14a   : > { %v999_v26 = vperm.slane %v957_v17, 0  ;;  %v973_v59 = vperm.slane %v952_v47, 0  ;;  %v4940_v17 = vld [vmem:[#allocation2 + $0x174] sm:$0xf0] }
 0x14c   : > { %v1001_v37 = vsel %vm996_vm6, %v999_v26, 0.0  ;;  %v975_v12 = vsel %vm969_vm3, %v973_v59, 0.0 }
 0x14d   : > { %v767_v61 = vpop.f32.mrf.mxu2  ;;  %v832_v62 = vpop.f32.mrf.mxu3  ;;  %v1003_v46 = vadd.f32 %v1001_v37, %v994_v39  ;;  %v4938_v37 = vld [vmem:[#allocation2 + $0x164] sm:$0xf0] }
 0x14f   : > { %v1012_v56 = vadd.f32 %v1010_v52, %v1003_v46  ;;  %v5887_v46 = vpack.c.bf16 %v1049_v31, %v1049_v31 }
 0x150   : > { %v5822_v4 = vpop.f32.mrf.mxu0  ;;  %v908_v5 = vpop.f32.mrf.mxu1 }
 0x151   : > { %v909_v38 = vadd.f32 %v908_v5, %v719_v27  ;;  %v896_v27 = vadd.f32 %v5822_v4, %v718_v11 }
 0x153   : > { %v963_v48 = vmax.f32 %v909_v38, 0.0  ;;  %v1000_v38 = vperm.slane %v958_v10, 0  ;;  %v962_v47 = vmax.f32 %v896_v27, 0.0 }
 0x155   : > { %v817_v14 = vpop.f32.mrf.mxu2  ;;  %v882_v15 = vpop.f32.mrf.mxu3  ;;  %v1026_v60 = vperm.slane %v963_v48, 0  ;;  %v1002_v55 = vsel %vm996_vm6, %v1000_v38, 0.0  ;;  %v4953_v38 = vld [vmem:[#allocation2 + $0x1e4] sm:$0xf] }
 0x156   : > { %v883_v21 = vadd.f32 %v882_v15, %v717_v13  ;;  %v818_v49 = vadd.f32 %v817_v14, %v712_v32 }
 0x157   : > { %v1028_v13 = vsel %vm1023_vm9, %v1026_v60, 0.0 }
 0x158   : > { %v897_v22 = vpop.f32.mrf.mxu0  ;;  %v910_v23 = vpop.f32.mrf.mxu1  ;;  %v961_v30 = vmax.f32 %v883_v21, 0.0  ;;  %v956_v61 = vmax.f32 %v818_v49, 0.0  ;;  %v3820_v21 = vld [vmem:[#allocation2 + $0x178] sm:$0xf0]  ;;  %v720_v49 = vperm.slane %v5827_v6, 5 }
 0x159   : > { %v984_v22 = vsel %vm978_vm4, %v982_v50, 0.0  ;;  %v722_v23 = vperm.slane %v5827_v6, 7  ;;  %v3823_v35 = vor.u32 %v4939_v20, %v3820_v21  ;;  %v1018_v6 = vperm.slane %v962_v47, 0  ;;  %v3882_v20 = vld [vmem:[#allocation2 + $0x1f0] sm:$0xf] }
 0x15a   : > { %v1017_v41 = vperm.slane %v961_v30, 0  ;;  %v991_v1 = vperm.slane %v956_v61, 0  ;;  %v1045_v30 = vsel %vm1044_vm11, 1.0, %v5412_v29  ;;  %v986_v32 = vadd.f32 %v984_v22, %v975_v12  ;;  %v4956_v21 = vld [vmem:[#allocation2 + $0x1f4] sm:$0xf0] }
 0x15b   : > { %v5885_v45 = vpack.c.bf16 %v1045_v30, %v1045_v30  ;;  %v3795_v12 = vor.u32 %v4934_v2, %v3794_v0  ;;  %v4930_v29 = vld [vmem:[#allocation2 + $0x124] sm:$0xf0]  ;;  %v3883_v31 = vor.u32 %v4956_v21, %v3882_v20  ;;  %v4949_v2 = vld [vmem:[#allocation2 + $0x1c4] sm:$0xf]  ;;  %v3940_v20 = vld [vmem:[#allocation2 + $0x68] sm:$0xf0] }
 0x15c   : > { %v1019_v53 = vsel %vm1014_vm8, %v1017_v41, 0.0  ;;  %v993_v28 = vsel %vm987_vm5, %v991_v1, 0.0  ;;  %v3812_v41 = vld [vmem:[#allocation2 + $0x168] sm:$0xf0]  ;;  %v3786_v1 = vld [vmem:[#allocation2 + $0x130] sm:$0xf] }
 0x15d   : > { %v819_v33 = vpop.f32.mrf.mxu2  ;;  %v884_v34 = vpop.f32.mrf.mxu3  ;;  %v1021_v63 = vadd.f32 %v1019_v53, %v1012_v56  ;;  %v995_v44 = vadd.f32 %v993_v28, %v986_v32  ;;  %v3815_v52 = vor.u32 %v4937_v40, %v3812_v41  ;;  %v3802_v53 = vld [vmem:[#allocation2 + $0x150] sm:$0xf]  ;;  %v4935_v56 = vld [vmem:[#allocation2 + $0x154] sm:$0xf]  ;;  %v3778_v28 = vld [vmem:[#allocation2 + $0x120] sm:$0xf] }
 0x15e   : > { %v3819_v34 = vor.u32 %v4940_v17, %v3818_v16  ;;  %v4931_v16 = vld [vmem:[#allocation2 + $0x134] sm:$0xf]  ;;  %v3788_v17 = vld [vmem:[#allocation2 + $0x138] sm:$0xf0]  ;;  %v3779_v40 = vor.u32 %v4930_v29, %v3778_v28  ;;  %v4950_v0 = vld [vmem:[#allocation2 + $0x1c4] sm:$0xf0] }
 0x15f   : > { %v1030_v15 = vadd.f32 %v1028_v13, %v1021_v63  ;;  %v3791_v27 = vor.u32 %v4931_v16, %v3788_v17  ;;  %v4947_v16 = vld [vmem:[#allocation2 + $0x1b4] sm:$0xf]  ;;  %v3852_v17 = vld [vmem:[#allocation2 + $0x1b8] sm:$0xf0]  ;;  %v4945_v28 = vld [vmem:[#allocation2 + $0x1a4] sm:$0xf] }
 0x160   : > { %v5850_v43 = vpop.f32.mrf.mxu0  ;;  %v3844_v29 = vld [vmem:[#allocation2 + $0x1a8] sm:$0xf0] }
 0x161   : > { %v948_v48 = vadd.f32 %v5850_v43, %v722_v23  ;;  %v4955_v23 = vld [vmem:[#allocation2 + $0x1f4] sm:$0xf] }
 0x163   : > { %v966_v59 = vmax.f32 %v948_v48, 0.0  ;;  %v3879_v48 = vor.u32 %v4953_v38, %v3876_v9  ;;  %v3834_v38 = vld [vmem:[#allocation2 + $0x190] sm:$0xf]  ;;  %v3922_v9 = vld [vmem:[#allocation2 + $0x40] sm:$0xf] }
 0x165   : > { %v869_v57 = vpop.f32.mrf.mxu2  ;;  %v934_v58 = vpop.f32.mrf.mxu3  ;;  %v1036_v50 = vperm.slane %v966_v59, 0 }
 0x166   : > { %v935_v62 = vadd.f32 %v934_v58, %v721_v51  ;;  %v870_v5 = vadd.f32 %v869_v57, %v716_v42  ;;  %v3811_v51 = vor.u32 %v4938_v37, %v3810_v36  ;;  %v4936_v42 = vld [vmem:[#allocation2 + $0x154] sm:$0xf0]  ;;  %v3804_v57 = vld [vmem:[#allocation2 + $0x158] sm:$0xf0]  ;;  %v1004_v58 = vadd.f32 %v1002_v55, %v995_v44  ;;  %v3874_v36 = vld [vmem:[#allocation2 + $0x1e0] sm:$0xf] }
 0x167   : > { %v3807_v63 = vor.u32 %v4935_v56, %v3804_v57  ;;  %v1038_v22 = vsel %vm1032_vm10, %v1036_v50, 0.0  ;;  %v4954_v37 = vld [vmem:[#allocation2 + $0x1e4] sm:$0xf0]  ;;  %v3770_v44 = vld [vmem:[#allocation2 + $0x110] sm:$0xf] }
 0x168   : > { %v965_v7 = vmax.f32 %v935_v62, 0.0  ;;  %v949_v8 = vpop.f32.mrf.mxu0  ;;  %v960_v18 = vmax.f32 %v870_v5, 0.0  ;;  %v3803_v62 = vor.u32 %v4936_v42, %v3802_v53  ;;  %v4933_v5 = vld [vmem:[#allocation2 + $0x144] sm:$0xf]  ;;  %v3875_v47 = vor.u32 %v4954_v37, %v3874_v36  ;;  %v4952_v53 = vld [vmem:[#allocation2 + $0x1d4] sm:$0xf0] }
 0x169   : > { %v1020_v8 = vsel %vm1014_vm8, %v1018_v6, 0.0  ;;  %v4951_v42 = vld [vmem:[#allocation2 + $0x1d4] sm:$0xf]  ;;  %v3868_v55 = vld [vmem:[#allocation2 + $0x1d8] sm:$0xf0]  ;;  %v3847_v37 = vor.u32 %v4945_v28, %v3844_v29 }
 0x16a   : > { %v1035_v14 = vperm.slane %v965_v7, 0  ;;  %v1009_v39 = vperm.slane %v960_v18, 0  ;;  %v3796_v7 = vld [vmem:[#allocation2 + $0x148] sm:$0xf0]  ;;  %v3762_v56 = vld [vmem:[#allocation2 + $0x100] sm:$0xf] }
 0x16b   : > { %v3799_v13 = vor.u32 %v4933_v5, %v3796_v7  ;;  %v3764_v6 = vld [vmem:[#allocation2 + $0x108] sm:$0xf0]  ;;  %v4907_v7 = vld [vmem:[#allocation2 + $0x74] sm:$0xf] }
 0x16c   : > { %v1037_v19 = vsel %vm1032_vm10, %v1035_v14, 0.0  ;;  %v1011_v54 = vsel %vm1005_vm7, %v1009_v39, 0.0  ;;  %v4932_v14 = vld [vmem:[#allocation2 + $0x134] sm:$0xf0] }
 0x16d   : > { %v1039_v24 = vadd.f32 %v1037_v19, %v1030_v15  ;;  %v871_v25 = vpop.f32.mrf.mxu2  ;;  %v936_v26 = vpop.f32.mrf.mxu3  ;;  %v1013_v61 = vadd.f32 %v1011_v54, %v1004_v58  ;;  %v4926_v58 = vld [vmem:[#allocation2 + $0x104] sm:$0xf0] }
 0x16e   : > { %v3787_v26 = vor.u32 %v4932_v14, %v3786_v1  ;;  %v3763_v5 = vor.u32 %v4926_v58, %v3762_v56  ;;  %v3938_v1 = vld [vmem:[#allocation2 + $0x60] sm:$0xf]  ;;  %v4906_v14 = vld [vmem:[#allocation2 + $0x64] sm:$0xf0]  ;;  %v3828_v56 = vld [vmem:[#allocation2 + $0x188] sm:$0xf0] }
 0x16f   : > { %v5881_v33 = vpack.c.bf16 %v1039_v24, %v1039_v24  ;;  %v1022_v11 = vadd.f32 %v1020_v8, %v1013_v61  ;;  %v3884_v24 = vld [vmem:[#allocation2 + $0x1f8] sm:$0xf0]  ;;  %v3858_v61 = vld [vmem:[#allocation2 + $0x1c0] sm:$0xf]  ;;  %v3939_v21 = vor.u32 %v4906_v14, %v3938_v1  ;;  %v4010_v58 = vld [vmem:[#allocation2 + $0xf0] sm:$0xf] }
 0x170   : > { %v3887_v32 = vor.u32 %v4955_v23, %v3884_v24  ;;  %v3948_v8 = vld [vmem:[#allocation2 + $0x78] sm:$0xf0]  ;;  %v3855_v23 = vor.u32 %v4947_v16, %v3852_v17  ;;  %v3842_v24 = vld [vmem:[#allocation2 + $0x1a0] sm:$0xf]  ;;  %v3908_v1 = vld [vmem:[#allocation2 + $0x28] sm:$0xf0] }
 0x171   : > { %v1057_v4 = vsel %vm492_vm0, %v5881_v33, 0  ;;  %v3994_v17 = vld [vmem:[#allocation2 + $0xd0] sm:$0xf] }
 0x172   : > { %1069 = vmatpush.bf16.msrb.mxu1 %v1057_v4  ;;  %1100 = vmatpush.bf16.msra.mxu3 %v1057_v4  ;;  %v4928_v4 = vld [vmem:[#allocation2 + $0x114] sm:$0xf0] }
 0x173   : > { %v3771_v54 = vor.u32 %v4928_v4, %v3770_v44  ;;  %v3836_v44 = vld [vmem:[#allocation2 + $0x198] sm:$0xf0] }
 0x175   : > { %v921_v43 = vpop.f32.mrf.mxu2  ;;  %3756 = vmatmul.msk.bf16.vlgmr.msrb.gmra.mxu1 %vm488_vm1, %v5885_v45  ;;  %3758 = vmatmul.msk.bf16.vlgmr.msra.gmra.mxu3 %vm488_vm1, %v5887_v46 }
 0x176   : > { %1346 = vmatpush.bf16.msra.mxu1 %v3819_v34  ;;  %1372 = vmatpush.bf16.msrb.mxu3 %v3823_v35  ;;  %v922_v60 = vadd.f32 %v921_v43, %v720_v49  ;;  %v4929_v34 = vld [vmem:[#allocation2 + $0x124] sm:$0xf]  ;;  %v3780_v35 = vld [vmem:[#allocation2 + $0x128] sm:$0xf0]  ;;  %v4927_v49 = vld [vmem:[#allocation2 + $0x114] sm:$0xf] }
 0x177   : > { %v3783_v41 = vor.u32 %v4929_v34, %v3780_v35  ;;  %v4925_v43 = vld [vmem:[#allocation2 + $0x104] sm:$0xf]  ;;  %v3932_v34 = vld [vmem:[#allocation2 + $0x58] sm:$0xf0] }
 0x178   : > { %v964_v3 = vmax.f32 %v922_v60, 0.0  ;;  %v3871_v60 = vor.u32 %v4951_v42, %v3868_v55  ;;  %v3767_v50 = vor.u32 %v4925_v43, %v3764_v6  ;;  %v3914_v42 = vld [vmem:[#allocation2 + $0x30] sm:$0xf]  ;;  %v4900_v55 = vld [vmem:[#allocation2 + $0x34] sm:$0xf0] }
 0x179   : > { %v4924_v43 = vld [vmem:[#allocation2 + $0xf4] sm:$0xf0]  ;;  %v4923_v6 = vld [vmem:[#allocation2 + $0xf4] sm:$0xf] }
 0x17a   : > { %1347 = vmatpush.bf16.msra.mxu1 %v3811_v51  ;;  %1373 = vmatpush.bf16.msrb.mxu3 %v3815_v52  ;;  %v1027_v10 = vperm.slane %v964_v3, 0  ;;  %v3772_v51 = vld [vmem:[#allocation2 + $0x118] sm:$0xf0]  ;;  %v3866_v52 = vld [vmem:[#allocation2 + $0x1d0] sm:$0xf] }
 0x17b   : > { %v3775_v57 = vor.u32 %v4927_v49, %v3772_v51  ;;  %v3867_v59 = vor.u32 %v4952_v53, %v3866_v52  ;;  %v3860_v3 = vld [vmem:[#allocation2 + $0x1c8] sm:$0xf0]  ;;  %v3826_v49 = vld [vmem:[#allocation2 + $0x180] sm:$0xf]  ;;  %v4942_v53 = vld [vmem:[#allocation2 + $0x184] sm:$0xf0] }
 0x17c   : > { %v1029_v15 = vsel %vm1023_vm9, %v1027_v10, 0.0 }
 0x17d   : > { %v1031_v18 = vadd.f32 %v1029_v15, %v1022_v11  ;;  %v923_v19 = vpop.f32.mrf.mxu2  ;;  %v3859_v11 = vor.u32 %v4950_v0, %v3858_v61  ;;  %v4948_v15 = vld [vmem:[#allocation2 + $0x1b4] sm:$0xf0]  ;;  %v4899_v61 = vld [vmem:[#allocation2 + $0x34] sm:$0xf] }
 0x17e   : > { %1348 = vmatpush.bf16.msra.mxu1 %v3803_v62  ;;  %1374 = vmatpush.bf16.msrb.mxu3 %v3807_v63  ;;  %v3946_v62 = vld [vmem:[#allocation2 + $0x70] sm:$0xf]  ;;  %v4908_v63 = vld [vmem:[#allocation2 + $0x74] sm:$0xf0]  ;;  %v4905_v19 = vld [vmem:[#allocation2 + $0x64] sm:$0xf] }
 0x17f   : > { %v1040_v25 = vadd.f32 %v1038_v22, %v1031_v18  ;;  %v3947_v10 = vor.u32 %v4908_v63, %v3946_v62  ;;  %v3951_v18 = vor.u32 %v4907_v7, %v3948_v8  ;;  %v3916_v62 = vld [vmem:[#allocation2 + $0x38] sm:$0xf0]  ;;  %v3827_v63 = vor.u32 %v4942_v53, %v3826_v49  ;;  %v3906_v7 = vld [vmem:[#allocation2 + $0x20] sm:$0xf]  ;;  %v4898_v8 = vld [vmem:[#allocation2 + $0x24] sm:$0xf0] }
 0x180   : > { %v3907_v14 = vor.u32 %v4898_v8, %v3906_v7  ;;  %v3980_v53 = vld [vmem:[#allocation2 + $0xb8] sm:$0xf0]  ;;  %v4967_v7 = vld [vmem:[#allocation2 + $0x254] sm:$0xf] }
 0x181   : > { %v5905_v30 = vpack.c.bf16 %v1040_v25, %v1040_v25  ;;  %v3930_v25 = vld [vmem:[#allocation2 + $0x50] sm:$0xf] }
 0x182   : > { %1349 = vmatpush.bf16.msra.mxu1 %v3795_v12  ;;  %1375 = vmatpush.bf16.msrb.mxu3 %v3799_v13  ;;  %v3863_v12 = vor.u32 %v4949_v2, %v3860_v3  ;;  %v3850_v13 = vld [vmem:[#allocation2 + $0x1b0] sm:$0xf]  ;;  %v4011_v2 = vor.u32 %v4924_v43, %v4010_v58  ;;  %v4969_v58 = vld [vmem:[#allocation2 + $0x264] sm:$0xf] }
 0x183   : > { %v1060_v39 = vsel %vm492_vm0, %v5905_v30, 0  ;;  %v3851_v22 = vor.u32 %v4948_v15, %v3850_v13  ;;  %v4897_v13 = vld [vmem:[#allocation2 + $0x24] sm:$0xf] }
 0x184   : > { %1082 = vmatpush.bf16.msrb.mxu2 %v1060_v39  ;;  %1113 = vmatpush.bf16.msrb.mxu0 %v1060_v39  ;;  %v4902_v39 = vld [vmem:[#allocation2 + $0x44] sm:$0xf0] }
 0x186   : > { %1350 = vmatpush.bf16.msra.mxu1 %v3787_v26  ;;  %1376 = vmatpush.bf16.msrb.mxu3 %v3791_v27  ;;  %v4904_v26 = vld [vmem:[#allocation2 + $0x54] sm:$0xf0]  ;;  %v4946_v27 = vld [vmem:[#allocation2 + $0x1a4] sm:$0xf0] }
 0x187   : > { %3757 = vmatmul.msk.bf16.vlgmr.msrb.gmra.mxu2 %vm488_vm1, %v5885_v45  ;;  %3759 = vmatmul.msk.bf16.vlgmr.msrb.gmra.mxu0 %vm488_vm1, %v5887_v46  ;;  %v3931_v35 = vor.u32 %v4904_v26, %v3930_v25  ;;  %v3843_v36 = vor.u32 %v4946_v27, %v3842_v24  ;;  %v4895_v24 = vld [vmem:[#allocation2 + $0x14] sm:$0xf]  ;;  %v3900_v25 = vld [vmem:[#allocation2 + $0x18] sm:$0xf0]  ;;  %v3986_v27 = vld [vmem:[#allocation2 + $0xc0] sm:$0xf] }
 0x188   : > { %1359 = vmatpush.bf16.msra.mxu2 %v3883_v31  ;;  %1385 = vmatpush.bf16.msra.mxu0 %v3887_v32  ;;  %v3943_v31 = vor.u32 %v4905_v19, %v3940_v20  ;;  %v4903_v32 = vld [vmem:[#allocation2 + $0x54] sm:$0xf]  ;;  %v4896_v19 = vld [vmem:[#allocation2 + $0x14] sm:$0xf0]  ;;  %v3911_v20 = vor.u32 %v4897_v13, %v3908_v1 }
 0x189   : > { %v3935_v4 = vor.u32 %v4903_v32, %v3932_v34  ;;  %v3890_v32 = vld [vmem:[#allocation2] sm:$0xf]  ;;  %v4894_v34 = vld [vmem:[#allocation2 + $0x4] sm:$0xf0]  ;;  %v4911_v1 = vld [vmem:[#allocation2 + $0x94] sm:$0xf] }
 0x18a   : > { %1351 = vmatpush.bf16.msra.mxu1 %v3779_v40  ;;  %1377 = vmatpush.bf16.msrb.mxu3 %v3783_v41  ;;  %v4944_v40 = vld [vmem:[#allocation2 + $0x194] sm:$0xf0]  ;;  %v4943_v41 = vld [vmem:[#allocation2 + $0x194] sm:$0xf] }
 0x18b   : > { %v3835_v51 = vor.u32 %v4944_v40, %v3834_v38  ;;  %v3839_v52 = vor.u32 %v4943_v41, %v3836_v44  ;;  %v4893_v38 = vld [vmem:[#allocation2 + $0x4] sm:$0xf]  ;;  %v3891_v40 = vor.u32 %v4894_v34, %v3890_v32  ;;  %v4971_v41 = vld [vmem:[#allocation2 + $0x274] sm:$0xf]  ;;  %v4076_v44 = vld [vmem:[#allocation2 + $0x278] sm:$0xf0] }
 0x18c   : > { %1360 = vmatpush.bf16.msra.mxu2 %v3875_v47  ;;  %1386 = vmatpush.bf16.msra.mxu0 %v3879_v48  ;;  %v4901_v47 = vld [vmem:[#allocation2 + $0x44] sm:$0xf]  ;;  %v3924_v48 = vld [vmem:[#allocation2 + $0x48] sm:$0xf0]  ;;  %v4987_v32 = vld [vmem:[#allocation2 + $0x2f4] sm:$0xf] }
 0x18d   : > { %v4140_v34 = vld [vmem:[#allocation2 + $0x2f8] sm:$0xf0] }
 0x18e   : > { %1352 = vmatpush.bf16.msra.mxu1 %v3771_v54  ;;  %1378 = vmatpush.bf16.msrb.mxu3 %v3775_v57  ;;  %v4941_v54 = vld [vmem:[#allocation2 + $0x184] sm:$0xf]  ;;  %v3927_v57 = vor.u32 %v4901_v47, %v3924_v48  ;;  %v3978_v48 = vld [vmem:[#allocation2 + $0xb0] sm:$0xf] }
 0x18f   : > { %v3831_v0 = vor.u32 %v4941_v54, %v3828_v56  ;;  %v4066_v56 = vld [vmem:[#allocation2 + $0x260] sm:$0xf] }
 0x190   : > { %1361 = vmatpush.bf16.msra.mxu2 %v3867_v59  ;;  %1387 = vmatpush.bf16.msra.mxu0 %v3871_v60  ;;  %v4012_v59 = vld [vmem:[#allocation2 + $0xf8] sm:$0xf0]  ;;  %v3915_v60 = vor.u32 %v4900_v55, %v3914_v42  ;;  %v4079_v42 = vor.u32 %v4971_v41, %v4076_v44  ;;  %v4985_v41 = vld [vmem:[#allocation2 + $0x2e4] sm:$0xf] }
 0x191   : > { %v4015_v3 = vor.u32 %v4923_v6, %v4012_v59  ;;  %v4068_v6 = vld [vmem:[#allocation2 + $0x268] sm:$0xf0]  ;;  %v3970_v59 = vld [vmem:[#allocation2 + $0xa0] sm:$0xf] }
 0x192   : > { %1353 = vmatpush.bf16.msra.mxu1 %v3763_v5  ;;  %1379 = vmatpush.bf16.msrb.mxu3 %v3767_v50  ;;  %v4002_v5 = vld [vmem:[#allocation2 + $0xe0] sm:$0xf]  ;;  %v3919_v50 = vor.u32 %v4899_v61, %v3916_v62  ;;  %v4071_v61 = vor.u32 %v4969_v58, %v4068_v6  ;;  %v4026_v58 = vld [vmem:[#allocation2 + $0x210] sm:$0xf] }
 0x194   : > { %1362 = vmatpush.bf16.msra.mxu2 %v3859_v11  ;;  %1388 = vmatpush.bf16.msra.mxu0 %v3863_v12  ;;  %v4921_v11 = vld [vmem:[#allocation2 + $0xe4] sm:$0xf]  ;;  %v4004_v12 = vld [vmem:[#allocation2 + $0xe8] sm:$0xf0] }
 0x195   : > { %1354 = vmatmul.bf16.vlgmr.msra.gmra.mxu1 %v5881_v33  ;;  %1380 = vmatmul.bf16.vlgmr.msrb.gmra.mxu3 %v5881_v33  ;;  %v3923_v33 = vor.u32 %v4902_v39, %v3922_v9  ;;  %v4007_v16 = vor.u32 %v4921_v11, %v4004_v12  ;;  %v3892_v9 = vld [vmem:[#allocation2 + $0x8] sm:$0xf0]  ;;  %v4074_v39 = vld [vmem:[#allocation2 + $0x270] sm:$0xf]  ;;  %v4912_v11 = vld [vmem:[#allocation2 + $0x94] sm:$0xf0] }
 0x196   : > { %1558 = vmatpush.bf16.msrb.mxu1 %v3947_v10  ;;  %1584 = vmatpush.bf16.msra.mxu3 %v3951_v18  ;;  %v4922_v10 = vld [vmem:[#allocation2 + $0xe4] sm:$0xf0]  ;;  %v3898_v18 = vld [vmem:[#allocation2 + $0x10] sm:$0xf]  ;;  %v3895_v49 = vor.u32 %v4893_v38, %v3892_v9  ;;  %v4963_v38 = vld [vmem:[#allocation2 + $0x234] sm:$0xf] }
 0x197   : > { %v4003_v15 = vor.u32 %v4922_v10, %v4002_v5  ;;  %v3899_v26 = vor.u32 %v4896_v19, %v3898_v18  ;;  %v4968_v5 = vld [vmem:[#allocation2 + $0x254] sm:$0xf0]  ;;  %v3962_v10 = vld [vmem:[#allocation2 + $0x90] sm:$0xf]  ;;  %v4965_v18 = vld [vmem:[#allocation2 + $0x244] sm:$0xf] }
 0x198   : > { %1363 = vmatpush.bf16.msra.mxu2 %v3851_v22  ;;  %1389 = vmatpush.bf16.msra.mxu0 %v3855_v23  ;;  %v4919_v22 = vld [vmem:[#allocation2 + $0xd4] sm:$0xf]  ;;  %v3996_v23 = vld [vmem:[#allocation2 + $0xd8] sm:$0xf0]  ;;  %v3963_v13 = vor.u32 %v4912_v11, %v3962_v10  ;;  %v4052_v19 = vld [vmem:[#allocation2 + $0x248] sm:$0xf0] }
 0x199   : > { %v3999_v29 = vor.u32 %v4919_v22, %v3996_v23  ;;  %v4910_v22 = vld [vmem:[#allocation2 + $0x84] sm:$0xf0]  ;;  %v4909_v23 = vld [vmem:[#allocation2 + $0x84] sm:$0xf]  ;;  %v4044_v9 = vld [vmem:[#allocation2 + $0x238] sm:$0xf0] }
 0x19a   : > { %1559 = vmatpush.bf16.msrb.mxu1 %v3939_v21  ;;  %1585 = vmatpush.bf16.msra.mxu3 %v3943_v31  ;;  %v4920_v21 = vld [vmem:[#allocation2 + $0xd4] sm:$0xf0]  ;;  %v4918_v31 = vld [vmem:[#allocation2 + $0xc4] sm:$0xf0]  ;;  %v4047_v44 = vor.u32 %v4963_v38, %v4044_v9  ;;  %v4957_v11 = vld [vmem:[#allocation2 + $0x204] sm:$0xf] }
 0x19b   : > { %v3995_v28 = vor.u32 %v4920_v21, %v3994_v17  ;;  %v4966_v17 = vld [vmem:[#allocation2 + $0x244] sm:$0xf0]  ;;  %v3954_v21 = vld [vmem:[#allocation2 + $0x80] sm:$0xf]  ;;  %v4973_v38 = vld [vmem:[#allocation2 + $0x284] sm:$0xf] }
 0x19c   : > { %1364 = vmatpush.bf16.msra.mxu2 %v3843_v36  ;;  %1390 = vmatpush.bf16.msra.mxu0 %v3847_v37  ;;  %v4917_v36 = vld [vmem:[#allocation2 + $0xc4] sm:$0xf]  ;;  %v3988_v37 = vld [vmem:[#allocation2 + $0xc8] sm:$0xf0]  ;;  %v4958_v10 = vld [vmem:[#allocation2 + $0x204] sm:$0xf0] }
 0x19d   : > { %v3991_v47 = vor.u32 %v4917_v36, %v3988_v37  ;;  %v4143_v36 = vor.u32 %v4987_v32, %v4140_v34  ;;  %v4964_v37 = vld [vmem:[#allocation2 + $0x234] sm:$0xf0]  ;;  %v4092_v34 = vld [vmem:[#allocation2 + $0x298] sm:$0xf0] }
 0x19e   : > { %1560 = vmatpush.bf16.msrb.mxu1 %v3931_v35  ;;  %1586 = vmatpush.bf16.msra.mxu3 %v3935_v4  ;;  %v3903_v35 = vor.u32 %v4895_v24, %v3900_v25  ;;  %v3987_v4 = vor.u32 %v4918_v31, %v3986_v27  ;;  %v4055_v24 = vor.u32 %v4965_v18, %v4052_v19  ;;  %v4138_v27 = vld [vmem:[#allocation2 + $0x2f0] sm:$0xf]  ;;  %v4108_v18 = vld [vmem:[#allocation2 + $0x2b8] sm:$0xf0] }
 0x19f   : > { %v3955_v25 = vor.u32 %v4910_v22, %v3954_v21  ;;  %v4978_v21 = vld [vmem:[#allocation2 + $0x2a4] sm:$0xf0]  ;;  %v4977_v22 = vld [vmem:[#allocation2 + $0x2a4] sm:$0xf] }
 0x1a0   : > { %1365 = vmatpush.bf16.msra.mxu2 %v3835_v51  ;;  %1391 = vmatpush.bf16.msra.mxu0 %v3839_v52  ;;  %v4916_v51 = vld [vmem:[#allocation2 + $0xb4] sm:$0xf0]  ;;  %v4915_v52 = vld [vmem:[#allocation2 + $0xb4] sm:$0xf] }
 0x1a1   : > { %v3979_v55 = vor.u32 %v4916_v51, %v3978_v48  ;;  %v3983_v54 = vor.u32 %v4915_v52, %v3980_v53  ;;  %v4962_v48 = vld [vmem:[#allocation2 + $0x224] sm:$0xf0]  ;;  %v4036_v51 = vld [vmem:[#allocation2 + $0x228] sm:$0xf0]  ;;  %v4122_v53 = vld [vmem:[#allocation2 + $0x2d0] sm:$0xf] }
 0x1a2   : > { %1561 = vmatpush.bf16.msrb.mxu1 %v3923_v33  ;;  %1587 = vmatpush.bf16.msra.mxu3 %v3927_v57  ;;  %v4970_v57 = vld [vmem:[#allocation2 + $0x264] sm:$0xf0] }
 0x1a3   : > { %v4067_v43 = vor.u32 %v4970_v57, %v4066_v56  ;;  %v4124_v56 = vld [vmem:[#allocation2 + $0x2d8] sm:$0xf0] }
 0x1a4   : > { %1366 = vmatpush.bf16.msra.mxu2 %v3827_v63  ;;  %1392 = vmatpush.bf16.msra.mxu0 %v3831_v0  ;;  %v4913_v63 = vld [vmem:[#allocation2 + $0xa4] sm:$0xf]  ;;  %v3972_v0 = vld [vmem:[#allocation2 + $0xa8] sm:$0xf0] }
 0x1a6   : > { %1562 = vmatpush.bf16.msrb.mxu1 %v3915_v60  ;;  %1588 = vmatpush.bf16.msra.mxu3 %v3919_v50  ;;  %v4914_v60 = vld [vmem:[#allocation2 + $0xa4] sm:$0xf0]  ;;  %v4060_v50 = vld [vmem:[#allocation2 + $0x258] sm:$0xf0] }
 0x1a7   : > { %1367 = vmatmul.bf16.vlgmr.msra.gmra.mxu2 %v5905_v30  ;;  %1393 = vmatmul.bf16.vlgmr.msra.gmra.mxu0 %v5905_v30  ;;  %v4972_v30 = vld [vmem:[#allocation2 + $0x274] sm:$0xf0]  ;;  %v3971_v62 = vor.u32 %v4914_v60, %v3970_v59  ;;  %v4063_v12 = vor.u32 %v4967_v7, %v4060_v50  ;;  %v4959_v59 = vld [vmem:[#allocation2 + $0x214] sm:$0xf]  ;;  %v4028_v60 = vld [vmem:[#allocation2 + $0x218] sm:$0xf0] }
 0x1a8   : > { %1571 = vmatpush.bf16.msrb.mxu2 %v4011_v2  ;;  %1597 = vmatpush.bf16.msrb.mxu0 %v4015_v3  ;;  %v4075_v33 = vor.u32 %v4972_v30, %v4074_v39  ;;  %v3975_v2 = vor.u32 %v4913_v63, %v3972_v0  ;;  %v4058_v3 = vld [vmem:[#allocation2 + $0x250] sm:$0xf]  ;;  %v4130_v30 = vld [vmem:[#allocation2 + $0x2e0] sm:$0xf]  ;;  %v4031_v63 = vor.u32 %v4959_v59, %v4028_v60  ;;  %v4116_v7 = vld [vmem:[#allocation2 + $0x2c8] sm:$0xf0] }
 0x1a9   : > { %v4059_v8 = vor.u32 %v4968_v5, %v4058_v3  ;;  %v4114_v0 = vld [vmem:[#allocation2 + $0x2c0] sm:$0xf]  ;;  %v4981_v3 = vld [vmem:[#allocation2 + $0x2c4] sm:$0xf] }
 0x1aa   : > { %1563 = vmatpush.bf16.msrb.mxu1 %v3907_v14  ;;  %1589 = vmatpush.bf16.msra.mxu3 %v3911_v20  ;;  %v3964_v14 = vld [vmem:[#allocation2 + $0x98] sm:$0xf0]  ;;  %v4018_v50 = vld [vmem:[#allocation2 + $0x200] sm:$0xf] }
 0x1ac   : > { %1572 = vmatpush.bf16.msrb.mxu2 %v4003_v15  ;;  %1598 = vmatpush.bf16.msrb.mxu0 %v4007_v16  ;;  %v4050_v15 = vld [vmem:[#allocation2 + $0x240] sm:$0xf]  ;;  %v3967_v16 = vor.u32 %v4911_v1, %v3964_v14  ;;  %v4106_v14 = vld [vmem:[#allocation2 + $0x2b0] sm:$0xf] }
 0x1ad   : > { %v4051_v20 = vor.u32 %v4966_v17, %v4050_v15  ;;  %v4980_v15 = vld [vmem:[#allocation2 + $0x2b4] sm:$0xf0] }
 0x1ae   : > { %1564 = vmatpush.bf16.msrb.mxu1 %v3899_v26  ;;  %1590 = vmatpush.bf16.msra.mxu3 %v3903_v35  ;;  %v3956_v26 = vld [vmem:[#allocation2 + $0x88] sm:$0xf0]  ;;  %v4042_v35 = vld [vmem:[#allocation2 + $0x230] sm:$0xf]  ;;  %v4107_v17 = vor.u32 %v4980_v15, %v4106_v14 }
 0x1af   : > { %v4043_v39 = vor.u32 %v4964_v37, %v4042_v35  ;;  %v4974_v37 = vld [vmem:[#allocation2 + $0x284] sm:$0xf0] }
 0x1b0   : > { %1573 = vmatpush.bf16.msrb.mxu2 %v3995_v28  ;;  %1599 = vmatpush.bf16.msrb.mxu0 %v3999_v29  ;;  %v4988_v28 = vld [vmem:[#allocation2 + $0x2f4] sm:$0xf0]  ;;  %v3959_v29 = vor.u32 %v4909_v23, %v3956_v26 }
 0x1b1   : > { %v4139_v31 = vor.u32 %v4988_v28, %v4138_v27  ;;  %v4090_v28 = vld [vmem:[#allocation2 + $0x290] sm:$0xf] }
 0x1b2   : > { %1565 = vmatpush.bf16.msrb.mxu1 %v3891_v40  ;;  %1591 = vmatpush.bf16.msra.mxu3 %v3895_v49  ;;  %v4986_v40 = vld [vmem:[#allocation2 + $0x2e4] sm:$0xf0] }
 0x1b3   : > { %v4131_v49 = vor.u32 %v4986_v40, %v4130_v30  ;;  %v4084_v30 = vld [vmem:[#allocation2 + $0x288] sm:$0xf0] }
 0x1b4   : > { %1574 = vmatpush.bf16.msrb.mxu2 %v3987_v4  ;;  %1600 = vmatpush.bf16.msrb.mxu0 %v3991_v47  ;;  %v4132_v4 = vld [vmem:[#allocation2 + $0x2e8] sm:$0xf0]  ;;  %v4034_v47 = vld [vmem:[#allocation2 + $0x220] sm:$0xf]  ;;  %v4087_v40 = vor.u32 %v4973_v38, %v4084_v30  ;;  %v4206_v30 = vld [vmem:[#allocation5 + $0x170] sm:$0xf] }
 0x1b5   : > { %v4135_v52 = vor.u32 %v4985_v41, %v4132_v4  ;;  %v4264_v38 = vld [vmem:[#allocation5 + $0x1e8] sm:$0xf0] }
 0x1b6   : > { %1803 = vmatpush.bf16.msra.mxu1 %v4075_v33  ;;  %1829 = vmatpush.bf16.msrb.mxu3 %v4079_v42  ;;  %v4961_v33 = vld [vmem:[#allocation2 + $0x224] sm:$0xf]  ;;  %v4984_v42 = vld [vmem:[#allocation2 + $0x2d4] sm:$0xf0] }
 0x1b7   : > { %v4039_v57 = vor.u32 %v4961_v33, %v4036_v51  ;;  %v4123_v6 = vor.u32 %v4984_v42, %v4122_v53 }
 0x1b8   : > { %1575 = vmatpush.bf16.msrb.mxu2 %v3979_v55  ;;  %1601 = vmatpush.bf16.msrb.mxu0 %v3983_v54  ;;  %v4035_v55 = vor.u32 %v4962_v48, %v4034_v47  ;;  %v4983_v54 = vld [vmem:[#allocation2 + $0x2d4] sm:$0xf] }
 0x1ba   : > { %1804 = vmatpush.bf16.msra.mxu1 %v4067_v43  ;;  %1830 = vmatpush.bf16.msrb.mxu3 %v4071_v61  ;;  %v4960_v43 = vld [vmem:[#allocation2 + $0x214] sm:$0xf0]  ;;  %v4127_v61 = vor.u32 %v4983_v54, %v4124_v56 }
 0x1bc   : > { %1576 = vmatpush.bf16.msrb.mxu2 %v3971_v62  ;;  %1602 = vmatpush.bf16.msrb.mxu0 %v3975_v2  ;;  %v4027_v62 = vor.u32 %v4960_v43, %v4026_v58  ;;  %v4982_v2 = vld [vmem:[#allocation2 + $0x2c4] sm:$0xf0] }
 0x1bd   : > { %v4115_v5 = vor.u32 %v4982_v2, %v4114_v0 }
 0x1be   : > { %1805 = vmatpush.bf16.msra.mxu1 %v4059_v8  ;;  %1831 = vmatpush.bf16.msrb.mxu3 %v4063_v12  ;;  %v4119_v8 = vor.u32 %v4981_v3, %v4116_v7  ;;  %v4019_v12 = vor.u32 %v4958_v10, %v4018_v50 }
 0x1c0   : > { %1577 = vmatpush.bf16.msrb.mxu2 %v3963_v13  ;;  %1603 = vmatpush.bf16.msrb.mxu0 %v3967_v16  ;;  %v4020_v13 = vld [vmem:[#allocation2 + $0x208] sm:$0xf0]  ;;  %v4979_v16 = vld [vmem:[#allocation2 + $0x2b4] sm:$0xf] }
 0x1c1   : > { %v4023_v1 = vor.u32 %v4957_v11, %v4020_v13  ;;  %v4111_v19 = vor.u32 %v4979_v16, %v4108_v18  ;;  %v1857_v11 = vld [vmem:[%s6084_s6] sm:$0x3] }
 0x1c2   : > { %1806 = vmatpush.bf16.msra.mxu1 %v4051_v20  ;;  %1832 = vmatpush.bf16.msrb.mxu3 %v4055_v24  ;;  %v4098_v20 = vld [vmem:[#allocation2 + $0x2a0] sm:$0xf]  ;;  %v4100_v24 = vld [vmem:[#allocation2 + $0x2a8] sm:$0xf0]  ;;  %v1860_v15 = vperm.slane %v1857_v11, 1 }
 0x1c3   : > { %v4099_v23 = vor.u32 %v4978_v21, %v4098_v20  ;;  %v4103_v26 = vor.u32 %v4977_v22, %v4100_v24  ;;  %v5052_v21 = vld [vmem:[#allocation5 + $0x1f4] sm:$0xf0]  ;;  %v5051_v22 = vld [vmem:[#allocation5 + $0x1f4] sm:$0xf] }
 0x1c4   : > { %1578 = vmatpush.bf16.msrb.mxu2 %v3955_v25  ;;  %1604 = vmatpush.bf16.msrb.mxu0 %v3959_v29  ;;  %v4976_v29 = vld [vmem:[#allocation2 + $0x294] sm:$0xf0] }
 0x1c5   : > { %v4091_v32 = vor.u32 %v4976_v29, %v4090_v28 }
 0x1c6   : > { %1807 = vmatpush.bf16.msra.mxu1 %v4043_v39  ;;  %1833 = vmatpush.bf16.msrb.mxu3 %v4047_v44 }
 0x1c8   : > { %1816 = vmatpush.bf16.msra.mxu2 %v4139_v31  ;;  %1842 = vmatpush.bf16.msra.mxu0 %v4143_v36  ;;  %v4975_v31 = vld [vmem:[#allocation2 + $0x294] sm:$0xf]  ;;  %v4082_v36 = vld [vmem:[#allocation2 + $0x280] sm:$0xf] }
 0x1c9   : > { %v4095_v35 = vor.u32 %v4975_v31, %v4092_v34  ;;  %v4083_v39 = vor.u32 %v4974_v37, %v4082_v36  ;;  %v5050_v36 = vld [vmem:[#allocation5 + $0x1e4] sm:$0xf0]  ;;  %v5049_v37 = vld [vmem:[#allocation5 + $0x1e4] sm:$0xf] }
 0x1ca   : > { %1808 = vmatpush.bf16.msra.mxu1 %v4035_v55  ;;  %1834 = vmatpush.bf16.msrb.mxu3 %v4039_v57 }
 0x1cc   : > { %1817 = vmatpush.bf16.msra.mxu2 %v4131_v49  ;;  %1843 = vmatpush.bf16.msra.mxu0 %v4135_v52 }
 0x1ce   : > { %1809 = vmatpush.bf16.msra.mxu1 %v4027_v62  ;;  %1835 = vmatpush.bf16.msrb.mxu3 %v4031_v63 }
 0x1d0   : > { %1818 = vmatpush.bf16.msra.mxu2 %v4123_v6  ;;  %1844 = vmatpush.bf16.msra.mxu0 %v4127_v61 }
 0x1d2   : > { %1810 = vmatpush.bf16.msra.mxu1 %v4019_v12  ;;  %1836 = vmatpush.bf16.msrb.mxu3 %v4023_v1 }
 0x1d4   : > { %1819 = vmatpush.bf16.msra.mxu2 %v4115_v5  ;;  %1845 = vmatpush.bf16.msra.mxu0 %v4119_v8 }
 0x1d8   : > { %1820 = vmatpush.bf16.msra.mxu2 %v4107_v17  ;;  %1846 = vmatpush.bf16.msra.mxu0 %v4111_v19  ;;  %v4270_v19 = vld [vmem:[#allocation5 + $0x1f0] sm:$0xf] }
 0x1dc   : > { %1821 = vmatpush.bf16.msra.mxu2 %v4099_v23  ;;  %1847 = vmatpush.bf16.msra.mxu0 %v4103_v26  ;;  %v4272_v23 = vld [vmem:[#allocation5 + $0x1f8] sm:$0xf0] }
 0x1dd   : > { %v4275_v34 = vor.u32 %v5051_v22, %v4272_v23  ;;  %v4230_v23 = vld [vmem:[#allocation5 + $0x1a0] sm:$0xf] }
 0x1e0   : > { %1822 = vmatpush.bf16.msra.mxu2 %v4091_v32  ;;  %1848 = vmatpush.bf16.msra.mxu0 %v4095_v35  ;;  %v4271_v32 = vor.u32 %v5052_v21, %v4270_v19  ;;  %v4262_v35 = vld [vmem:[#allocation5 + $0x1e0] sm:$0xf]  ;;  %v5029_v19 = vld [vmem:[#allocation5 + $0x144] sm:$0xf] }
 0x1e4   : > { %1823 = vmatpush.bf16.msra.mxu2 %v4083_v39  ;;  %1849 = vmatpush.bf16.msra.mxu0 %v4087_v40  ;;  %v5036_v40 = vld [vmem:[#allocation5 + $0x174] sm:$0xf0] }
 0x1f2   : > { %v1071_v25 = vpop.f32.mrf.mxu1 }
 0x1f3   : > { %v1088_v27 = vpack.c.bf16 %v1071_v25, %v1071_v25 }
 0x1f5   : > { %1566 = vmatmul.bf16.vlgmr.msrb.gmra.mxu1 %v1088_v27  ;;  %1592 = vmatmul.bf16.vlgmr.msra.gmra.mxu3 %v1088_v27  ;;  %v1859_v27 = vperm.slane %v1857_v11, 0 }
 0x1f8   : > { %v1102_v9 = vpop.f32.mrf.mxu3 }
 0x1f9   : > { %v1119_v4 = vpack.c.bf16 %v1102_v9, %v1102_v9 }
 0x1fa   : > { %v1073_v41 = vpop.f32.mrf.mxu1 }
 0x1fb   : > { %v5035_v41 = vld [vmem:[#allocation5 + $0x174] sm:$0xf] }
 0x200   : > { %v1104_v44 = vpop.f32.mrf.mxu3 }
 0x201   : > { %v4208_v44 = vld [vmem:[#allocation5 + $0x178] sm:$0xf0] }
 0x204   : > { %v1115_v47 = vpop.f32.mrf.mxu0 }
 0x205   : > { %1811 = vmatmul.bf16.vlgmr.msra.gmra.mxu1 %v1119_v4  ;;  %1837 = vmatmul.bf16.vlgmr.msrb.gmra.mxu3 %v1119_v4  ;;  %v1120_v55 = vpack.c.bf16 %v1115_v47, %v1115_v47  ;;  %v4263_v47 = vor.u32 %v5050_v36, %v4262_v35  ;;  %v4176_v35 = vld [vmem:[#allocation5 + $0x138] sm:$0xf0] }
 0x20a   : > { %v1084_v48 = vpop.f32.mrf.mxu2 }
 0x20b   : > { %v1089_v49 = vpack.c.bf16 %v1084_v48, %v1084_v48  ;;  %v4267_v48 = vor.u32 %v5049_v37, %v4264_v38  ;;  %v4222_v38 = vld [vmem:[#allocation5 + $0x190] sm:$0xf] }
 0x20c   : > { %v1117_v33 = vpop.f32.mrf.mxu0 }
 0x20d   : > { %1579 = vmatmul.bf16.vlgmr.msrb.gmra.mxu2 %v1089_v49  ;;  %1605 = vmatmul.bf16.vlgmr.msrb.gmra.mxu0 %v1089_v49  ;;  %v4254_v33 = vld [vmem:[#allocation5 + $0x1d0] sm:$0xf] }
 0x212   : > { %v1355_v51 = vpop.f32.mrf.mxu1  ;;  %v1086_v52 = vpop.f32.mrf.mxu2 }
 0x218   : > { %v1381_v53 = vpop.f32.mrf.mxu3 }
 0x21a   : > { %v1357_v42 = vpop.f32.mrf.mxu1 }
 0x21b   : > { %v4211_v42 = vor.u32 %v5035_v41, %v4208_v44  ;;  %v4224_v41 = vld [vmem:[#allocation5 + $0x198] sm:$0xf0]  ;;  %v4166_v44 = vld [vmem:[#allocation5 + $0x120] sm:$0xf] }
 0x21d   : > { %1824 = vmatmul.bf16.vlgmr.msra.gmra.mxu2 %v1120_v55  ;;  %1850 = vmatmul.bf16.vlgmr.msra.gmra.mxu0 %v1120_v55  ;;  %v5047_v55 = vld [vmem:[#allocation5 + $0x1d4] sm:$0xf] }
 0x220   : > { %v1383_v54 = vpop.f32.mrf.mxu3 }
 0x221   : > { %v4256_v54 = vld [vmem:[#allocation5 + $0x1d8] sm:$0xf0] }
 0x224   : > { %v1394_v56 = vpop.f32.mrf.mxu0 }
 0x225   : > { %v1395_v57 = vadd.f32 %v1394_v56, %v1381_v53  ;;  %v4207_v53 = vor.u32 %v5036_v40, %v4206_v30  ;;  %v4198_v56 = vld [vmem:[#allocation5 + $0x160] sm:$0xf]  ;;  %v5039_v40 = vld [vmem:[#allocation5 + $0x194] sm:$0xf] }
 0x22a   : > { %v1368_v58 = vpop.f32.mrf.mxu2 }
 0x22b   : > { %v1369_v43 = vadd.f32 %v1368_v58, %v1355_v51  ;;  %v5048_v51 = vld [vmem:[#allocation5 + $0x1d4] sm:$0xf0]  ;;  %v5033_v58 = vld [vmem:[#allocation5 + $0x164] sm:$0xf] }
 0x22c   : > { %v1396_v6 = vpop.f32.mrf.mxu0 }
 0x232   : > { %v1370_v59 = vpop.f32.mrf.mxu2 }
 0x233   : > { %v4255_v59 = vor.u32 %v5048_v51, %v4254_v33  ;;  %v4214_v33 = vld [vmem:[#allocation5 + $0x180] sm:$0xf]  ;;  %v4227_v51 = vor.u32 %v5039_v40, %v4224_v41  ;;  %v5000_v40 = vld [vmem:[#allocation5 + $0x54] sm:$0xf0]  ;;  %v4320_v41 = vld [vmem:[#allocation5 + $0x58] sm:$0xf0] }
 0x272   : > { %v1567_v60 = vpop.f32.mrf.mxu1 }
 0x273   : > { %v1568_v17 = vadd.f32 %v1567_v60, %v1369_v43  ;;  %v4200_v43 = vld [vmem:[#allocation5 + $0x168] sm:$0xf0]  ;;  %v4259_v60 = vor.u32 %v5047_v55, %v4256_v54 }
 0x274   : > { %v4216_v55 = vld [vmem:[#allocation5 + $0x188] sm:$0xf0] }
 0x278   : > { %v1593_v61 = vpop.f32.mrf.mxu3 }
 0x279   : > { %v1594_v12 = vadd.f32 %v1593_v61, %v1395_v57  ;;  %v5034_v57 = vld [vmem:[#allocation5 + $0x164] sm:$0xf0]  ;;  %v4246_v61 = vld [vmem:[#allocation5 + $0x1c0] sm:$0xf] }
 0x27a   : > { %v1569_v62 = vpop.f32.mrf.mxu1 }
 0x27b   : > { %v5046_v62 = vld [vmem:[#allocation5 + $0x1c4] sm:$0xf0] }
 0x280   : > { %v1595_v63 = vpop.f32.mrf.mxu3 }
 0x281   : > { %v4199_v63 = vor.u32 %v5034_v57, %v4198_v56  ;;  %v4158_v57 = vld [vmem:[#allocation5 + $0x110] sm:$0xf] }
 0x282   : > { %v1812_v0 = vpop.f32.mrf.mxu1 }
 0x288   : > { %v1838_v2 = vpop.f32.mrf.mxu3 }
 0x28a   : > { %v1606_v3 = vpop.f32.mrf.mxu0  ;;  %v1814_v5 = vpop.f32.mrf.mxu1 }
 0x28b   : > { %v1607_v1 = vadd.f32 %v1606_v3, %v1594_v12  ;;  %v4248_v3 = vld [vmem:[#allocation5 + $0x1c8] sm:$0xf0]  ;;  %v4190_v5 = vld [vmem:[#allocation5 + $0x150] sm:$0xf] }
 0x28c   : > { %v4238_v12 = vld [vmem:[#allocation5 + $0x1b0] sm:$0xf] }
 0x290   : > { %v1580_v7 = vpop.f32.mrf.mxu2  ;;  %v1840_v8 = vpop.f32.mrf.mxu3 }
 0x291   : > { %v1581_v24 = vadd.f32 %v1580_v7, %v1568_v17  ;;  %v5032_v7 = vld [vmem:[#allocation5 + $0x154] sm:$0xf0]  ;;  %v5031_v8 = vld [vmem:[#allocation5 + $0x154] sm:$0xf]  ;;  %v4182_v17 = vld [vmem:[#allocation5 + $0x140] sm:$0xf] }
 0x292   : > { %v1608_v50 = vpop.f32.mrf.mxu0 }
 0x293   : > { %v4192_v50 = vld [vmem:[#allocation5 + $0x158] sm:$0xf0] }
 0x298   : > { %v1582_v10 = vpop.f32.mrf.mxu2 }
 0x299   : > { %v4247_v10 = vor.u32 %v5046_v62, %v4246_v61  ;;  %v5019_v62 = vld [vmem:[#allocation5 + $0xf4] sm:$0xf] }
 0x29a   : > { %v1851_v13 = vpop.f32.mrf.mxu0 }
 0x29b   : > { %v1852_v14 = vadd.f32 %v1851_v13, %v1838_v2  ;;  %v5045_v2 = vld [vmem:[#allocation5 + $0x1c4] sm:$0xf]  ;;  %v5044_v13 = vld [vmem:[#allocation5 + $0x1b4] sm:$0xf0] }
 0x29c   : > { %v4251_v11 = vor.u32 %v5045_v2, %v4248_v3  ;;  %v4239_v21 = vor.u32 %v5044_v13, %v4238_v12  ;;  %v4150_v2 = vld [vmem:[#allocation5 + $0x100] sm:$0xf]  ;;  %v4152_v12 = vld [vmem:[#allocation5 + $0x108] sm:$0xf0]  ;;  %v4334_v13 = vld [vmem:[#allocation5 + $0x70] sm:$0xf] }
 0x29d   : > { %v1856_v16 = vadd.f32 %v1852_v14, %v1607_v1  ;;  %v4191_v1 = vor.u32 %v5032_v7, %v4190_v5  ;;  %v4195_v14 = vor.u32 %v5031_v8, %v4192_v50  ;;  %v5022_v8 = vld [vmem:[#allocation5 + $0x104] sm:$0xf0]  ;;  %v4390_v50 = vld [vmem:[#allocation5 + $0xe0] sm:$0xf] }
 0x29f   : > { %v1864_v18 = vadd.f32 %v1860_v15, %v1856_v16  ;;  %v5043_v15 = vld [vmem:[#allocation5 + $0x1b4] sm:$0xf]  ;;  %v4240_v16 = vld [vmem:[#allocation5 + $0x1b8] sm:$0xf0] }
 0x2a0   : > { %v1825_v20 = vpop.f32.mrf.mxu2  ;;  %v4243_v22 = vor.u32 %v5043_v15, %v4240_v16  ;;  %v5003_v15 = vld [vmem:[#allocation5 + $0x74] sm:$0xf]  ;;  %v4336_v16 = vld [vmem:[#allocation5 + $0x78] sm:$0xf0] }
 0x2a1   : > { %v1866_v25 = vmax.f32 %v1864_v18, 0.0  ;;  %v1826_v26 = vadd.f32 %v1825_v20, %v1812_v0  ;;  %v4203_v0 = vor.u32 %v5033_v58, %v4200_v43  ;;  %v5030_v18 = vld [vmem:[#allocation5 + $0x144] sm:$0xf0]  ;;  %v4184_v20 = vld [vmem:[#allocation5 + $0x148] sm:$0xf0] }
 0x2a2   : > { %v1853_v28 = vpop.f32.mrf.mxu0  ;;  %v4398_v58 = vld [vmem:[#allocation5 + $0xf0] sm:$0xf]  ;;  %v5020_v43 = vld [vmem:[#allocation5 + $0xf4] sm:$0xf0] }
 0x2a3   : > { %v5920_v29 = vpack.c.bf16 %v1866_v25, %v1866_v25  ;;  %v1855_v31 = vadd.f32 %v1826_v26, %v1581_v24  ;;  %v5042_v24 = vld [vmem:[#allocation5 + $0x1a4] sm:$0xf0]  ;;  %v4183_v25 = vor.u32 %v5030_v18, %v4182_v17  ;;  %v4187_v26 = vor.u32 %v5029_v19, %v4184_v20  ;;  %v4232_v28 = vld [vmem:[#allocation5 + $0x1a8] sm:$0xf0]  ;;  %v5017_v18 = vld [vmem:[#allocation5 + $0xe4] sm:$0xf] }
 0x2a4   : > { %v4231_v36 = vor.u32 %v5042_v24, %v4230_v23  ;;  %v4399_v3 = vor.u32 %v5020_v43, %v4398_v58  ;;  %v4392_v19 = vld [vmem:[#allocation5 + $0xe8] sm:$0xf0]  ;;  %v4151_v20 = vor.u32 %v5022_v8, %v4150_v2  ;;  %v4339_v23 = vor.u32 %v5003_v15, %v4336_v16  ;;  %v4326_v24 = vld [vmem:[#allocation5 + $0x60] sm:$0xf]  ;;  %v5011_v58 = vld [vmem:[#allocation5 + $0xb4] sm:$0xf] }
 0x2a5   : > { %v1863_v9 = vadd.f32 %v1859_v27, %v1855_v31  ;;  %v1873_v39 = vsel %vm492_vm0, %v5920_v29, 0  ;;  %v5041_v27 = vld [vmem:[#allocation5 + $0x1a4] sm:$0xf]  ;;  %v4174_v31 = vld [vmem:[#allocation5 + $0x130] sm:$0xf] }
 0x2a6   : > { %1895 = vmatpush.bf16.msrb.mxu2 %v1873_v39  ;;  %1923 = vmatpush.bf16.msrb.mxu0 %v1873_v39  ;;  %v4235_v37 = vor.u32 %v5041_v27, %v4232_v28  ;;  %v5002_v27 = vld [vmem:[#allocation5 + $0x64] sm:$0xf0]  ;;  %v5001_v28 = vld [vmem:[#allocation5 + $0x64] sm:$0xf]  ;;  %v4368_v43 = vld [vmem:[#allocation5 + $0xb8] sm:$0xf0] }
 0x2a7   : > { %v1865_v4 = vmax.f32 %v1863_v9, 0.0  ;;  %v5040_v9 = vld [vmem:[#allocation5 + $0x194] sm:$0xf0]  ;;  %v4304_v2 = vld [vmem:[#allocation5 + $0x38] sm:$0xf0] }
 0x2a8   : > { %v1827_v49 = vpop.f32.mrf.mxu2  ;;  %v4296_v15 = vld [vmem:[#allocation5 + $0x28] sm:$0xf0] }
 0x2a9   : > { %v5924_v52 = vpack.c.bf16 %v1865_v4, %v1865_v4  ;;  %4145 = vmatmul.msk.bf16.vlgmr.msrb.gmra.mxu2 %vm488_vm1, %v5885_v45  ;;  %4147 = vmatmul.msk.bf16.vlgmr.msrb.gmra.mxu0 %vm488_vm1, %v5887_v46  ;;  %v5026_v4 = vld [vmem:[#allocation5 + $0x124] sm:$0xf0]  ;;  %v4223_v49 = vor.u32 %v5040_v9, %v4222_v38  ;;  %v4318_v9 = vld [vmem:[#allocation5 + $0x50] sm:$0xf] }
 0x2aa   : > { %2169 = vmatpush.bf16.msra.mxu2 %v4271_v32  ;;  %2195 = vmatpush.bf16.msra.mxu0 %v4275_v34  ;;  %v5028_v32 = vld [vmem:[#allocation5 + $0x134] sm:$0xf0]  ;;  %v5027_v34 = vld [vmem:[#allocation5 + $0x134] sm:$0xf]  ;;  %v4167_v54 = vor.u32 %v5026_v4, %v4166_v44  ;;  %v5013_v4 = vld [vmem:[#allocation5 + $0xc4] sm:$0xf] }
 0x2ab   : > { %v1870_v6 = vsel %vm492_vm0, %v5924_v52, 0  ;;  %v4175_v39 = vor.u32 %v5028_v32, %v4174_v31  ;;  %v4179_v30 = vor.u32 %v5027_v34, %v4176_v35  ;;  %v4328_v31 = vld [vmem:[#allocation5 + $0x68] sm:$0xf0]  ;;  %v4395_v32 = vor.u32 %v5017_v18, %v4392_v19  ;;  %v5015_v34 = vld [vmem:[#allocation5 + $0xd4] sm:$0xf] }
 0x2ac   : > { %1882 = vmatpush.bf16.msrb.mxu1 %v1870_v6  ;;  %1910 = vmatpush.bf16.msra.mxu3 %v1870_v6  ;;  %v5024_v6 = vld [vmem:[#allocation5 + $0x114] sm:$0xf0]  ;;  %v4384_v35 = vld [vmem:[#allocation5 + $0xd8] sm:$0xf0]  ;;  %v4331_v38 = vor.u32 %v5001_v28, %v4328_v31  ;;  %v4286_v19 = vld [vmem:[#allocation5 + $0x10] sm:$0xf] }
 0x2ad   : > { %v4159_v5 = vor.u32 %v5024_v6, %v4158_v57  ;;  %v4387_v44 = vor.u32 %v5015_v34, %v4384_v35  ;;  %v4352_v18 = vld [vmem:[#allocation5 + $0x98] sm:$0xf0]  ;;  %v5005_v31 = vld [vmem:[#allocation5 + $0x84] sm:$0xf]  ;;  %v4526_v34 = vld [vmem:[#allocation5 + $0x2f0] sm:$0xf] }
 0x2ae   : > { %2170 = vmatpush.bf16.msra.mxu2 %v4263_v47  ;;  %2196 = vmatpush.bf16.msra.mxu0 %v4267_v48  ;;  %v5025_v47 = vld [vmem:[#allocation5 + $0x124] sm:$0xf]  ;;  %v4168_v48 = vld [vmem:[#allocation5 + $0x128] sm:$0xf0]  ;;  %v5084_v35 = vld [vmem:[#allocation5 + $0x2f4] sm:$0xf0] }
 0x2af   : > { %4144 = vmatmul.msk.bf16.vlgmr.msrb.gmra.mxu1 %vm488_vm1, %v5885_v45  ;;  %4146 = vmatmul.msk.bf16.vlgmr.msra.gmra.mxu3 %vm488_vm1, %v5887_v46  ;;  %v4171_v56 = vor.u32 %v5025_v47, %v4168_v48  ;;  %v4376_v47 = vld [vmem:[#allocation5 + $0xc8] sm:$0xf0] }
 0x2b0   : > { %2156 = vmatpush.bf16.msra.mxu1 %v4207_v53  ;;  %2182 = vmatpush.bf16.msrb.mxu3 %v4211_v42  ;;  %v5038_v53 = vld [vmem:[#allocation5 + $0x184] sm:$0xf0]  ;;  %v5037_v42 = vld [vmem:[#allocation5 + $0x184] sm:$0xf]  ;;  %v4379_v57 = vor.u32 %v5013_v4, %v4376_v47  ;;  %v4462_v4 = vld [vmem:[#allocation5 + $0x270] sm:$0xf] }
 0x2b1   : > { %v4215_v61 = vor.u32 %v5038_v53, %v4214_v33  ;;  %v4366_v53 = vld [vmem:[#allocation5 + $0xb0] sm:$0xf]  ;;  %v5068_v47 = vld [vmem:[#allocation5 + $0x274] sm:$0xf0] }
 0x2b2   : > { %2171 = vmatpush.bf16.msra.mxu2 %v4255_v59  ;;  %2197 = vmatpush.bf16.msra.mxu0 %v4259_v60  ;;  %v5023_v59 = vld [vmem:[#allocation5 + $0x114] sm:$0xf]  ;;  %v4160_v60 = vld [vmem:[#allocation5 + $0x118] sm:$0xf0] }
 0x2b3   : > { %v4163_v7 = vor.u32 %v5023_v59, %v4160_v60  ;;  %v4302_v60 = vld [vmem:[#allocation5 + $0x30] sm:$0xf] }
 0x2b4   : > { %2157 = vmatpush.bf16.msra.mxu1 %v4199_v63  ;;  %2183 = vmatpush.bf16.msrb.mxu3 %v4203_v0  ;;  %v4400_v63 = vld [vmem:[#allocation5 + $0xf8] sm:$0xf0]  ;;  %v4219_v0 = vor.u32 %v5037_v42, %v4216_v55  ;;  %v5012_v42 = vld [vmem:[#allocation5 + $0xb4] sm:$0xf0]  ;;  %v4998_v55 = vld [vmem:[#allocation5 + $0x44] sm:$0xf0] }
 0x2b6   : > { %2172 = vmatpush.bf16.msra.mxu2 %v4247_v10  ;;  %2198 = vmatpush.bf16.msra.mxu0 %v4251_v11  ;;  %v5018_v10 = vld [vmem:[#allocation5 + $0xe4] sm:$0xf0]  ;;  %v5021_v11 = vld [vmem:[#allocation5 + $0x104] sm:$0xf] }
 0x2b7   : > { %v4391_v17 = vor.u32 %v5018_v10, %v4390_v50 }
 0x2b8   : > { %2158 = vmatpush.bf16.msra.mxu1 %v4191_v1  ;;  %2184 = vmatpush.bf16.msrb.mxu3 %v4195_v14  ;;  %v4403_v1 = vor.u32 %v5019_v62, %v4400_v63  ;;  %v5004_v14 = vld [vmem:[#allocation5 + $0x74] sm:$0xf0]  ;;  %v5010_v62 = vld [vmem:[#allocation5 + $0xa4] sm:$0xf0] }
 0x2b9   : > { %v4996_v63 = vld [vmem:[#allocation5 + $0x34] sm:$0xf0] }
 0x2ba   : > { %2173 = vmatpush.bf16.msra.mxu2 %v4239_v21  ;;  %2199 = vmatpush.bf16.msra.mxu0 %v4243_v22  ;;  %v4155_v21 = vor.u32 %v5021_v11, %v4152_v12  ;;  %v4335_v22 = vor.u32 %v5004_v14, %v4334_v13  ;;  %v4303_v50 = vor.u32 %v4996_v63, %v4302_v60  ;;  %v4294_v11 = vld [vmem:[#allocation5 + $0x20] sm:$0xf]  ;;  %v4350_v12 = vld [vmem:[#allocation5 + $0x90] sm:$0xf]  ;;  %v5008_v13 = vld [vmem:[#allocation5 + $0x94] sm:$0xf0] }
 0x2bb   : > { %v4993_v14 = vld [vmem:[#allocation5 + $0x24] sm:$0xf]  ;;  %v4510_v63 = vld [vmem:[#allocation5 + $0x2d0] sm:$0xf] }
 0x2bc   : > { %2159 = vmatpush.bf16.msra.mxu1 %v4183_v25  ;;  %2185 = vmatpush.bf16.msrb.mxu3 %v4187_v26  ;;  %v4382_v25 = vld [vmem:[#allocation5 + $0xd0] sm:$0xf]  ;;  %v5016_v26 = vld [vmem:[#allocation5 + $0xd4] sm:$0xf0]  ;;  %v5065_v60 = vld [vmem:[#allocation5 + $0x264] sm:$0xf] }
 0x2be   : > { %2174 = vmatpush.bf16.msra.mxu2 %v4231_v36  ;;  %2200 = vmatpush.bf16.msra.mxu0 %v4235_v37  ;;  %v4383_v36 = vor.u32 %v5016_v26, %v4382_v25  ;;  %v4327_v37 = vor.u32 %v5002_v27, %v4326_v24  ;;  %v4342_v24 = vld [vmem:[#allocation5 + $0x80] sm:$0xf]  ;;  %v5006_v25 = vld [vmem:[#allocation5 + $0x84] sm:$0xf0]  ;;  %v4991_v26 = vld [vmem:[#allocation5 + $0x14] sm:$0xf] }
 0x2bf   : > { %v4288_v27 = vld [vmem:[#allocation5 + $0x18] sm:$0xf0] }
 0x2c0   : > { %2160 = vmatpush.bf16.msra.mxu1 %v4175_v39  ;;  %2186 = vmatpush.bf16.msrb.mxu3 %v4179_v30  ;;  %v4374_v39 = vld [vmem:[#allocation5 + $0xc0] sm:$0xf]  ;;  %v5014_v30 = vld [vmem:[#allocation5 + $0xc4] sm:$0xf0] }
 0x2c1   : > { %v4375_v48 = vor.u32 %v5014_v30, %v4374_v39  ;;  %v4291_v39 = vor.u32 %v4991_v26, %v4288_v27  ;;  %v4278_v30 = vld [vmem:[#allocation5] sm:$0xf]  ;;  %v4430_v27 = vld [vmem:[#allocation5 + $0x230] sm:$0xf] }
 0x2c2   : > { %2175 = vmatpush.bf16.msra.mxu2 %v4223_v49  ;;  %2201 = vmatpush.bf16.msra.mxu0 %v4227_v51  ;;  %v4319_v49 = vor.u32 %v5000_v40, %v4318_v9  ;;  %v4310_v51 = vld [vmem:[#allocation5 + $0x40] sm:$0xf]  ;;  %v4990_v40 = vld [vmem:[#allocation5 + $0x4] sm:$0xf0] }
 0x2c3   : > { %v4311_v6 = vor.u32 %v4998_v55, %v4310_v51  ;;  %v5081_v55 = vld [vmem:[#allocation5 + $0x2e4] sm:$0xf] }
 0x2c4   : > { %2161 = vmatpush.bf16.msra.mxu1 %v4167_v54  ;;  %2187 = vmatpush.bf16.msrb.mxu3 %v4171_v56  ;;  %v4997_v54 = vld [vmem:[#allocation5 + $0x44] sm:$0xf]  ;;  %v4312_v56 = vld [vmem:[#allocation5 + $0x48] sm:$0xf0] }
 0x2c5   : > { %v4315_v59 = vor.u32 %v4997_v54, %v4312_v56  ;;  %v4520_v54 = vld [vmem:[#allocation5 + $0x2e8] sm:$0xf0]  ;;  %v4279_v56 = vor.u32 %v4990_v40, %v4278_v30  ;;  %v4422_v40 = vld [vmem:[#allocation5 + $0x220] sm:$0xf] }
 0x2c6   : > { %2176 = vmatpush.bf16.msra.mxu2 %v4215_v61  ;;  %2202 = vmatpush.bf16.msra.mxu0 %v4219_v0  ;;  %v4358_v61 = vld [vmem:[#allocation5 + $0xa0] sm:$0xf]  ;;  %v4995_v0 = vld [vmem:[#allocation5 + $0x34] sm:$0xf] }
 0x2c7   : > { %v4359_v8 = vor.u32 %v5010_v62, %v4358_v61  ;;  %v4307_v10 = vor.u32 %v4995_v0, %v4304_v2  ;;  %v4456_v61 = vld [vmem:[#allocation5 + $0x268] sm:$0xf0]  ;;  %v4523_v62 = vor.u32 %v5081_v55, %v4520_v54  ;;  %v5080_v0 = vld [vmem:[#allocation5 + $0x2d4] sm:$0xf0]  ;;  %v5079_v2 = vld [vmem:[#allocation5 + $0x2d4] sm:$0xf] }
 0x2c8   : > { %2162 = vmatpush.bf16.msra.mxu1 %v4159_v5  ;;  %2188 = vmatpush.bf16.msrb.mxu3 %v4163_v7  ;;  %v5009_v5 = vld [vmem:[#allocation5 + $0xa4] sm:$0xf]  ;;  %v4360_v7 = vld [vmem:[#allocation5 + $0xa8] sm:$0xf0]  ;;  %v5056_v54 = vld [vmem:[#allocation5 + $0x214] sm:$0xf0] }
 0x2c9   : > { %2177 = vmatmul.bf16.vlgmr.msra.gmra.mxu2 %v5920_v29  ;;  %2203 = vmatmul.bf16.vlgmr.msra.gmra.mxu0 %v5920_v29  ;;  %v4999_v29 = vld [vmem:[#allocation5 + $0x54] sm:$0xf]  ;;  %v4363_v16 = vor.u32 %v5009_v5, %v4360_v7  ;;  %v4459_v7 = vor.u32 %v5065_v60, %v4456_v61  ;;  %v4480_v61 = vld [vmem:[#allocation5 + $0x298] sm:$0xf0] }
 0x2ca   : > { %2381 = vmatpush.bf16.msrb.mxu2 %v4399_v3  ;;  %2407 = vmatpush.bf16.msrb.mxu0 %v4403_v1  ;;  %v4323_v33 = vor.u32 %v4999_v29, %v4320_v41  ;;  %v4371_v3 = vor.u32 %v5011_v58, %v4368_v43  ;;  %v4994_v1 = vld [vmem:[#allocation5 + $0x24] sm:$0xf0]  ;;  %v4989_v29 = vld [vmem:[#allocation5 + $0x4] sm:$0xf]  ;;  %v4280_v41 = vld [vmem:[#allocation5 + $0x8] sm:$0xf0]  ;;  %v4463_v58 = vor.u32 %v5068_v47, %v4462_v4 }
 0x2cb   : > { %v5074_v4 = vld [vmem:[#allocation5 + $0x2a4] sm:$0xf0]  ;;  %v5057_v47 = vld [vmem:[#allocation5 + $0x224] sm:$0xf] }
 0x2cc   : > { %2163 = vmatpush.bf16.msra.mxu1 %v4151_v20  ;;  %2189 = vmatpush.bf16.msrb.mxu3 %v4155_v21  ;;  %v4351_v20 = vor.u32 %v5008_v13, %v4350_v12  ;;  %v4295_v21 = vor.u32 %v4994_v1, %v4294_v11  ;;  %v5063_v11 = vld [vmem:[#allocation5 + $0x254] sm:$0xf]  ;;  %v4448_v12 = vld [vmem:[#allocation5 + $0x258] sm:$0xf0] }
 0x2ce   : > { %2382 = vmatpush.bf16.msrb.mxu2 %v4391_v17  ;;  %2408 = vmatpush.bf16.msrb.mxu0 %v4395_v32  ;;  %v5007_v17 = vld [vmem:[#allocation5 + $0x94] sm:$0xf]  ;;  %v4344_v32 = vld [vmem:[#allocation5 + $0x88] sm:$0xf0] }
 0x2cf   : > { %2164 = vmatmul.bf16.vlgmr.msra.gmra.mxu1 %v5924_v52  ;;  %2190 = vmatmul.bf16.vlgmr.msrb.gmra.mxu3 %v5924_v52  ;;  %v4367_v52 = vor.u32 %v5012_v42, %v4366_v53  ;;  %v4355_v28 = vor.u32 %v5007_v17, %v4352_v18  ;;  %v4518_v53 = vld [vmem:[#allocation5 + $0x2e0] sm:$0xf]  ;;  %v5082_v42 = vld [vmem:[#allocation5 + $0x2e4] sm:$0xf0] }
 0x2d0   : > { %2368 = vmatpush.bf16.msrb.mxu1 %v4335_v22  ;;  %2394 = vmatpush.bf16.msra.mxu3 %v4339_v23  ;;  %v4299_v22 = vor.u32 %v4993_v14, %v4296_v15  ;;  %v4992_v23 = vld [vmem:[#allocation5 + $0x14] sm:$0xf0]  ;;  %v4451_v14 = vor.u32 %v5063_v11, %v4448_v12  ;;  %v4438_v15 = vld [vmem:[#allocation5 + $0x240] sm:$0xf] }
 0x2d1   : > { %v4287_v9 = vor.u32 %v4992_v23, %v4286_v19  ;;  %v4502_v17 = vld [vmem:[#allocation5 + $0x2c0] sm:$0xf]  ;;  %v5078_v19 = vld [vmem:[#allocation5 + $0x2c4] sm:$0xf0] }
 0x2d2   : > { %2383 = vmatpush.bf16.msrb.mxu2 %v4383_v36  ;;  %2409 = vmatpush.bf16.msrb.mxu0 %v4387_v44  ;;  %v4343_v36 = vor.u32 %v5006_v25, %v4342_v24  ;;  %v4347_v44 = vor.u32 %v5005_v31, %v4344_v32  ;;  %v5077_v24 = vld [vmem:[#allocation5 + $0x2c4] sm:$0xf]  ;;  %v4504_v25 = vld [vmem:[#allocation5 + $0x2c8] sm:$0xf0]  ;;  %v4494_v31 = vld [vmem:[#allocation5 + $0x2b0] sm:$0xf] }
 0x2d3   : > { %v4507_v26 = vor.u32 %v5077_v24, %v4504_v25 }
 0x2d4   : > { %2369 = vmatpush.bf16.msrb.mxu1 %v4327_v37  ;;  %2395 = vmatpush.bf16.msra.mxu3 %v4331_v38  ;;  %v5083_v37 = vld [vmem:[#allocation5 + $0x2f4] sm:$0xf]  ;;  %v4528_v38 = vld [vmem:[#allocation5 + $0x2f8] sm:$0xf0] }
 0x2d5   : > { %v4531_v51 = vor.u32 %v5083_v37, %v4528_v38 }
 0x2d6   : > { %2384 = vmatpush.bf16.msrb.mxu2 %v4375_v48  ;;  %2410 = vmatpush.bf16.msrb.mxu0 %v4379_v57  ;;  %v4527_v48 = vor.u32 %v5084_v35, %v4526_v34  ;;  %v4283_v57 = vor.u32 %v4989_v29, %v4280_v41  ;;  %v5076_v34 = vld [vmem:[#allocation5 + $0x2b4] sm:$0xf0]  ;;  %v5059_v35 = vld [vmem:[#allocation5 + $0x234] sm:$0xf]  ;;  %v5058_v29 = vld [vmem:[#allocation5 + $0x224] sm:$0xf0] }
 0x2d7   : > { %v4495_v37 = vor.u32 %v5076_v34, %v4494_v31  ;;  %v4486_v41 = vld [vmem:[#allocation5 + $0x2a0] sm:$0xf] }
 0x2d8   : > { %2370 = vmatpush.bf16.msrb.mxu1 %v4319_v49  ;;  %2396 = vmatpush.bf16.msra.mxu3 %v4323_v33  ;;  %v5067_v49 = vld [vmem:[#allocation5 + $0x274] sm:$0xf]  ;;  %v4464_v33 = vld [vmem:[#allocation5 + $0x278] sm:$0xf0] }
 0x2d9   : > { %v4467_v43 = vor.u32 %v5067_v49, %v4464_v33  ;;  %v4487_v49 = vor.u32 %v5074_v4, %v4486_v41 }
 0x2da   : > { %2385 = vmatpush.bf16.msrb.mxu2 %v4367_v52  ;;  %2411 = vmatpush.bf16.msrb.mxu0 %v4371_v3  ;;  %v4454_v52 = vld [vmem:[#allocation5 + $0x260] sm:$0xf]  ;;  %v4512_v3 = vld [vmem:[#allocation5 + $0x2d8] sm:$0xf0] }
 0x2db   : > { %v4515_v13 = vor.u32 %v5079_v2, %v4512_v3  ;;  %v4470_v2 = vld [vmem:[#allocation5 + $0x280] sm:$0xf]  ;;  %v5070_v3 = vld [vmem:[#allocation5 + $0x284] sm:$0xf0] }
 0x2dc   : > { %2371 = vmatpush.bf16.msrb.mxu1 %v4311_v6  ;;  %2397 = vmatpush.bf16.msra.mxu3 %v4315_v59  ;;  %v5066_v6 = vld [vmem:[#allocation5 + $0x264] sm:$0xf0]  ;;  %v4519_v59 = vor.u32 %v5082_v42, %v4518_v53  ;;  %v4488_v53 = vld [vmem:[#allocation5 + $0x2a8] sm:$0xf0]  ;;  %v4414_v42 = vld [vmem:[#allocation5 + $0x210] sm:$0xf]  ;;  %v4471_v11 = vor.u32 %v5070_v3, %v4470_v2 }
 0x2dd   : > { %v4455_v5 = vor.u32 %v5066_v6, %v4454_v52  ;;  %v5055_v52 = vld [vmem:[#allocation5 + $0x214] sm:$0xf]  ;;  %v4416_v6 = vld [vmem:[#allocation5 + $0x218] sm:$0xf0] }
 0x2de   : > { %2386 = vmatpush.bf16.msrb.mxu2 %v4359_v8  ;;  %2412 = vmatpush.bf16.msrb.mxu0 %v4363_v16  ;;  %v4446_v8 = vld [vmem:[#allocation5 + $0x250] sm:$0xf]  ;;  %v5062_v16 = vld [vmem:[#allocation5 + $0x244] sm:$0xf0]  ;;  %v4419_v60 = vor.u32 %v5055_v52, %v4416_v6 }
 0x2df   : > { %v4439_v18 = vor.u32 %v5062_v16, %v4438_v15 }
 0x2e0   : > { %2372 = vmatpush.bf16.msrb.mxu1 %v4303_v50  ;;  %2398 = vmatpush.bf16.msra.mxu3 %v4307_v10  ;;  %v5064_v50 = vld [vmem:[#allocation5 + $0x254] sm:$0xf0]  ;;  %v4511_v10 = vor.u32 %v5080_v0, %v4510_v63  ;;  %v5054_v63 = vld [vmem:[#allocation5 + $0x204] sm:$0xf0] }
 0x2e1   : > { %v4447_v1 = vor.u32 %v5064_v50, %v4446_v8  ;;  %v4408_v8 = vld [vmem:[#allocation5 + $0x208] sm:$0xf0]  ;;  %v5069_v50 = vld [vmem:[#allocation5 + $0x284] sm:$0xf] }
 0x2e2   : > { %2387 = vmatpush.bf16.msrb.mxu2 %v4351_v20  ;;  %2413 = vmatpush.bf16.msrb.mxu0 %v4355_v28  ;;  %v5061_v20 = vld [vmem:[#allocation5 + $0x244] sm:$0xf]  ;;  %v5060_v28 = vld [vmem:[#allocation5 + $0x234] sm:$0xf0] }
 0x2e3   : > { %v4431_v32 = vor.u32 %v5060_v28, %v4430_v27 }
 0x2e4   : > { %2373 = vmatpush.bf16.msrb.mxu1 %v4295_v21  ;;  %2399 = vmatpush.bf16.msra.mxu3 %v4299_v22  ;;  %v4440_v21 = vld [vmem:[#allocation5 + $0x248] sm:$0xf0]  ;;  %v4503_v22 = vor.u32 %v5078_v19, %v4502_v17 }
 0x2e5   : > { %v4443_v23 = vor.u32 %v5061_v20, %v4440_v21 }
 0x2e6   : > { %2388 = vmatpush.bf16.msrb.mxu2 %v4343_v36  ;;  %2414 = vmatpush.bf16.msrb.mxu0 %v4347_v44  ;;  %v4432_v36 = vld [vmem:[#allocation5 + $0x238] sm:$0xf0]  ;;  %v4423_v44 = vor.u32 %v5058_v29, %v4422_v40 }
 0x2e7   : > { %v4435_v38 = vor.u32 %v5059_v35, %v4432_v36 }
 0x2e8   : > { %2374 = vmatpush.bf16.msrb.mxu1 %v4287_v9  ;;  %2400 = vmatpush.bf16.msra.mxu3 %v4291_v39  ;;  %v5075_v9 = vld [vmem:[#allocation5 + $0x2b4] sm:$0xf]  ;;  %v4496_v39 = vld [vmem:[#allocation5 + $0x2b8] sm:$0xf0] }
 0x2e9   : > { %v4499_v30 = vor.u32 %v5075_v9, %v4496_v39 }
 0x2ea   : > { %2626 = vmatpush.bf16.msra.mxu2 %v4527_v48  ;;  %2652 = vmatpush.bf16.msra.mxu0 %v4531_v51  ;;  %v4424_v48 = vld [vmem:[#allocation5 + $0x228] sm:$0xf0]  ;;  %v5073_v51 = vld [vmem:[#allocation5 + $0x2a4] sm:$0xf] }
 0x2eb   : > { %v4427_v33 = vor.u32 %v5057_v47, %v4424_v48  ;;  %v4491_v55 = vor.u32 %v5073_v51, %v4488_v53 }
 0x2ec   : > { %2375 = vmatpush.bf16.msrb.mxu1 %v4279_v56  ;;  %2401 = vmatpush.bf16.msra.mxu3 %v4283_v57  ;;  %v4478_v56 = vld [vmem:[#allocation5 + $0x290] sm:$0xf]  ;;  %v5072_v57 = vld [vmem:[#allocation5 + $0x294] sm:$0xf0] }
 0x2ee   : > { %2627 = vmatpush.bf16.msra.mxu2 %v4519_v59  ;;  %2653 = vmatpush.bf16.msra.mxu0 %v4523_v62  ;;  %v5071_v59 = vld [vmem:[#allocation5 + $0x294] sm:$0xf]  ;;  %v4406_v62 = vld [vmem:[#allocation5 + $0x200] sm:$0xf] }
 0x2ef   : > { %v4483_v0 = vor.u32 %v5071_v59, %v4480_v61 }
 0x2f0   : > { %2613 = vmatpush.bf16.msra.mxu1 %v4463_v58  ;;  %2639 = vmatpush.bf16.msrb.mxu3 %v4467_v43  ;;  %v4415_v58 = vor.u32 %v5056_v54, %v4414_v42  ;;  %v4479_v43 = vor.u32 %v5072_v57, %v4478_v56 }
 0x2f2   : > { %2628 = vmatpush.bf16.msra.mxu2 %v4511_v10  ;;  %2654 = vmatpush.bf16.msra.mxu0 %v4515_v13  ;;  %v4472_v10 = vld [vmem:[#allocation5 + $0x288] sm:$0xf0] }
 0x2f3   : > { %v4475_v13 = vor.u32 %v5069_v50, %v4472_v10 }
 0x2f4   : > { %2614 = vmatpush.bf16.msra.mxu1 %v4455_v5  ;;  %2640 = vmatpush.bf16.msrb.mxu3 %v4459_v7  ;;  %v5053_v5 = vld [vmem:[#allocation5 + $0x204] sm:$0xf]  ;;  %v4407_v7 = vor.u32 %v5054_v63, %v4406_v62 }
 0x2f5   : > { %v4411_v12 = vor.u32 %v5053_v5, %v4408_v8  ;;  %v5116_v8 = vld [vmem:[#allocation7 + $0xf8] sm:$0xff] }
 0x2f6   : > { %2629 = vmatpush.bf16.msra.mxu2 %v4503_v22  ;;  %2655 = vmatpush.bf16.msra.mxu0 %v4507_v26 }
 0x2f8   : > { %2615 = vmatpush.bf16.msra.mxu1 %v4447_v1  ;;  %2641 = vmatpush.bf16.msrb.mxu3 %v4451_v14 }
 0x2fa   : > { %2630 = vmatpush.bf16.msra.mxu2 %v4495_v37  ;;  %2656 = vmatpush.bf16.msra.mxu0 %v4499_v30 }
 0x2fc   : > { %2616 = vmatpush.bf16.msra.mxu1 %v4439_v18  ;;  %2642 = vmatpush.bf16.msrb.mxu3 %v4443_v23 }
 0x2fe   : > { %2631 = vmatpush.bf16.msra.mxu2 %v4487_v49  ;;  %2657 = vmatpush.bf16.msra.mxu0 %v4491_v55  ;;  %v2667_v49 = vld [vmem:[%s6086_s8] sm:$0x3] }
 0x2ff   : > { %v2669_v55 = vperm.slane %v2667_v49, 0 }
 0x300   : > { %2617 = vmatpush.bf16.msra.mxu1 %v4431_v32  ;;  %2643 = vmatpush.bf16.msrb.mxu3 %v4435_v38 }
 0x302   : > { %2632 = vmatpush.bf16.msra.mxu2 %v4479_v43  ;;  %2658 = vmatpush.bf16.msra.mxu0 %v4483_v0 }
 0x304   : > { %2618 = vmatpush.bf16.msra.mxu1 %v4423_v44  ;;  %2644 = vmatpush.bf16.msrb.mxu3 %v4427_v33 }
 0x306   : > { %2633 = vmatpush.bf16.msra.mxu2 %v4471_v11  ;;  %2659 = vmatpush.bf16.msra.mxu0 %v4475_v13  ;;  %v5092_v11 = vld [vmem:[#allocation7 + $0x38] sm:$0xff]  ;;  %v5115_v13 = vld [vmem:[#allocation7 + $0xf0] sm:$0xff] }
 0x308   : > { %2619 = vmatpush.bf16.msra.mxu1 %v4415_v58  ;;  %2645 = vmatpush.bf16.msrb.mxu3 %v4419_v60  ;;  %v2670_v58 = vperm.slane %v2667_v49, 1  ;;  %v5127_v49 = vld [vmem:[#allocation7 + $0x150] sm:$0xff] }
 0x30c   : > { %2620 = vmatpush.bf16.msra.mxu1 %v4407_v7  ;;  %2646 = vmatpush.bf16.msrb.mxu3 %v4411_v12  ;;  %v5108_v7 = vld [vmem:[#allocation7 + $0xb8] sm:$0xff]  ;;  %v5107_v12 = vld [vmem:[#allocation7 + $0xb0] sm:$0xff] }
 0x326   : > { %v1925_v1 = vpop.f32.mrf.mxu0 }
 0x327   : > { %v1930_v22 = vpack.c.bf16 %v1925_v1, %v1925_v1  ;;  %v5100_v1 = vld [vmem:[#allocation7 + $0x78] sm:$0xff] }
 0x32c   : > { %v1884_v14 = vpop.f32.mrf.mxu1  ;;  %v1897_v15 = vpop.f32.mrf.mxu2 }
 0x32d   : > { %v1901_v16 = vpack.c.bf16 %v1884_v14, %v1884_v14  ;;  %v1902_v17 = vpack.c.bf16 %v1897_v15, %v1897_v15  ;;  %v5091_v14 = vld [vmem:[#allocation7 + $0x30] sm:$0xff]  ;;  %v5106_v15 = vld [vmem:[#allocation7 + $0xa8] sm:$0xff] }
 0x32e   : > { %v1927_v18 = vpop.f32.mrf.mxu0 }
 0x32f   : > { %2376 = vmatmul.bf16.vlgmr.msrb.gmra.mxu1 %v1901_v16  ;;  %2389 = vmatmul.bf16.vlgmr.msrb.gmra.mxu2 %v1902_v17  ;;  %v5090_v18 = vld [vmem:[#allocation7 + $0x28] sm:$0xff] }
 0x330   : > { %2402 = vmatmul.bf16.vlgmr.msra.gmra.mxu3 %v1901_v16  ;;  %2415 = vmatmul.bf16.vlgmr.msrb.gmra.mxu0 %v1902_v17  ;;  %v5114_v16 = vld [vmem:[#allocation7 + $0xe8] sm:$0xff]  ;;  %v5099_v17 = vld [vmem:[#allocation7 + $0x70] sm:$0xff] }
 0x332   : > { %v1912_v19 = vpop.f32.mrf.mxu3 }
 0x333   : > { %v1929_v23 = vpack.c.bf16 %v1912_v19, %v1912_v19  ;;  %v5105_v19 = vld [vmem:[#allocation7 + $0xa0] sm:$0xff] }
 0x334   : > { %v1886_v20 = vpop.f32.mrf.mxu1  ;;  %v1899_v21 = vpop.f32.mrf.mxu2 }
 0x335   : > { %v5113_v20 = vld [vmem:[#allocation7 + $0xe0] sm:$0xff]  ;;  %v5098_v21 = vld [vmem:[#allocation7 + $0x68] sm:$0xff] }
 0x33a   : > { %v1914_v24 = vpop.f32.mrf.mxu3 }
 0x33b   : > { %v5097_v24 = vld [vmem:[#allocation7 + $0x60] sm:$0xff] }
 0x33f   : > { %2621 = vmatmul.bf16.vlgmr.msra.gmra.mxu1 %v1929_v23  ;;  %2634 = vmatmul.bf16.vlgmr.msra.gmra.mxu2 %v1930_v22 }
 0x340   : > { %2647 = vmatmul.bf16.vlgmr.msrb.gmra.mxu3 %v1929_v23  ;;  %2660 = vmatmul.bf16.vlgmr.msra.gmra.mxu0 %v1930_v22  ;;  %v5104_v22 = vld [vmem:[#allocation7 + $0x98] sm:$0xff] }
 0x341   : > { %v5112_v23 = vld [vmem:[#allocation7 + $0xd8] sm:$0xff] }
 0x346   : > { %v2204_v25 = vpop.f32.mrf.mxu0 }
 0x34c   : > { %v2165_v26 = vpop.f32.mrf.mxu1  ;;  %v2178_v27 = vpop.f32.mrf.mxu2 }
 0x34d   : > { %v2179_v28 = vadd.f32 %v2178_v27, %v2165_v26  ;;  %v5103_v26 = vld [vmem:[#allocation7 + $0x90] sm:$0xff] }
 0x34e   : > { %v2206_v31 = vpop.f32.mrf.mxu0  ;;  %v5111_v27 = vld [vmem:[#allocation7 + $0xd0] sm:$0xff] }
 0x34f   : > { %v5087_v31 = vld [vmem:[#allocation7 + $0x10] sm:$0xff] }
 0x352   : > { %v2191_v32 = vpop.f32.mrf.mxu3 }
 0x353   : > { %v2205_v34 = vadd.f32 %v2204_v25, %v2191_v32  ;;  %v5088_v25 = vld [vmem:[#allocation7 + $0x18] sm:$0xff]  ;;  %v5102_v32 = vld [vmem:[#allocation7 + $0x88] sm:$0xff] }
 0x354   : > { %v2167_v35 = vpop.f32.mrf.mxu1  ;;  %v2180_v36 = vpop.f32.mrf.mxu2 }
 0x355   : > { %v5095_v35 = vld [vmem:[#allocation7 + $0x50] sm:$0xff]  ;;  %v5086_v36 = vld [vmem:[#allocation7 + $0x8] sm:$0xff] }
 0x35a   : > { %v2193_v37 = vpop.f32.mrf.mxu3 }
 0x35b   : > { %v5101_v37 = vld [vmem:[#allocation7 + $0x80] sm:$0xff] }
 0x3ac   : > { %v2377_v38 = vpop.f32.mrf.mxu1 }
 0x3ad   : > { %v2416_v9 = vpop.f32.mrf.mxu0  ;;  %v2378_v33 = vadd.f32 %v2377_v38, %v2179_v28  ;;  %v5096_v28 = vld [vmem:[#allocation7 + $0x58] sm:$0xff]  ;;  %v5109_v38 = vld [vmem:[#allocation7 + $0xc0] sm:$0xff] }
 0x3b2   : > { %v2390_v39 = vpop.f32.mrf.mxu2 }
 0x3b3   : > { %v2403_v30 = vpop.f32.mrf.mxu3  ;;  %v2391_v53 = vadd.f32 %v2390_v39, %v2378_v33  ;;  %v5124_v39 = vld [vmem:[#allocation7 + $0x138] sm:$0xff]  ;;  %v5119_v33 = vld [vmem:[#allocation7 + $0x110] sm:$0xff] }
 0x3b4   : > { %v2379_v40 = vpop.f32.mrf.mxu1  ;;  %v2404_v48 = vadd.f32 %v2403_v30, %v2205_v34  ;;  %v5110_v34 = vld [vmem:[#allocation7 + $0xc8] sm:$0xff]  ;;  %v5131_v30 = vld [vmem:[#allocation7 + $0x170] sm:$0xff] }
 0x3b5   : > { %v2418_v29 = vpop.f32.mrf.mxu0  ;;  %v5123_v40 = vld [vmem:[#allocation7 + $0x130] sm:$0xff] }
 0x3b6   : > { %v2417_v56 = vadd.f32 %v2416_v9, %v2404_v48  ;;  %v5132_v9 = vld [vmem:[#allocation7 + $0x178] sm:$0xff]  ;;  %v5130_v29 = vld [vmem:[#allocation7 + $0x168] sm:$0xff] }
 0x3b7   : > { %v5120_v48 = vld [vmem:[#allocation7 + $0x118] sm:$0xff] }
 0x3ba   : > { %v2392_v41 = vpop.f32.mrf.mxu2 }
 0x3bb   : > { %v2405_v44 = vpop.f32.mrf.mxu3  ;;  %v5122_v41 = vld [vmem:[#allocation7 + $0x128] sm:$0xff] }
 0x3bc   : > { %v2622_v4 = vpop.f32.mrf.mxu1  ;;  %v5129_v44 = vld [vmem:[#allocation7 + $0x160] sm:$0xff] }
 0x3bd   : > { %v2661_v47 = vpop.f32.mrf.mxu0 }
 0x3c2   : > { %v2635_v51 = vpop.f32.mrf.mxu2 }
 0x3c3   : > { %v2636_v42 = vadd.f32 %v2635_v51, %v2622_v4  ;;  %v2648_v54 = vpop.f32.mrf.mxu3  ;;  %v5121_v4 = vld [vmem:[#allocation7 + $0x120] sm:$0xff]  ;;  %v5126_v51 = vld [vmem:[#allocation7 + $0x148] sm:$0xff] }
 0x3c4   : > { %v2662_v57 = vadd.f32 %v2661_v47, %v2648_v54  ;;  %v2624_v43 = vpop.f32.mrf.mxu1  ;;  %v5128_v47 = vld [vmem:[#allocation7 + $0x158] sm:$0xff]  ;;  %v5118_v54 = vld [vmem:[#allocation7 + $0x108] sm:$0xff] }
 0x3c5   : > { %v2665_v52 = vadd.f32 %v2636_v42, %v2391_v53  ;;  %v2663_v6 = vpop.f32.mrf.mxu0  ;;  %v5085_v53 = vld [vmem:[#allocation7] sm:$0xff] }
 0x3c6   : > { %v2666_v59 = vadd.f32 %v2662_v57, %v2417_v56  ;;  %v5125_v42 = vld [vmem:[#allocation7 + $0x140] sm:$0xff] }
 0x3c7   : > { %v2673_v60 = vadd.f32 %v2669_v55, %v2665_v52  ;;  %v5094_v55 = vld [vmem:[#allocation7 + $0x48] sm:$0xff]  ;;  %v5093_v56 = vld [vmem:[#allocation7 + $0x40] sm:$0xff] }
 0x3c8   : > { %v2674_v61 = vadd.f32 %v2670_v58, %v2666_v59  ;;  %v5117_v57 = vld [vmem:[#allocation7 + $0x100] sm:$0xff] }
 0x3c9   : > { %v2675_v62 = vmax.f32 %v2673_v60, 0.0 }
 0x3ca   : > { %v2676_v63 = vmax.f32 %v2674_v61, 0.0  ;;  %v2637_v0 = vpop.f32.mrf.mxu2 }
 0x3cb   : > { %v2650_v2 = vpop.f32.mrf.mxu3  ;;  %v5943_v3 = vpack.c.bf16 %v2675_v62, %v2675_v62 }
 0x3cc   : > { %v5945_v5 = vpack.c.bf16 %v2676_v63, %v2676_v63  ;;  %v5140_v2 = vld [vmem:[%s6089_s11 + $0x78] sm:$0xff] }
 0x3cd   : > { %v2680_v50 = vsel %vm492_vm0, %v5943_v3, 0 }
 0x3ce   : > { %2692 = vmatpush.bf16.msrb.mxu1 %v2680_v50  ;;  %v2683_v10 = vsel %vm492_vm0, %v5945_v5, 0  ;;  %2720 = vmatpush.bf16.msra.mxu3 %v2680_v50 }
 0x3cf   : > { %2705 = vmatpush.bf16.msrb.mxu2 %v2683_v10  ;;  %2733 = vmatpush.bf16.msrb.mxu0 %v2683_v10  ;;  %v5138_v10 = vld [vmem:[%s6089_s11 + $0x68] sm:$0xff] }
 0x3d1   : > { %4532 = vmatmul.msk.bf16.vlgmr.msrb.gmra.mxu1 %vm488_vm1, %v5885_v45  ;;  %4534 = vmatmul.msk.bf16.vlgmr.msra.gmra.mxu3 %vm488_vm1, %v5887_v46 }
 0x3d2   : > { %2902 = vmatpush.bf16.msra.mxu1 %v5108_v7  ;;  %4533 = vmatmul.msk.bf16.vlgmr.msrb.gmra.mxu2 %vm488_vm1, %v5885_v45  ;;  %v5089_v45 = vld [vmem:[#allocation7 + $0x20] sm:$0xff]  ;;  %v5139_v7 = vld [vmem:[%s6089_s11 + $0x70] sm:$0xff] }
 0x3d3   : > { %2915 = vmatpush.bf16.msra.mxu2 %v5116_v8  ;;  %4535 = vmatmul.msk.bf16.vlgmr.msrb.gmra.mxu0 %vm488_vm1, %v5887_v46  ;;  %v5147_v8 = vld [vmem:[%s6089_s11 + $0x30] sm:$0xff] }
 0x3d4   : > { %3024 = vmatpush.bf16.msrb.mxu3 %v5092_v11  ;;  %3037 = vmatpush.bf16.msra.mxu0 %v5100_v1  ;;  %v5146_v11 = vld [vmem:[%s6089_s11 + $0x28] sm:$0xff]  ;;  %v5136_v1 = vld [vmem:[%s6089_s11 + $0x58] sm:$0xff] }
 0x3d6   : > { %2903 = vmatpush.bf16.msra.mxu1 %v5107_v12  ;;  %v5137_v12 = vld [vmem:[%s6089_s11 + $0x60] sm:$0xff] }
 0x3d7   : > { %2916 = vmatpush.bf16.msra.mxu2 %v5115_v13  ;;  %v5145_v13 = vld [vmem:[%s6089_s11 + $0x20] sm:$0xff] }
 0x3d8   : > { %3025 = vmatpush.bf16.msrb.mxu3 %v5091_v14  ;;  %3038 = vmatpush.bf16.msra.mxu0 %v5099_v17  ;;  %v5144_v14 = vld [vmem:[%s6089_s11 + $0x18] sm:$0xff] }
 0x3da   : > { %2904 = vmatpush.bf16.msra.mxu1 %v5106_v15 }
 0x3db   : > { %2917 = vmatpush.bf16.msra.mxu2 %v5114_v16 }
 0x3dc   : > { %3026 = vmatpush.bf16.msrb.mxu3 %v5090_v18  ;;  %3039 = vmatpush.bf16.msra.mxu0 %v5098_v21  ;;  %v5143_v21 = vld [vmem:[%s6089_s11 + $0x10] sm:$0xff] }
 0x3de   : > { %2905 = vmatpush.bf16.msra.mxu1 %v5105_v19 }
 0x3df   : > { %2918 = vmatpush.bf16.msra.mxu2 %v5113_v20  ;;  %v5135_v20 = vld [vmem:[%s6089_s11 + $0x50] sm:$0xff] }
 0x3e0   : > { %3027 = vmatpush.bf16.msrb.mxu3 %v5089_v45  ;;  %3040 = vmatpush.bf16.msra.mxu0 %v5097_v24  ;;  %v5134_v45 = vld [vmem:[%s6089_s11 + $0x48] sm:$0xff]  ;;  %v5141_v24 = vld [vmem:[%s6089_s11] sm:$0xff] }
 0x3e2   : > { %2906 = vmatpush.bf16.msra.mxu1 %v5104_v22  ;;  %v5142_v22 = vld [vmem:[%s6089_s11 + $0x8] sm:$0xff] }
 0x3e3   : > { %2919 = vmatpush.bf16.msra.mxu2 %v5112_v23  ;;  %v5133_v23 = vld [vmem:[%s6089_s11 + $0x40] sm:$0xff] }
 0x3e4   : > { %3028 = vmatpush.bf16.msrb.mxu3 %v5088_v25  ;;  %3041 = vmatpush.bf16.msra.mxu0 %v5096_v28 }
 0x3e6   : > { %2907 = vmatpush.bf16.msra.mxu1 %v5103_v26 }
 0x3e7   : > { %2920 = vmatpush.bf16.msra.mxu2 %v5111_v27 }
 0x3e8   : > { %3029 = vmatpush.bf16.msrb.mxu3 %v5087_v31  ;;  %3042 = vmatpush.bf16.msra.mxu0 %v5095_v35  ;;  %v5233_v35 = vld [vmem:[%s6088_s10] ss:$0 sm:$0xff] }
 0x3ea   : > { %2908 = vmatpush.bf16.msra.mxu1 %v5102_v32 }
 0x3eb   : > { %2921 = vmatpush.bf16.msra.mxu2 %v5110_v34 }
 0x3ec   : > { %3030 = vmatpush.bf16.msrb.mxu3 %v5086_v36  ;;  %3043 = vmatpush.bf16.msra.mxu0 %v5094_v55 }
 0x3ee   : > { %2909 = vmatpush.bf16.msra.mxu1 %v5101_v37 }
 0x3ef   : > { %2922 = vmatpush.bf16.msra.mxu2 %v5109_v38 }
 0x3f0   : > { %3031 = vmatpush.bf16.msrb.mxu3 %v5085_v53  ;;  %3044 = vmatpush.bf16.msra.mxu0 %v5093_v56  ;;  %v5234_v53 = vld [vmem:[%s6090_s12] ss:$0 sm:$0xff] }
 0x3f1   : > { %2910 = vmatmul.bf16.vlgmr.msra.gmra.mxu1 %v5943_v3  ;;  %v5148_v3 = vld [vmem:[%s6089_s11 + $0x38] sm:$0xff] }
 0x3f2   : > { %3179 = vmatpush.bf16.msrb.mxu1 %v5124_v39  ;;  %2923 = vmatmul.bf16.vlgmr.msra.gmra.mxu2 %v5945_v5 }
 0x3f3   : > { %3192 = vmatpush.bf16.msrb.mxu2 %v5132_v9 }
 0x3f4   : > { %3299 = vmatpush.bf16.msrb.mxu0 %v5140_v2 }
 0x3f6   : > { %3180 = vmatpush.bf16.msrb.mxu1 %v5123_v40 }
 0x3f7   : > { %3193 = vmatpush.bf16.msrb.mxu2 %v5131_v30 }
 0x3f8   : > { %3300 = vmatpush.bf16.msrb.mxu0 %v5139_v7 }
 0x3fa   : > { %3181 = vmatpush.bf16.msrb.mxu1 %v5122_v41  ;;  %v5156_v41 = vld [vmem:[%s6089_s11 + $0xb8] sm:$0xff] }
 0x3fb   : > { %3194 = vmatpush.bf16.msrb.mxu2 %v5130_v29 }
 0x3fc   : > { %3301 = vmatpush.bf16.msrb.mxu0 %v5138_v10 }
 0x3fe   : > { %3182 = vmatpush.bf16.msrb.mxu1 %v5121_v4  ;;  %v5155_v4 = vld [vmem:[%s6089_s11 + $0xb0] sm:$0xff] }
 0x3ff   : > { %3195 = vmatpush.bf16.msrb.mxu2 %v5129_v44 }
 0x400   : > { %3302 = vmatpush.bf16.msrb.mxu0 %v5137_v12 }
 0x402   : > { %3183 = vmatpush.bf16.msrb.mxu1 %v5120_v48  ;;  %v5153_v48 = vld [vmem:[%s6089_s11 + $0xa0] sm:$0xff] }
 0x403   : > { %3196 = vmatpush.bf16.msrb.mxu2 %v5128_v47  ;;  %v5154_v47 = vld [vmem:[%s6089_s11 + $0xa8] sm:$0xff] }
 0x404   : > { %3303 = vmatpush.bf16.msrb.mxu0 %v5136_v1 }
 0x406   : > { %3184 = vmatpush.bf16.msrb.mxu1 %v5119_v33  ;;  %v5150_v33 = vld [vmem:[%s6089_s11 + $0x88] sm:$0xff] }
 0x407   : > { %3197 = vmatpush.bf16.msrb.mxu2 %v5127_v49  ;;  %v5152_v49 = vld [vmem:[%s6089_s11 + $0x98] sm:$0xff] }
 0x408   : > { %3304 = vmatpush.bf16.msrb.mxu0 %v5135_v20 }
 0x40a   : > { %3185 = vmatpush.bf16.msrb.mxu1 %v5118_v54 }
 0x40b   : > { %3198 = vmatpush.bf16.msrb.mxu2 %v5126_v51  ;;  %v5149_v51 = vld [vmem:[%s6089_s11 + $0x80] sm:$0xff] }
 0x40c   : > { %3305 = vmatpush.bf16.msrb.mxu0 %v5134_v45 }
 0x40e   : > { %3186 = vmatpush.bf16.msrb.mxu1 %v5117_v57 }
 0x40f   : > { %3199 = vmatpush.bf16.msrb.mxu2 %v5125_v42 }
 0x410   : > { %3306 = vmatpush.bf16.msrb.mxu0 %v5133_v23 }
 0x412   : > { %3454 = vmatpush.bf16.msra.mxu1 %v5148_v3 }
 0x416   : > { %3455 = vmatpush.bf16.msra.mxu1 %v5147_v8 }
 0x41a   : > { %3456 = vmatpush.bf16.msra.mxu1 %v5146_v11 }
 0x41e   : > { %3457 = vmatpush.bf16.msra.mxu1 %v5145_v13 }
 0x422   : > { %3458 = vmatpush.bf16.msra.mxu1 %v5144_v14 }
 0x426   : > { %3459 = vmatpush.bf16.msra.mxu1 %v5143_v21 }
 0x42a   : > { %3460 = vmatpush.bf16.msra.mxu1 %v5142_v22 }
 0x42e   : > { %3461 = vmatpush.bf16.msra.mxu1 %v5141_v24 }
 0x44e   : > { %v2694_v58 = vpop.f32.mrf.mxu1 }
 0x44f   : > { %v2711_v43 = vpack.c.bf16 %v2694_v58, %v2694_v58 }
 0x450   : > { %v2735_v52 = vpop.f32.mrf.mxu0 }
 0x451   : > { %v2740_v6 = vpack.c.bf16 %v2735_v52, %v2735_v52  ;;  %3032 = vmatmul.bf16.vlgmr.msrb.gmra.mxu3 %v2711_v43 }
 0x453   : > { %3200 = vmatmul.bf16.vlgmr.msrb.gmra.mxu2 %v2740_v6 }
 0x454   : > { %v2722_v59 = vpop.f32.mrf.mxu3 }
 0x455   : > { %v2707_v60 = vpop.f32.mrf.mxu2  ;;  %v2739_v61 = vpack.c.bf16 %v2722_v59, %v2722_v59 }
 0x456   : > { %v2712_v62 = vpack.c.bf16 %v2707_v60, %v2707_v60  ;;  %v2696_v63 = vpop.f32.mrf.mxu1 }
 0x457   : > { %3187 = vmatmul.bf16.vlgmr.msrb.gmra.mxu1 %v2739_v61 }
 0x458   : > { %v2737_v0 = vpop.f32.mrf.mxu0  ;;  %3045 = vmatmul.bf16.vlgmr.msra.gmra.mxu0 %v2712_v62 }
 0x45c   : > { %v2724_v5 = vpop.f32.mrf.mxu3 }
 0x45d   : > { %v2709_v50 = vpop.f32.mrf.mxu2 }
 0x46e   : > { %v2911_v15 = vpop.f32.mrf.mxu1 }
 0x475   : > { %v2924_v16 = vpop.f32.mrf.mxu2 }
 0x476   : > { %v2925_v17 = vadd.f32 %v2924_v16, %v2911_v15  ;;  %v2913_v18 = vpop.f32.mrf.mxu1 }
 0x47d   : > { %v2926_v19 = vpop.f32.mrf.mxu2 }
 0x4d4   : > { %v3033_v25 = vpop.f32.mrf.mxu3  ;;  %v3188_v26 = vpop.f32.mrf.mxu1 }
 0x4d5   : > { %v3034_v27 = vadd.f32 %v3033_v25, %v2925_v17  ;;  %v3046_v28 = vpop.f32.mrf.mxu0 }
 0x4d6   : > { %v3201_v31 = vpop.f32.mrf.mxu2 }
 0x4d7   : > { %v3202_v32 = vadd.f32 %v3201_v31, %v3188_v26  ;;  %v3047_v34 = vadd.f32 %v3046_v28, %v3034_v27 }
 0x4d9   : > { %v3205_v36 = vadd.f32 %v3202_v32, %v3047_v34 }
 0x4db   : > { %v3210_v37 = vadd.f32 %v5233_v35, %v3205_v36 }
 0x4dc   : > { %v3035_v38 = vpop.f32.mrf.mxu3  ;;  %v3190_v9 = vpop.f32.mrf.mxu1 }
 0x4dd   : > { %v3211_v39 = vmax.f32 %v3210_v37, 0.0  ;;  %v3048_v30 = vpop.f32.mrf.mxu0 }
 0x4de   : > { %v3203_v40 = vpop.f32.mrf.mxu2 }
 0x4df   : > { %v3212_v29 = vpack.c.bf16 %v3211_v39, %v3211_v39 }
 0x4e1   : > { %3307 = vmatmul.bf16.vlgmr.msrb.gmra.mxu0 %v3212_v29  ;;  %3462 = vmatmul.bf16.vlgmr.msra.gmra.mxu1 %v3212_v29  ;;  %v3214_v44 = vsel %vm492_vm0, %v3212_v29, 0  ;;  %vm3494_vm0 = vcmask 1048064  }
 0x4e2   : > { %3223 = vmatpush.bf16.msra.mxu3 %v3214_v44 }
 0x4e5   : > { %4728 = vmatmul.msk.bf16.vlgmr.msra.gmra.mxu3 %vm488_vm1, %v5887_v46  ;;  %v5151_v46 = vld [vmem:[%s6089_s11 + $0x90] sm:$0xff] }
 0x4e6   : > { %3393 = vmatpush.bf16.msrb.mxu3 %v5156_v41 }
 0x4ea   : > { %3394 = vmatpush.bf16.msrb.mxu3 %v5155_v4 }
 0x4ee   : > { %3395 = vmatpush.bf16.msrb.mxu3 %v5154_v47 }
 0x4f2   : > { %3396 = vmatpush.bf16.msrb.mxu3 %v5153_v48 }
 0x4f6   : > { %3397 = vmatpush.bf16.msrb.mxu3 %v5152_v49 }
 0x4fa   : > { %3398 = vmatpush.bf16.msrb.mxu3 %v5151_v46 }
 0x4fe   : > { %3399 = vmatpush.bf16.msrb.mxu3 %v5150_v33 }
 0x502   : > { %3400 = vmatpush.bf16.msrb.mxu3 %v5149_v51 }
 0x55e   : > { %v3308_v42 = vpop.f32.mrf.mxu0  ;;  %v3463_v55 = vpop.f32.mrf.mxu1 }
 0x55f   : > { %v3309_v54 = vadd.f32 %v5234_v53, %v3308_v42 }
 0x561   : > { %v3468_v56 = vand.u32 2147483647, %v3309_v54  ;;  %vm3475_vm14 = vcmp.ge.f32.partialorder %v3309_v54, 0.0 }
 0x563   : > { %v3469_v57 = vsub.f32 0.0, %v3468_v56 }
 0x565   : > { %v3470_v58 = vmul.f32 1.442695, %v3469_v57 }
 0x566   : > { %v3310_v43 = vpop.f32.mrf.mxu0  ;;  %v3465_v52 = vpop.f32.mrf.mxu1 }
 0x567   : > { %5235 = vpow2.f32 %v3470_v58 }
 0x568   : > { %v3225_v6 = vpop.f32.mrf.mxu3 }
 0x569   : > { %v3229_v59 = vpack.c.bf16 %v3225_v6, %v3225_v6 }
 0x56b   : > { %3401 = vmatmul.bf16.vlgmr.msrb.gmra.mxu3 %v3229_v59 }
 0x56d   : > { %v5236_v60 = vpop.eup %5235 }
 0x56e   : > { %v3472_v61 = vadd.f32 1.0, %v5236_v60 }
 0x570   : > { %5237 = vrcp.f32 %v3472_v61  ;;  %v3227_v62 = vpop.f32.mrf.mxu3 }
 0x576   : > { %v5238_v63 = vpop.eup %5237 }
 0x577   : > { %v3474_v0 = vmul.f32 %v5238_v63, %v5236_v60 }
 0x579   : > { %v3476_v2 = vsub.f32 1.0, %v3474_v0 }
 0x57b   : > { %v3477_v3 = vsel %vm3475_vm14, %v3476_v2, %v3474_v0 }
 0x57c   : > { %3479 = vst.msk [vmem:[%s479_s19] sm:$0xff] %vm3478_vm13, %v3477_v3 }
 0x5ee   : > { %v3402_v5 = vpop.f32.mrf.mxu3 }
 0x5ef   : > { %v3464_v7 = vadd.f32 %v3463_v55, %v3402_v5 }
 0x5f1   : > { %v3467_v8 = vadd.f32 %v5234_v53, %v3464_v7 }
 0x5f3   : > { %v3480_v50 = vand.u32 2147483647, %v3467_v8  ;;  %vm3487_vm15 = vcmp.ge.f32.partialorder %v3467_v8, 0.0 }
 0x5f5   : > { %v3481_v10 = vsub.f32 0.0, %v3480_v50 }
 0x5f6   : > { %v3404_v11 = vpop.f32.mrf.mxu3 }
 0x5f7   : > { %v3482_v12 = vmul.f32 1.442695, %v3481_v10 }
 0x5f9   : > { %5239 = vpow2.f32 %v3482_v12 }
 0x5ff   : > { %v5240_v13 = vpop.eup %5239 }
 0x600   : > { %v3484_v1 = vadd.f32 1.0, %v5240_v13 }
 0x602   : > { %5241 = vrcp.f32 %v3484_v1 }
 0x608   : > { %v5242_v14 = vpop.eup %5241 }
 0x609   : > { %v3486_v15 = vmul.f32 %v5242_v14, %v5240_v13 }
 0x60b   : > { %v3488_v16 = vsub.f32 1.0, %v3486_v15 }
 0x60d   : > { %v3489_v17 = vsel %vm3487_vm15, %v3488_v16, %v3486_v15 }
 0x60e   : > { %3491 = vrot.lane.b32.xlu0 %v3489_v17, %s5413_s20 }
 0x680   : > { %v3492_v18 = vpop.permute.xlu0 %3491 }
 0x681   : > { %3495 = vst.msk [vmem:[%s479_s19] sm:$0xff] %vm3494_vm0, %v3492_v18 }
 0x682   : > { %5360 = shalt.err (!%p5357_p8)
}
 0x683   : > { %5169 = dma.vmem_to_hbm [thread:$0]  (%p5522_p5), %s3510_s22, 128, %s3512_s24, %s3497_s30  }
 0x684 PF: > { %s6112_s28 = sld [smem:[#allocation14_spill]] }
 0x685   : > { %s6113_s19 = sld [smem:[#allocation12_spill]] }
 0x68a   : > { %p5191_p9 = scmp.ge.s32.totalorder %s6112_s28, 2 }
 0x68b   : > { %s3523_s23 = sand.u32 1, %s6113_s19  }
 0x68c   : > { %p5182_p10 = pnand %p5191_p9, %p5526_p6  ;;  %s3524_s15 = scalar_lea.sflag [#allocation4], %s3523_s23 }
 0x68e   : > { %p5183_p11 = pneg %p5182_p10 }
 0x690   : > { %5386 = dma.done.wait (%p5183_p11), %s3524_s15, 128  }
 0x691   : > { %5388 = vsyncadd (%p5183_p11), %s3524_s15, 4294967168  ;;  %s6115_s28 = sld [smem:[#allocation15_spill]]  ;;  %s6118_s25 = smov %s5395_s26 }
 0x692   : > { %s6116_s16 = sld [smem:[#allocation13_spill]] }
 0x693   : > { %s6117_s27 = sld [smem:[#allocation16_spill]] }
 0x697   : > { %p25_p12 = scmp.ge.s32.totalorder %s6115_s28, 4  }
 0x698   : > { %s6119_s26 = smov %s6116_s16 }
 0x699   :  { %27 = sbr.rel (!%p25_p12) target bundleno = 8 (0x8), region = 128 }
 0x69e   :  { %3530 = vsyncpa [#allocation3], 1 }
 0x69f   :  { %3532 = vsyncpa [#allocation3 + $0x1], 1 }
 0x6a0   :  { %3533 = vsyncpa [#allocation6], 1 }
 0x6a1   :  { %3534 = vsyncpa [#allocation4], 1 }
 0x6a2   :  { %3536 = vsyncpa [#allocation4 + $0x1], 1 }

</bundles_post_ra>
